<compile_context>
chip_gen: v7x
topology: tpu7x:2x2x1
jax: 0.10.0
libtpu: 0.0.40
codegen_flags: <defaults>
</compile_context>

<pallas_src>
import functools

import jax
import jax.numpy as jnp
from jax.experimental import pallas as pl
from jax.experimental.pallas import tpu as pltpu


# ----------------------------------------------------------------------------
# The single fused kernel
# ----------------------------------------------------------------------------
def _fused_forward_kernel(
    im1_ref, sens2_ref,
    w1_ref, b1_ref, w2_ref, b2_ref, w3_ref, b3_ref,
    cfw_ref, cfb_ref, lw_ref, lb_ref, f1w_ref, f1b_ref,
    aw2_ref, ab2_ref, cw2_ref, cb2_ref, logstd_ref,
    out_ref,
    a1_ref, c2im_ref, a2_ref, a3im_ref, a3_ref, feat_ref,
    *, B, oh1, ow1, oh2, ow2, oh3, ow3, n):
    """Entire MultiSensorLSTM forward for both heads in one kernel.

    im1_ref : (ow1*B*oh1, 192) conv1 im2col slab, rows ordered (w, b, h)
    a1      : (B*oh1, ow1*64)  conv1+ReLU, rows (b,h), lanes (w, ch[a32|c32])
    c2im    : (B*oh2*ow2, 1024) conv2 im2col, rows (c,b,r), lanes (i,j,ch)
    a2      : (B*oh2*ow2, 128) conv2+ReLU, lanes [actor64|critic64]
    a3im    : (B*oh3*ow3, 9*128) conv3 im2col, lanes (pos, [a64|c64])
    out     : (B, 2n+1) = [mu | std | value]
    """
    f32 = jnp.float32

    def sig(v):
        return 1.0 / (1.0 + jnp.exp(-v))

    # ---- conv1 + ReLU : one (ow1*B*oh1, 192) x (192, 64) matmul -------------
    c1 = jnp.dot(im1_ref[...], w1_ref[...], preferred_element_type=f32) + b1_ref[...]
    c1 = jnp.maximum(c1, 0.0)
    rb = B * oh1
    for w in range(ow1):                  # repack rows (w,b,h) -> a1[(b,h),(w,ch)]
        a1_ref[:, w * 64:(w + 1) * 64] = c1[w * rb:(w + 1) * rb, :]

    # ---- conv2 + ReLU : im2col slab via plain (1,256) copies, one matmul ----
    for i in range(4):
        for c in range(ow2):
            for b in range(B):
                for r in range(oh2):
                    dst = (c * B + b) * oh2 + r
                    src = b * oh1 + 2 * r + i
                    c2im_ref[dst:dst + 1, i * 256:(i + 1) * 256] = \
                        a1_ref[src:src + 1, (2 * c) * 64:(2 * c) * 64 + 256]
    a2 = jnp.dot(c2im_ref[...], w2_ref[...], preferred_element_type=f32) + b2_ref[...]
    a2_ref[...] = jnp.maximum(a2, 0.0)

    # ---- conv3 (+ post-Flatten ReLU) : 3x3 window gather, one matmul --------
    P3 = oh3 * ow3
    for b in range(B):
        for r3 in range(oh3):
            for c3 in range(ow3):
                dst = (b * oh3 + r3) * ow3 + c3
                for hh in range(3):
                    for ww in range(3):
                        src = ((c3 + ww) * B + b) * oh2 + (r3 + hh)
                        p = hh * 3 + ww
                        a3im_ref[dst:dst + 1, p * 128:(p + 1) * 128] = \
                            a2_ref[src:src + 1, :]
    a3 = jnp.dot(a3im_ref[...], w3_ref[...], preferred_element_type=f32) + b3_ref[...]
    a3 = jnp.maximum(a3, 0.0)             # (B*P3, 128) = [actor64 | critic64]

    # ---- flatten (NCHW order folded into cnn_fc packing) + cnn_fc -----------
    if P3 == 1:
        xflat = a3                         # already (B, 128)
    else:
        a3_ref[...] = a3
        for b in range(B):
            for p in range(P3):
                feat_ref[b:b + 1, p * 128:(p + 1) * 128] = \
                    a3_ref[b * P3 + p:b * P3 + p + 1, :]
        xflat = feat_ref[...]
    x1 = jnp.dot(xflat, cfw_ref[...], preferred_element_type=f32) + cfb_ref[...]

    # ---- LSTM, seq_len 1, zero state: c = sig(i)*tanh(g), h = sig(o)*tanh(c)
    s2 = sens2_ref[...]
    gi = jnp.dot(s2, lw_ref[0], preferred_element_type=f32) + lb_ref[0]
    gg = jnp.dot(s2, lw_ref[1], preferred_element_type=f32) + lb_ref[1]
    go = jnp.dot(s2, lw_ref[2], preferred_element_type=f32) + lb_ref[2]
    hl = sig(go) * jnp.tanh(sig(gi) * jnp.tanh(gg))           # (B, 2*n5)

    # ---- fc1 (ReLU): concat replaced by two accumulating block-diag dots ----
    z = (jnp.dot(x1, f1w_ref[0], preferred_element_type=f32)
         + jnp.dot(hl, f1w_ref[1], preferred_element_type=f32) + f1b_ref[...])
    z = jnp.maximum(z, 0.0)                                   # (B, 2*n5)

    # ---- fc2 heads + single packed output [mu | std | value] ----------------
    mu = jnp.tanh(jnp.dot(z, aw2_ref[...], preferred_element_type=f32) + ab2_ref[...])
    val = jnp.dot(z, cw2_ref[...], preferred_element_type=f32) + cb2_ref[...]
    out_ref[:, 0:n] = mu
    out_ref[:, n:2 * n] = jnp.broadcast_to(jnp.exp(logstd_ref[...]), mu.shape)
    out_ref[:, 2 * n:2 * n + 1] = val


# ----------------------------------------------------------------------------
# Wrapper: one pallas_call for the whole forward pass
# ----------------------------------------------------------------------------
def multi_sensor_lstm_forward(kp, image_nhwc, sens2):
    """Matches MultiSensorLSTM.forward((image, sens2)); returns (mu, std, value)."""
    B, H, W, C = image_nhwc.shape
    assert C == 3 and H % 4 == 0 and W % 4 == 0
    oh1, ow1 = (H - 8) // 4 + 1, (W - 8) // 4 + 1
    oh2, ow2 = (oh1 - 4) // 2 + 1, (ow1 - 4) // 2 + 1
    oh3, ow3 = oh2 - 2, ow2 - 2
    assert oh3 >= 1 and ow3 >= 1
    P3 = oh3 * ow3
    n = kp["fc2_w_actor"].shape[1]

    # conv1 im2col slab from the RAW image (the (x-127)/255 normalization is
    # folded into the packed conv1 weights/bias).  Input-side reorder only,
    # fused by XLA into the one HBM read of the image.
    x = image_nhwc.astype(jnp.float32)
    s2d = x.reshape(B, H // 4, 4, W // 4, 4, 3).transpose(0, 1, 3, 2, 4, 5)
    s2d = s2d.reshape(B, H // 4, W // 4, 48)
    taps = [s2d[:, ai:ai + oh1, aj:aj + ow1, :] for ai in range(2) for aj in range(2)]
    im1 = jnp.concatenate(taps, axis=-1)                       # (B, oh1, ow1, 192)
    im1 = im1.transpose(2, 0, 1, 3).reshape(ow1 * B * oh1, 192)  # rows (w, b, h)

    kernel = functools.partial(
        _fused_forward_kernel, B=B, oh1=oh1, ow1=ow1, oh2=oh2, ow2=ow2,
        oh3=oh3, ow3=ow3, n=n)
    out = pl.pallas_call(
        kernel,
        out_shape=jax.ShapeDtypeStruct((B, 2 * n + 1), jnp.float32),
        scratch_shapes=[
            pltpu.VMEM((B * oh1, ow1 * 64), jnp.float32),        # a1
            pltpu.VMEM((B * oh2 * ow2, 16 * 64), jnp.float32),   # conv2 im2col
            pltpu.VMEM((B * oh2 * ow2, 128), jnp.float32),       # a2
            pltpu.VMEM((B * P3, 9 * 128), jnp.float32),          # conv3 im2col
            pltpu.VMEM((B * P3, 128), jnp.float32),              # a3
            pltpu.VMEM((B, P3 * 128), jnp.float32),              # flattened feat
        ],
    )(im1, sens2.astype(jnp.float32),
      kp["conv1_w"], kp["conv1_b"], kp["conv2_w"], kp["conv2_b"],
      kp["conv3_w"], kp["conv3_b"], kp["cnn_fc_w"], kp["cnn_fc_b"],
      kp["lstm_w"], kp["lstm_b"], kp["fc1_w"], kp["fc1_b"],
      kp["fc2_w_actor"], kp["fc2_b_actor"], kp["fc2_w_critic"], kp["fc2_b_critic"],
      kp["log_std"])
    mu, std, value = out[:, :n], out[:, n:2 * n], out[:, 2 * n:]
    # TODO(synk): torch.distributions.Normal has no array equivalent; return the
    # distribution parameters (mu, std) instead of a Normal object.
    return mu, std, value


# ----------------------------------------------------------------------------
# Parameter init (mirrors the PyTorch module) and one-time kernel packing
# ----------------------------------------------------------------------------
def output_size(in_size, kernels, strides, paddings):
    h, w = in_size
    for k, s, p in zip(kernels, strides, paddings):
        h = (h - k + 2 * p) // s + 1
        w = (w - k + 2 * p) // s + 1
    return h, w


def _xavier_normal(key, shape):            # Conv2d weight (O, I, kh, kw)
    o, i, kh, kw = shape
    fan_in, fan_out = i * kh * kw, o * kh * kw
    std = (2.0 / (fan_in + fan_out)) ** 0.5
    return std * jax.random.normal(key, shape, dtype=jnp.float32)


def init_torch_params(key, image_shape, sens2_shape, num_outputs, std=-0.5):
    """PyTorch-layout parameters (same init scheme as the nn.Module)."""
    fc_h, fc_w = output_size(image_shape, [8, 4, 3], [4, 2, 1], [0, 0, 0])
    flat = fc_h * fc_w * 64
    n5 = num_outputs * 5
    k_lstm = 1.0 / (n5 ** 0.5)
    keys = iter(jax.random.split(key, 32))
    p = {}
    for head in ("actor", "critic"):
        p[f"{head}_conv1_w"] = _xavier_normal(next(keys), (32, 3, 8, 8))
        p[f"{head}_conv1_b"] = jnp.zeros((32,), jnp.float32)
        p[f"{head}_conv2_w"] = _xavier_normal(next(keys), (64, 32, 4, 4))
        p[f"{head}_conv2_b"] = jnp.zeros((64,), jnp.float32)
        p[f"{head}_conv3_w"] = _xavier_normal(next(keys), (64, 64, 3, 3))
        p[f"{head}_conv3_b"] = jnp.zeros((64,), jnp.float32)
        p[f"{head}_cnn_fc_w"] = 0.1 * jax.random.normal(next(keys), (n5, flat), dtype=jnp.float32)
        p[f"{head}_cnn_fc_b"] = jnp.full((n5,), 0.1, jnp.float32)
        # nn.LSTM default init U(-1/sqrt(H), 1/sqrt(H)); untouched by init_weights.
        p[f"{head}_lstm_wih"] = jax.random.uniform(next(keys), (4 * n5, sens2_shape),
                                                   jnp.float32, -k_lstm, k_lstm)
        p[f"{head}_lstm_whh"] = jax.random.uniform(next(keys), (4 * n5, n5),
                                                   jnp.float32, -k_lstm, k_lstm)
        p[f"{head}_lstm_bih"] = jax.random.uniform(next(keys), (4 * n5,),
                                                   jnp.float32, -k_lstm, k_lstm)
        p[f"{head}_lstm_bhh"] = jax.random.uniform(next(keys), (4 * n5,),
                                                   jnp.float32, -k_lstm, k_lstm)
        p[f"{head}_fc1_w"] = 0.1 * jax.random.normal(next(keys), (n5, num_outputs * 10),
                                                     dtype=jnp.float32)
        p[f"{head}_fc1_b"] = jnp.full((n5,), 0.1, jnp.float32)
    p["actor_fc2_w"] = 0.1 * jax.random.normal(next(keys), (num_outputs, n5), dtype=jnp.float32)
    p["actor_fc2_b"] = jnp.full((num_outputs,), 0.1, jnp.float32)
    p["critic_fc2_w"] = 0.1 * jax.random.normal(next(keys), (1, n5), dtype=jnp.float32)
    p["critic_fc2_b"] = jnp.full((1,), 0.1, jnp.float32)
    p["log_std"] = jnp.full((1, num_outputs), std, jnp.float32)
    return p


def prepare_kernel_params(tp, image_shape, num_outputs):
    """One-time packing of PyTorch-layout params into kernel-ready tensors."""
    n = num_outputs
    n5 = 5 * n
    fc_h, fc_w = output_size(image_shape, [8, 4, 3], [4, 2, 1], [0, 0, 0])
    P3 = fc_h * fc_w
    kp = {}

    # conv1: fold (x-127)/255 into the weights; concat actor|critic out-channels.
    # Packed row order = (ai, aj, di, dj, cin) with kernel pos (ki,kj)=(4ai+di, 4aj+dj),
    # matching the wrapper's im2col feature order.
    def pack_c1(w):                        # (32, 3, 8, 8) -> (192, 32)
        O = w.shape[0]
        w = w.reshape(O, 3, 2, 4, 2, 4)            # o, c, ai, di, aj, dj
        w = w.transpose(2, 4, 3, 5, 1, 0)          # ai, aj, di, dj, c, o
        return w.reshape(192, O)
    wa, wc = tp["actor_conv1_w"], tp["critic_conv1_w"]
    kp["conv1_w"] = jnp.concatenate([pack_c1(wa / 255.0), pack_c1(wc / 255.0)], axis=1)
    kp["conv1_b"] = jnp.concatenate(
        [tp["actor_conv1_b"] - (127.0 / 255.0) * wa.sum(axis=(1, 2, 3)),
         tp["critic_conv1_b"] - (127.0 / 255.0) * wc.sum(axis=(1, 2, 3))])[None]

    # conv2: block-diagonal over heads; rows = (tap_i, tap_j, in_ch[actor|critic]).
    wa, wc = tp["actor_conv2_w"], tp["critic_conv2_w"]        # (64, 32, 4, 4)
    blk = jnp.zeros((4, 4, 64, 128), jnp.float32)
    blk = blk.at[:, :, :32, :64].set(wa.transpose(2, 3, 1, 0))
    blk = blk.at[:, :, 32:, 64:].set(wc.transpose(2, 3, 1, 0))
    kp["conv2_w"] = blk.reshape(1024, 128)
    kp["conv2_b"] = jnp.concatenate([tp["actor_conv2_b"], tp["critic_conv2_b"]])[None]

    # conv3: block-diagonal over heads; rows = (pos hh*3+ww, in_ch[a64|c64]).
    wa, wc = tp["actor_conv3_w"], tp["critic_conv3_w"]        # (64, 64, 3, 3)
    blk = jnp.zeros((3, 3, 128, 128), jnp.float32)
    blk = blk.at[:, :, :64, :64].set(wa.transpose(2, 3, 1, 0))
    blk = blk.at[:, :, 64:, 64:].set(wc.transpose(2, 3, 1, 0))
    kp["conv3_w"] = blk.reshape(9 * 128, 128)
    kp["conv3_b"] = jnp.concatenate([tp["actor_conv3_b"], tp["critic_conv3_b"]])[None]

    # cnn_fc: PyTorch NCHW-flatten columns (ch*P3 + pos) mapped to (pos, head, ch) rows.
    wa, wc = tp["actor_cnn_fc_w"], tp["critic_cnn_fc_w"]      # (n5, 64*P3)
    blk = jnp.zeros((P3, 128, 2 * n5), jnp.float32)
    blk = blk.at[:, :64, :n5].set(wa.reshape(n5, 64, P3).transpose(2, 1, 0))
    blk = blk.at[:, 64:, n5:].set(wc.reshape(n5, 64, P3).transpose(2, 1, 0))
    kp["cnn_fc_w"] = blk.reshape(P3 * 128, 2 * n5)
    kp["cnn_fc_b"] = jnp.concatenate([tp["actor_cnn_fc_b"], tp["critic_cnn_fc_b"]])[None]

    # LSTM, seq_len 1, zero state: only the i, g, o gates matter (f * c0 == 0).
    gate_rows = {"i": slice(0, n5), "g": slice(2 * n5, 3 * n5), "o": slice(3 * n5, 4 * n5)}
    lw, lb = [], []
    for gname in ("i", "g", "o"):
        rows = gate_rows[gname]
        lw.append(jnp.concatenate([tp["actor_lstm_wih"][rows].T,
                                   tp["critic_lstm_wih"][rows].T], axis=1))
        lb.append(jnp.concatenate(
            [(tp["actor_lstm_bih"] + tp["actor_lstm_bhh"])[rows],
             (tp["critic_lstm_bih"] + tp["critic_lstm_bhh"])[rows]])[None])
    kp["lstm_w"] = jnp.stack(lw)          # (3, S, 2*n5)
    kp["lstm_b"] = jnp.stack(lb)          # (3, 1, 2*n5)

    # fc1: block-diagonal over heads; split into cnn-input and lstm-input halves.
    wa, wc = tp["actor_fc1_w"], tp["critic_fc1_w"]            # (n5, 2*n5)
    f1 = []
    for lo in (slice(0, n5), slice(n5, 2 * n5)):
        blk = jnp.zeros((2 * n5, 2 * n5), jnp.float32)
        blk = blk.at[:n5, :n5].set(wa[:, lo].T).at[n5:, n5:].set(wc[:, lo].T)
        f1.append(blk)
    kp["fc1_w"] = jnp.stack(f1)           # (2, 2*n5, 2*n5)
    kp["fc1_b"] = jnp.concatenate([tp["actor_fc1_b"], tp["critic_fc1_b"]])[None]

    # fc2: zero-padded so the other head's half of z cannot leak in.
    kp["fc2_w_actor"] = jnp.zeros((2 * n5, n), jnp.float32).at[:n5].set(tp["actor_fc2_w"].T)
    kp["fc2_b_actor"] = tp["actor_fc2_b"][None]
    kp["fc2_w_critic"] = jnp.zeros((2 * n5, 1), jnp.float32).at[n5:].set(tp["critic_fc2_w"].T)
    kp["fc2_b_critic"] = tp["critic_fc2_b"][None]
    kp["log_std"] = tp["log_std"]
    return kp


# ----------------------------------------------------------------------------
# Plain-JAX reference of the PyTorch forward (for a numerical sanity check)
# ----------------------------------------------------------------------------
def reference_forward(tp, image, sens2, num_outputs):
    n5 = num_outputs * 5
    mm = functools.partial(jnp.matmul, precision=jax.lax.Precision.HIGHEST)
    x0 = ((image.astype(jnp.float32) - 127.0) / 255.0).transpose(0, 3, 1, 2)

    def conv(x, w, b, stride):
        y = jax.lax.conv_general_dilated(
            x, w, window_strides=(stride, stride), padding="VALID",
            dimension_numbers=("NCHW", "OIHW", "NCHW"),
            precision=jax.lax.Precision.HIGHEST)
        return y + b[None, :, None, None]

    def cnn(h_):
        h = jax.nn.relu(conv(x0, tp[f"{h_}_conv1_w"], tp[f"{h_}_conv1_b"], 4))
        h = jax.nn.relu(conv(h, tp[f"{h_}_conv2_w"], tp[f"{h_}_conv2_b"], 2))
        h = conv(h, tp[f"{h_}_conv3_w"], tp[f"{h_}_conv3_b"], 1)
        h = jax.nn.relu(h.reshape(h.shape[0], -1))
        return mm(h, tp[f"{h_}_cnn_fc_w"].T) + tp[f"{h_}_cnn_fc_b"]

    def lstm(h_):
        g = mm(sens2, tp[f"{h_}_lstm_wih"].T) + tp[f"{h_}_lstm_bih"] + tp[f"{h_}_lstm_bhh"]
        i, gg, o = g[:, :n5], g[:, 2 * n5:3 * n5], g[:, 3 * n5:]
        c = jax.nn.sigmoid(i) * jnp.tanh(gg)                  # f * c0 = 0
        return jax.nn.sigmoid(o) * jnp.tanh(c)

    def branch(h_):
        z = jnp.concatenate([cnn(h_), lstm(h_)], axis=1)
        return jax.nn.relu(mm(z, tp[f"{h_}_fc1_w"].T) + tp[f"{h_}_fc1_b"])

    mu = jnp.tanh(mm(branch("actor"), tp["actor_fc2_w"].T) + tp["actor_fc2_b"])
    std = jnp.exp(tp["log_std"]) * jnp.ones_like(mu)
    value = mm(branch("critic"), tp["critic_fc2_w"].T) + tp["critic_fc2_b"]
    return mu, std, value


# ----------------------------------------------------------------------------
if __name__ == "__main__":
    B = 2
    image_shape = (36, 36)     # conv chain 36 -> 8 -> 3 -> 1, per-head flat dim = 64
    sens2_shape = 8
    num_outputs = 4

    key = jax.random.PRNGKey(0)
    kparam_key, kimg, ksen = jax.random.split(key, 3)

    tparams = init_torch_params(kparam_key, image_shape, sens2_shape, num_outputs)
    kparams = prepare_kernel_params(tparams, image_shape, num_outputs)

    image = jax.random.randint(
        kimg, (B, image_shape[0], image_shape[1], 3), 0, 256).astype(jnp.float32)
    sens2 = jax.random.normal(ksen, (B, sens2_shape), dtype=jnp.float32)

    fwd = jax.jit(multi_sensor_lstm_forward)
    mu, std, value = fwd(kparams, image, sens2)
    jax.block_until_ready((mu, std, value))

    assert mu.shape == (B, num_outputs)
    assert std.shape == (B, num_outputs)
    assert value.shape == (B, 1)

    # Numerical sanity check against the plain-JAX reference of the PyTorch model.
    mu_r, std_r, val_r = reference_forward(tparams, image, sens2, num_outputs)
    assert jnp.allclose(mu, mu_r, atol=2e-2, rtol=2e-2), float(jnp.max(jnp.abs(mu - mu_r)))
    assert jnp.allclose(std, std_r, atol=1e-5, rtol=1e-5)
    assert jnp.allclose(value, val_r, atol=2e-2, rtol=2e-2), float(jnp.max(jnp.abs(value - val_r)))

    print("KERNEL_OK")
</pallas_src>

<mosaic_0001>
module attributes {stable_mosaic.version = 11 : i64} {
  func.func @_fused_forward_kernel(%arg0: memref<128x192xf32, #tpu.memory_space<vmem>>, %arg1: memref<2x8xf32, #tpu.memory_space<vmem>>, %arg2: memref<192x64xf32, #tpu.memory_space<vmem>>, %arg3: memref<1x64xf32, #tpu.memory_space<vmem>>, %arg4: memref<1024x128xf32, #tpu.memory_space<vmem>>, %arg5: memref<1x128xf32, #tpu.memory_space<vmem>>, %arg6: memref<1152x128xf32, #tpu.memory_space<vmem>>, %arg7: memref<1x128xf32, #tpu.memory_space<vmem>>, %arg8: memref<128x40xf32, #tpu.memory_space<vmem>>, %arg9: memref<1x40xf32, #tpu.memory_space<vmem>>, %arg10: memref<3x8x40xf32, #tpu.memory_space<vmem>>, %arg11: memref<3x1x40xf32, #tpu.memory_space<vmem>>, %arg12: memref<2x40x40xf32, #tpu.memory_space<vmem>>, %arg13: memref<1x40xf32, #tpu.memory_space<vmem>>, %arg14: memref<40x4xf32, #tpu.memory_space<vmem>>, %arg15: memref<1x4xf32, #tpu.memory_space<vmem>>, %arg16: memref<40x1xf32, #tpu.memory_space<vmem>>, %arg17: memref<1x1xf32, #tpu.memory_space<vmem>>, %arg18: memref<1x4xf32, #tpu.memory_space<vmem>>, %arg19: memref<2x9xf32, #tpu.memory_space<vmem>>, %arg20: memref<16x512xf32, #tpu.memory_space<vmem>>, %arg21: memref<18x1024xf32, #tpu.memory_space<vmem>>, %arg22: memref<18x128xf32, #tpu.memory_space<vmem>>, %arg23: memref<2x1152xf32, #tpu.memory_space<vmem>>, %arg24: memref<2x128xf32, #tpu.memory_space<vmem>>, %arg25: memref<2x128xf32, #tpu.memory_space<vmem>>) attributes {dimension_semantics = [], scalar_prefetch = 0 : i64, scratch_operands = 6 : i64, tpu.core_type = #tpu.core_type<tc>} {
    %c0 = arith.constant 0 : index
    %c0_0 = arith.constant 0 : index
    %0 = vector.load %arg0[%c0, %c0_0] : memref<128x192xf32, #tpu.memory_space<vmem>>, vector<128x192xf32>
    %c0_1 = arith.constant 0 : index
    %c0_2 = arith.constant 0 : index
    %1 = vector.load %arg2[%c0_1, %c0_2] : memref<192x64xf32, #tpu.memory_space<vmem>>, vector<192x64xf32>
    %cst = arith.constant dense<0.000000e+00> : vector<128x64xf32>
    %2 = tpu.matmul %0, %1, %cst {dimension_numbers = #tpu.dot_dimension_numbers<[1], [0], [0], [1], [0, 0, 1, 1], [], []>} : vector<128x192xf32>, vector<192x64xf32>, vector<128x64xf32> -> vector<128x64xf32>
    %c0_3 = arith.constant 0 : index
    %c0_4 = arith.constant 0 : index
    %3 = vector.load %arg3[%c0_3, %c0_4] : memref<1x64xf32, #tpu.memory_space<vmem>>, vector<1x64xf32>
    %4 = vector.broadcast %3 : vector<1x64xf32> to vector<128x64xf32>
    %5 = arith.addf %2, %4 : vector<128x64xf32>
    %cst_5 = arith.constant 0.000000e+00 : f32
    %6 = vector.broadcast %cst_5 : f32 to vector<128x64xf32>
    %7 = arith.maximumf %5, %6 : vector<128x64xf32>
    %8 = vector.extract_strided_slice %7 {offsets = [0, 0], sizes = [16, 64], strides = [1, 1]} : vector<128x64xf32> to vector<16x64xf32>
    %c0_6 = arith.constant 0 : index
    %c0_7 = arith.constant 0 : index
    %9 = vector.load %arg20[%c0_6, %c0_7] : memref<16x512xf32, #tpu.memory_space<vmem>>, vector<16x64xf32>
    tpu.vector_store %arg20[%c0_6, %c0_7], %8 {strides = array<i32>} : memref<16x512xf32, #tpu.memory_space<vmem>>, vector<16x64xf32>,
    %10 = vector.extract_strided_slice %7 {offsets = [16, 0], sizes = [16, 64], strides = [1, 1]} : vector<128x64xf32> to vector<16x64xf32>
    %c0_8 = arith.constant 0 : index
    %c64 = arith.constant 64 : index
    %11 = vector.load %arg20[%c0_8, %c64] : memref<16x512xf32, #tpu.memory_space<vmem>>, vector<16x64xf32>
    tpu.vector_store %arg20[%c0_8, %c64], %10 {strides = array<i32>} : memref<16x512xf32, #tpu.memory_space<vmem>>, vector<16x64xf32>,
    %12 = vector.extract_strided_slice %7 {offsets = [32, 0], sizes = [16, 64], strides = [1, 1]} : vector<128x64xf32> to vector<16x64xf32>
    %c0_9 = arith.constant 0 : index
    %c128 = arith.constant 128 : index
    %13 = vector.load %arg20[%c0_9, %c128] : memref<16x512xf32, #tpu.memory_space<vmem>>, vector<16x64xf32>
    tpu.vector_store %arg20[%c0_9, %c128], %12 {strides = array<i32>} : memref<16x512xf32, #tpu.memory_space<vmem>>, vector<16x64xf32>,
    %14 = vector.extract_strided_slice %7 {offsets = [48, 0], sizes = [16, 64], strides = [1, 1]} : vector<128x64xf32> to vector<16x64xf32>
    %c0_10 = arith.constant 0 : index
    %c192 = arith.constant 192 : index
    %15 = vector.load %arg20[%c0_10, %c192] : memref<16x512xf32, #tpu.memory_space<vmem>>, vector<16x64xf32>
    tpu.vector_store %arg20[%c0_10, %c192], %14 {strides = array<i32>} : memref<16x512xf32, #tpu.memory_space<vmem>>, vector<16x64xf32>,
    %16 = vector.extract_strided_slice %7 {offsets = [64, 0], sizes = [16, 64], strides = [1, 1]} : vector<128x64xf32> to vector<16x64xf32>
    %c0_11 = arith.constant 0 : index
    %c256 = arith.constant 256 : index
    %17 = vector.load %arg20[%c0_11, %c256] : memref<16x512xf32, #tpu.memory_space<vmem>>, vector<16x64xf32>
    tpu.vector_store %arg20[%c0_11, %c256], %16 {strides = array<i32>} : memref<16x512xf32, #tpu.memory_space<vmem>>, vector<16x64xf32>,
    %18 = vector.extract_strided_slice %7 {offsets = [80, 0], sizes = [16, 64], strides = [1, 1]} : vector<128x64xf32> to vector<16x64xf32>
    %c0_12 = arith.constant 0 : index
    %c320 = arith.constant 320 : index
    %19 = vector.load %arg20[%c0_12, %c320] : memref<16x512xf32, #tpu.memory_space<vmem>>, vector<16x64xf32>
    tpu.vector_store %arg20[%c0_12, %c320], %18 {strides = array<i32>} : memref<16x512xf32, #tpu.memory_space<vmem>>, vector<16x64xf32>,
    %20 = vector.extract_strided_slice %7 {offsets = [96, 0], sizes = [16, 64], strides = [1, 1]} : vector<128x64xf32> to vector<16x64xf32>
    %c0_13 = arith.constant 0 : index
    %c384 = arith.constant 384 : index
    %21 = vector.load %arg20[%c0_13, %c384] : memref<16x512xf32, #tpu.memory_space<vmem>>, vector<16x64xf32>
    tpu.vector_store %arg20[%c0_13, %c384], %20 {strides = array<i32>} : memref<16x512xf32, #tpu.memory_space<vmem>>, vector<16x64xf32>,
    %22 = vector.extract_strided_slice %7 {offsets = [112, 0], sizes = [16, 64], strides = [1, 1]} : vector<128x64xf32> to vector<16x64xf32>
    %c0_14 = arith.constant 0 : index
    %c448 = arith.constant 448 : index
    %23 = vector.load %arg20[%c0_14, %c448] : memref<16x512xf32, #tpu.memory_space<vmem>>, vector<16x64xf32>
    tpu.vector_store %arg20[%c0_14, %c448], %22 {strides = array<i32>} : memref<16x512xf32, #tpu.memory_space<vmem>>, vector<16x64xf32>,
    %c0_15 = arith.constant 0 : index
    %c0_16 = arith.constant 0 : index
    %24 = vector.load %arg20[%c0_15, %c0_16] : memref<16x512xf32, #tpu.memory_space<vmem>>, vector<1x256xf32>
    %c0_17 = arith.constant 0 : index
    %c0_18 = arith.constant 0 : index
    %25 = vector.load %arg21[%c0_17, %c0_18] : memref<18x1024xf32, #tpu.memory_space<vmem>>, vector<1x256xf32>
    tpu.vector_store %arg21[%c0_17, %c0_18], %24 {strides = array<i32>} : memref<18x1024xf32, #tpu.memory_space<vmem>>, vector<1x256xf32>,
    %c2 = arith.constant 2 : index
    %c0_19 = arith.constant 0 : index
    %26 = vector.load %arg20[%c2, %c0_19] : memref<16x512xf32, #tpu.memory_space<vmem>>, vector<1x256xf32>
    %c1 = arith.constant 1 : index
    %c0_20 = arith.constant 0 : index
    %27 = vector.load %arg21[%c1, %c0_20] : memref<18x1024xf32, #tpu.memory_space<vmem>>, vector<1x256xf32>
    tpu.vector_store %arg21[%c1, %c0_20], %26 {strides = array<i32>} : memref<18x1024xf32, #tpu.memory_space<vmem>>, vector<1x256xf32>,
    %c4 = arith.constant 4 : index
    %c0_21 = arith.constant 0 : index
    %28 = vector.load %arg20[%c4, %c0_21] : memref<16x512xf32, #tpu.memory_space<vmem>>, vector<1x256xf32>
    %c2_22 = arith.constant 2 : index
    %c0_23 = arith.constant 0 : index
    %29 = vector.load %arg21[%c2_22, %c0_23] : memref<18x1024xf32, #tpu.memory_space<vmem>>, vector<1x256xf32>
    tpu.vector_store %arg21[%c2_22, %c0_23], %28 {strides = array<i32>} : memref<18x1024xf32, #tpu.memory_space<vmem>>, vector<1x256xf32>,
    %c8 = arith.constant 8 : index
    %c0_24 = arith.constant 0 : index
    %30 = vector.load %arg20[%c8, %c0_24] : memref<16x512xf32, #tpu.memory_space<vmem>>, vector<1x256xf32>
    %c3 = arith.constant 3 : index
    %c0_25 = arith.constant 0 : index
    %31 = vector.load %arg21[%c3, %c0_25] : memref<18x1024xf32, #tpu.memory_space<vmem>>, vector<1x256xf32>
    tpu.vector_store %arg21[%c3, %c0_25], %30 {strides = array<i32>} : memref<18x1024xf32, #tpu.memory_space<vmem>>, vector<1x256xf32>,
    %c10 = arith.constant 10 : index
    %c0_26 = arith.constant 0 : index
    %32 = vector.load %arg20[%c10, %c0_26] : memref<16x512xf32, #tpu.memory_space<vmem>>, vector<1x256xf32>
    %c4_27 = arith.constant 4 : index
    %c0_28 = arith.constant 0 : index
    %33 = vector.load %arg21[%c4_27, %c0_28] : memref<18x1024xf32, #tpu.memory_space<vmem>>, vector<1x256xf32>
    tpu.vector_store %arg21[%c4_27, %c0_28], %32 {strides = array<i32>} : memref<18x1024xf32, #tpu.memory_space<vmem>>, vector<1x256xf32>,
    %c12 = arith.constant 12 : index
    %c0_29 = arith.constant 0 : index
    %34 = vector.load %arg20[%c12, %c0_29] : memref<16x512xf32, #tpu.memory_space<vmem>>, vector<1x256xf32>
    %c5 = arith.constant 5 : index
    %c0_30 = arith.constant 0 : index
    %35 = vector.load %arg21[%c5, %c0_30] : memref<18x1024xf32, #tpu.memory_space<vmem>>, vector<1x256xf32>
    tpu.vector_store %arg21[%c5, %c0_30], %34 {strides = array<i32>} : memref<18x1024xf32, #tpu.memory_space<vmem>>, vector<1x256xf32>,
    %c0_31 = arith.constant 0 : index
    %c128_32 = arith.constant 128 : index
    %36 = vector.load %arg20[%c0_31, %c128_32] : memref<16x512xf32, #tpu.memory_space<vmem>>, vector<1x256xf32>
    %c6 = arith.constant 6 : index
    %c0_33 = arith.constant 0 : index
    %37 = vector.load %arg21[%c6, %c0_33] : memref<18x1024xf32, #tpu.memory_space<vmem>>, vector<1x256xf32>
    tpu.vector_store %arg21[%c6, %c0_33], %36 {strides = array<i32>} : memref<18x1024xf32, #tpu.memory_space<vmem>>, vector<1x256xf32>,
    %c2_34 = arith.constant 2 : index
    %c128_35 = arith.constant 128 : index
    %38 = vector.load %arg20[%c2_34, %c128_35] : memref<16x512xf32, #tpu.memory_space<vmem>>, vector<1x256xf32>
    %c7 = arith.constant 7 : index
    %c0_36 = arith.constant 0 : index
    %39 = vector.load %arg21[%c7, %c0_36] : memref<18x1024xf32, #tpu.memory_space<vmem>>, vector<1x256xf32>
    tpu.vector_store %arg21[%c7, %c0_36], %38 {strides = array<i32>} : memref<18x1024xf32, #tpu.memory_space<vmem>>, vector<1x256xf32>,
    %c4_37 = arith.constant 4 : index
    %c128_38 = arith.constant 128 : index
    %40 = vector.load %arg20[%c4_37, %c128_38] : memref<16x512xf32, #tpu.memory_space<vmem>>, vector<1x256xf32>
    %c8_39 = arith.constant 8 : index
    %c0_40 = arith.constant 0 : index
    %41 = vector.load %arg21[%c8_39, %c0_40] : memref<18x1024xf32, #tpu.memory_space<vmem>>, vector<1x256xf32>
    tpu.vector_store %arg21[%c8_39, %c0_40], %40 {strides = array<i32>} : memref<18x1024xf32, #tpu.memory_space<vmem>>, vector<1x256xf32>,
    %c8_41 = arith.constant 8 : index
    %c128_42 = arith.constant 128 : index
    %42 = vector.load %arg20[%c8_41, %c128_42] : memref<16x512xf32, #tpu.memory_space<vmem>>, vector<1x256xf32>
    %c9 = arith.constant 9 : index
    %c0_43 = arith.constant 0 : index
    %43 = vector.load %arg21[%c9, %c0_43] : memref<18x1024xf32, #tpu.memory_space<vmem>>, vector<1x256xf32>
    tpu.vector_store %arg21[%c9, %c0_43], %42 {strides = array<i32>} : memref<18x1024xf32, #tpu.memory_space<vmem>>, vector<1x256xf32>,
    %c10_44 = arith.constant 10 : index
    %c128_45 = arith.constant 128 : index
    %44 = vector.load %arg20[%c10_44, %c128_45] : memref<16x512xf32, #tpu.memory_space<vmem>>, vector<1x256xf32>
    %c10_46 = arith.constant 10 : index
    %c0_47 = arith.constant 0 : index
    %45 = vector.load %arg21[%c10_46, %c0_47] : memref<18x1024xf32, #tpu.memory_space<vmem>>, vector<1x256xf32>
    tpu.vector_store %arg21[%c10_46, %c0_47], %44 {strides = array<i32>} : memref<18x1024xf32, #tpu.memory_space<vmem>>, vector<1x256xf32>,
    %c12_48 = arith.constant 12 : index
    %c128_49 = arith.constant 128 : index
    %46 = vector.load %arg20[%c12_48, %c128_49] : memref<16x512xf32, #tpu.memory_space<vmem>>, vector<1x256xf32>
    %c11 = arith.constant 11 : index
    %c0_50 = arith.constant 0 : index
    %47 = vector.load %arg21[%c11, %c0_50] : memref<18x1024xf32, #tpu.memory_space<vmem>>, vector<1x256xf32>
    tpu.vector_store %arg21[%c11, %c0_50], %46 {strides = array<i32>} : memref<18x1024xf32, #tpu.memory_space<vmem>>, vector<1x256xf32>,
    %c0_51 = arith.constant 0 : index
    %c256_52 = arith.constant 256 : index
    %48 = vector.load %arg20[%c0_51, %c256_52] : memref<16x512xf32, #tpu.memory_space<vmem>>, vector<1x256xf32>
    %c12_53 = arith.constant 12 : index
    %c0_54 = arith.constant 0 : index
    %49 = vector.load %arg21[%c12_53, %c0_54] : memref<18x1024xf32, #tpu.memory_space<vmem>>, vector<1x256xf32>
    tpu.vector_store %arg21[%c12_53, %c0_54], %48 {strides = array<i32>} : memref<18x1024xf32, #tpu.memory_space<vmem>>, vector<1x256xf32>,
    %c2_55 = arith.constant 2 : index
    %c256_56 = arith.constant 256 : index
    %50 = vector.load %arg20[%c2_55, %c256_56] : memref<16x512xf32, #tpu.memory_space<vmem>>, vector<1x256xf32>
    %c13 = arith.constant 13 : index
    %c0_57 = arith.constant 0 : index
    %51 = vector.load %arg21[%c13, %c0_57] : memref<18x1024xf32, #tpu.memory_space<vmem>>, vector<1x256xf32>
    tpu.vector_store %arg21[%c13, %c0_57], %50 {strides = array<i32>} : memref<18x1024xf32, #tpu.memory_space<vmem>>, vector<1x256xf32>,
    %c4_58 = arith.constant 4 : index
    %c256_59 = arith.constant 256 : index
    %52 = vector.load %arg20[%c4_58, %c256_59] : memref<16x512xf32, #tpu.memory_space<vmem>>, vector<1x256xf32>
    %c14 = arith.constant 14 : index
    %c0_60 = arith.constant 0 : index
    %53 = vector.load %arg21[%c14, %c0_60] : memref<18x1024xf32, #tpu.memory_space<vmem>>, vector<1x256xf32>
    tpu.vector_store %arg21[%c14, %c0_60], %52 {strides = array<i32>} : memref<18x1024xf32, #tpu.memory_space<vmem>>, vector<1x256xf32>,
    %c8_61 = arith.constant 8 : index
    %c256_62 = arith.constant 256 : index
    %54 = vector.load %arg20[%c8_61, %c256_62] : memref<16x512xf32, #tpu.memory_space<vmem>>, vector<1x256xf32>
    %c15 = arith.constant 15 : index
    %c0_63 = arith.constant 0 : index
    %55 = vector.load %arg21[%c15, %c0_63] : memref<18x1024xf32, #tpu.memory_space<vmem>>, vector<1x256xf32>
    tpu.vector_store %arg21[%c15, %c0_63], %54 {strides = array<i32>} : memref<18x1024xf32, #tpu.memory_space<vmem>>, vector<1x256xf32>,
    %c10_64 = arith.constant 10 : index
    %c256_65 = arith.constant 256 : index
    %56 = vector.load %arg20[%c10_64, %c256_65] : memref<16x512xf32, #tpu.memory_space<vmem>>, vector<1x256xf32>
    %c16 = arith.constant 16 : index
    %c0_66 = arith.constant 0 : index
    %57 = vector.load %arg21[%c16, %c0_66] : memref<18x1024xf32, #tpu.memory_space<vmem>>, vector<1x256xf32>
    tpu.vector_store %arg21[%c16, %c0_66], %56 {strides = array<i32>} : memref<18x1024xf32, #tpu.memory_space<vmem>>, vector<1x256xf32>,
    %c12_67 = arith.constant 12 : index
    %c256_68 = arith.constant 256 : index
    %58 = vector.load %arg20[%c12_67, %c256_68] : memref<16x512xf32, #tpu.memory_space<vmem>>, vector<1x256xf32>
    %c17 = arith.constant 17 : index
    %c0_69 = arith.constant 0 : index
    %59 = vector.load %arg21[%c17, %c0_69] : memref<18x1024xf32, #tpu.memory_space<vmem>>, vector<1x256xf32>
    tpu.vector_store %arg21[%c17, %c0_69], %58 {strides = array<i32>} : memref<18x1024xf32, #tpu.memory_space<vmem>>, vector<1x256xf32>,
    %c1_70 = arith.constant 1 : index
    %c0_71 = arith.constant 0 : index
    %60 = vector.load %arg20[%c1_70, %c0_71] : memref<16x512xf32, #tpu.memory_space<vmem>>, vector<1x256xf32>
    %c0_72 = arith.constant 0 : index
    %c256_73 = arith.constant 256 : index
    %61 = vector.load %arg21[%c0_72, %c256_73] : memref<18x1024xf32, #tpu.memory_space<vmem>>, vector<1x256xf32>
    tpu.vector_store %arg21[%c0_72, %c256_73], %60 {strides = array<i32>} : memref<18x1024xf32, #tpu.memory_space<vmem>>, vector<1x256xf32>,
    %c3_74 = arith.constant 3 : index
    %c0_75 = arith.constant 0 : index
    %62 = vector.load %arg20[%c3_74, %c0_75] : memref<16x512xf32, #tpu.memory_space<vmem>>, vector<1x256xf32>
    %c1_76 = arith.constant 1 : index
    %c256_77 = arith.constant 256 : index
    %63 = vector.load %arg21[%c1_76, %c256_77] : memref<18x1024xf32, #tpu.memory_space<vmem>>, vector<1x256xf32>
    tpu.vector_store %arg21[%c1_76, %c256_77], %62 {strides = array<i32>} : memref<18x1024xf32, #tpu.memory_space<vmem>>, vector<1x256xf32>,
    %c5_78 = arith.constant 5 : index
    %c0_79 = arith.constant 0 : index
    %64 = vector.load %arg20[%c5_78, %c0_79] : memref<16x512xf32, #tpu.memory_space<vmem>>, vector<1x256xf32>
    %c2_80 = arith.constant 2 : index
    %c256_81 = arith.constant 256 : index
    %65 = vector.load %arg21[%c2_80, %c256_81] : memref<18x1024xf32, #tpu.memory_space<vmem>>, vector<1x256xf32>
    tpu.vector_store %arg21[%c2_80, %c256_81], %64 {strides = array<i32>} : memref<18x1024xf32, #tpu.memory_space<vmem>>, vector<1x256xf32>,
    %c9_82 = arith.constant 9 : index
    %c0_83 = arith.constant 0 : index
    %66 = vector.load %arg20[%c9_82, %c0_83] : memref<16x512xf32, #tpu.memory_space<vmem>>, vector<1x256xf32>
    %c3_84 = arith.constant 3 : index
    %c256_85 = arith.constant 256 : index
    %67 = vector.load %arg21[%c3_84, %c256_85] : memref<18x1024xf32, #tpu.memory_space<vmem>>, vector<1x256xf32>
    tpu.vector_store %arg21[%c3_84, %c256_85], %66 {strides = array<i32>} : memref<18x1024xf32, #tpu.memory_space<vmem>>, vector<1x256xf32>,
    %c11_86 = arith.constant 11 : index
    %c0_87 = arith.constant 0 : index
    %68 = vector.load %arg20[%c11_86, %c0_87] : memref<16x512xf32, #tpu.memory_space<vmem>>, vector<1x256xf32>
    %c4_88 = arith.constant 4 : index
    %c256_89 = arith.constant 256 : index
    %69 = vector.load %arg21[%c4_88, %c256_89] : memref<18x1024xf32, #tpu.memory_space<vmem>>, vector<1x256xf32>
    tpu.vector_store %arg21[%c4_88, %c256_89], %68 {strides = array<i32>} : memref<18x1024xf32, #tpu.memory_space<vmem>>, vector<1x256xf32>,
    %c13_90 = arith.constant 13 : index
    %c0_91 = arith.constant 0 : index
    %70 = vector.load %arg20[%c13_90, %c0_91] : memref<16x512xf32, #tpu.memory_space<vmem>>, vector<1x256xf32>
    %c5_92 = arith.constant 5 : index
    %c256_93 = arith.constant 256 : index
    %71 = vector.load %arg21[%c5_92, %c256_93] : memref<18x1024xf32, #tpu.memory_space<vmem>>, vector<1x256xf32>
    tpu.vector_store %arg21[%c5_92, %c256_93], %70 {strides = array<i32>} : memref<18x1024xf32, #tpu.memory_space<vmem>>, vector<1x256xf32>,
    %c1_94 = arith.constant 1 : index
    %c128_95 = arith.constant 128 : index
    %72 = vector.load %arg20[%c1_94, %c128_95] : memref<16x512xf32, #tpu.memory_space<vmem>>, vector<1x256xf32>
    %c6_96 = arith.constant 6 : index
    %c256_97 = arith.constant 256 : index
    %73 = vector.load %arg21[%c6_96, %c256_97] : memref<18x1024xf32, #tpu.memory_space<vmem>>, vector<1x256xf32>
    tpu.vector_store %arg21[%c6_96, %c256_97], %72 {strides = array<i32>} : memref<18x1024xf32, #tpu.memory_space<vmem>>, vector<1x256xf32>,
    %c3_98 = arith.constant 3 : index
    %c128_99 = arith.constant 128 : index
    %74 = vector.load %arg20[%c3_98, %c128_99] : memref<16x512xf32, #tpu.memory_space<vmem>>, vector<1x256xf32>
    %c7_100 = arith.constant 7 : index
    %c256_101 = arith.constant 256 : index
    %75 = vector.load %arg21[%c7_100, %c256_101] : memref<18x1024xf32, #tpu.memory_space<vmem>>, vector<1x256xf32>
    tpu.vector_store %arg21[%c7_100, %c256_101], %74 {strides = array<i32>} : memref<18x1024xf32, #tpu.memory_space<vmem>>, vector<1x256xf32>,
    %c5_102 = arith.constant 5 : index
    %c128_103 = arith.constant 128 : index
    %76 = vector.load %arg20[%c5_102, %c128_103] : memref<16x512xf32, #tpu.memory_space<vmem>>, vector<1x256xf32>
    %c8_104 = arith.constant 8 : index
    %c256_105 = arith.constant 256 : index
    %77 = vector.load %arg21[%c8_104, %c256_105] : memref<18x1024xf32, #tpu.memory_space<vmem>>, vector<1x256xf32>
    tpu.vector_store %arg21[%c8_104, %c256_105], %76 {strides = array<i32>} : memref<18x1024xf32, #tpu.memory_space<vmem>>, vector<1x256xf32>,
    %c9_106 = arith.constant 9 : index
    %c128_107 = arith.constant 128 : index
    %78 = vector.load %arg20[%c9_106, %c128_107] : memref<16x512xf32, #tpu.memory_space<vmem>>, vector<1x256xf32>
    %c9_108 = arith.constant 9 : index
    %c256_109 = arith.constant 256 : index
    %79 = vector.load %arg21[%c9_108, %c256_109] : memref<18x1024xf32, #tpu.memory_space<vmem>>, vector<1x256xf32>
    tpu.vector_store %arg21[%c9_108, %c256_109], %78 {strides = array<i32>} : memref<18x1024xf32, #tpu.memory_space<vmem>>, vector<1x256xf32>,
    %c11_110 = arith.constant 11 : index
    %c128_111 = arith.constant 128 : index
    %80 = vector.load %arg20[%c11_110, %c128_111] : memref<16x512xf32, #tpu.memory_space<vmem>>, vector<1x256xf32>
    %c10_112 = arith.constant 10 : index
    %c256_113 = arith.constant 256 : index
    %81 = vector.load %arg21[%c10_112, %c256_113] : memref<18x1024xf32, #tpu.memory_space<vmem>>, vector<1x256xf32>
    tpu.vector_store %arg21[%c10_112, %c256_113], %80 {strides = array<i32>} : memref<18x1024xf32, #tpu.memory_space<vmem>>, vector<1x256xf32>,
    %c13_114 = arith.constant 13 : index
    %c128_115 = arith.constant 128 : index
    %82 = vector.load %arg20[%c13_114, %c128_115] : memref<16x512xf32, #tpu.memory_space<vmem>>, vector<1x256xf32>
    %c11_116 = arith.constant 11 : index
    %c256_117 = arith.constant 256 : index
    %83 = vector.load %arg21[%c11_116, %c256_117] : memref<18x1024xf32, #tpu.memory_space<vmem>>, vector<1x256xf32>
    tpu.vector_store %arg21[%c11_116, %c256_117], %82 {strides = array<i32>} : memref<18x1024xf32, #tpu.memory_space<vmem>>, vector<1x256xf32>,
    %c1_118 = arith.constant 1 : index
    %c256_119 = arith.constant 256 : index
    %84 = vector.load %arg20[%c1_118, %c256_119] : memref<16x512xf32, #tpu.memory_space<vmem>>, vector<1x256xf32>
    %c12_120 = arith.constant 12 : index
    %c256_121 = arith.constant 256 : index
    %85 = vector.load %arg21[%c12_120, %c256_121] : memref<18x1024xf32, #tpu.memory_space<vmem>>, vector<1x256xf32>
    tpu.vector_store %arg21[%c12_120, %c256_121], %84 {strides = array<i32>} : memref<18x1024xf32, #tpu.memory_space<vmem>>, vector<1x256xf32>,
    %c3_122 = arith.constant 3 : index
    %c256_123 = arith.constant 256 : index
    %86 = vector.load %arg20[%c3_122, %c256_123] : memref<16x512xf32, #tpu.memory_space<vmem>>, vector<1x256xf32>
    %c13_124 = arith.constant 13 : index
    %c256_125 = arith.constant 256 : index
    %87 = vector.load %arg21[%c13_124, %c256_125] : memref<18x1024xf32, #tpu.memory_space<vmem>>, vector<1x256xf32>
    tpu.vector_store %arg21[%c13_124, %c256_125], %86 {strides = array<i32>} : memref<18x1024xf32, #tpu.memory_space<vmem>>, vector<1x256xf32>,
    %c5_126 = arith.constant 5 : index
    %c256_127 = arith.constant 256 : index
    %88 = vector.load %arg20[%c5_126, %c256_127] : memref<16x512xf32, #tpu.memory_space<vmem>>, vector<1x256xf32>
    %c14_128 = arith.constant 14 : index
    %c256_129 = arith.constant 256 : index
    %89 = vector.load %arg21[%c14_128, %c256_129] : memref<18x1024xf32, #tpu.memory_space<vmem>>, vector<1x256xf32>
    tpu.vector_store %arg21[%c14_128, %c256_129], %88 {strides = array<i32>} : memref<18x1024xf32, #tpu.memory_space<vmem>>, vector<1x256xf32>,
    %c9_130 = arith.constant 9 : index
    %c256_131 = arith.constant 256 : index
    %90 = vector.load %arg20[%c9_130, %c256_131] : memref<16x512xf32, #tpu.memory_space<vmem>>, vector<1x256xf32>
    %c15_132 = arith.constant 15 : index
    %c256_133 = arith.constant 256 : index
    %91 = vector.load %arg21[%c15_132, %c256_133] : memref<18x1024xf32, #tpu.memory_space<vmem>>, vector<1x256xf32>
    tpu.vector_store %arg21[%c15_132, %c256_133], %90 {strides = array<i32>} : memref<18x1024xf32, #tpu.memory_space<vmem>>, vector<1x256xf32>,
    %c11_134 = arith.constant 11 : index
    %c256_135 = arith.constant 256 : index
    %92 = vector.load %arg20[%c11_134, %c256_135] : memref<16x512xf32, #tpu.memory_space<vmem>>, vector<1x256xf32>
    %c16_136 = arith.constant 16 : index
    %c256_137 = arith.constant 256 : index
    %93 = vector.load %arg21[%c16_136, %c256_137] : memref<18x1024xf32, #tpu.memory_space<vmem>>, vector<1x256xf32>
    tpu.vector_store %arg21[%c16_136, %c256_137], %92 {strides = array<i32>} : memref<18x1024xf32, #tpu.memory_space<vmem>>, vector<1x256xf32>,
    %c13_138 = arith.constant 13 : index
    %c256_139 = arith.constant 256 : index
    %94 = vector.load %arg20[%c13_138, %c256_139] : memref<16x512xf32, #tpu.memory_space<vmem>>, vector<1x256xf32>
    %c17_140 = arith.constant 17 : index
    %c256_141 = arith.constant 256 : index
    %95 = vector.load %arg21[%c17_140, %c256_141] : memref<18x1024xf32, #tpu.memory_space<vmem>>, vector<1x256xf32>
    tpu.vector_store %arg21[%c17_140, %c256_141], %94 {strides = array<i32>} : memref<18x1024xf32, #tpu.memory_space<vmem>>, vector<1x256xf32>,
    %c2_142 = arith.constant 2 : index
    %c0_143 = arith.constant 0 : index
    %96 = vector.load %arg20[%c2_142, %c0_143] : memref<16x512xf32, #tpu.memory_space<vmem>>, vector<1x256xf32>
    %c0_144 = arith.constant 0 : index
    %c512 = arith.constant 512 : index
    %97 = vector.load %arg21[%c0_144, %c512] : memref<18x1024xf32, #tpu.memory_space<vmem>>, vector<1x256xf32>
    tpu.vector_store %arg21[%c0_144, %c512], %96 {strides = array<i32>} : memref<18x1024xf32, #tpu.memory_space<vmem>>, vector<1x256xf32>,
    %c4_145 = arith.constant 4 : index
    %c0_146 = arith.constant 0 : index
    %98 = vector.load %arg20[%c4_145, %c0_146] : memref<16x512xf32, #tpu.memory_space<vmem>>, vector<1x256xf32>
    %c1_147 = arith.constant 1 : index
    %c512_148 = arith.constant 512 : index
    %99 = vector.load %arg21[%c1_147, %c512_148] : memref<18x1024xf32, #tpu.memory_space<vmem>>, vector<1x256xf32>
    tpu.vector_store %arg21[%c1_147, %c512_148], %98 {strides = array<i32>} : memref<18x1024xf32, #tpu.memory_space<vmem>>, vector<1x256xf32>,
    %c6_149 = arith.constant 6 : index
    %c0_150 = arith.constant 0 : index
    %100 = vector.load %arg20[%c6_149, %c0_150] : memref<16x512xf32, #tpu.memory_space<vmem>>, vector<1x256xf32>
    %c2_151 = arith.constant 2 : index
    %c512_152 = arith.constant 512 : index
    %101 = vector.load %arg21[%c2_151, %c512_152] : memref<18x1024xf32, #tpu.memory_space<vmem>>, vector<1x256xf32>
    tpu.vector_store %arg21[%c2_151, %c512_152], %100 {strides = array<i32>} : memref<18x1024xf32, #tpu.memory_space<vmem>>, vector<1x256xf32>,
    %c10_153 = arith.constant 10 : index
    %c0_154 = arith.constant 0 : index
    %102 = vector.load %arg20[%c10_153, %c0_154] : memref<16x512xf32, #tpu.memory_space<vmem>>, vector<1x256xf32>
    %c3_155 = arith.constant 3 : index
    %c512_156 = arith.constant 512 : index
    %103 = vector.load %arg21[%c3_155, %c512_156] : memref<18x1024xf32, #tpu.memory_space<vmem>>, vector<1x256xf32>
    tpu.vector_store %arg21[%c3_155, %c512_156], %102 {strides = array<i32>} : memref<18x1024xf32, #tpu.memory_space<vmem>>, vector<1x256xf32>,
    %c12_157 = arith.constant 12 : index
    %c0_158 = arith.constant 0 : index
    %104 = vector.load %arg20[%c12_157, %c0_158] : memref<16x512xf32, #tpu.memory_space<vmem>>, vector<1x256xf32>
    %c4_159 = arith.constant 4 : index
    %c512_160 = arith.constant 512 : index
    %105 = vector.load %arg21[%c4_159, %c512_160] : memref<18x1024xf32, #tpu.memory_space<vmem>>, vector<1x256xf32>
    tpu.vector_store %arg21[%c4_159, %c512_160], %104 {strides = array<i32>} : memref<18x1024xf32, #tpu.memory_space<vmem>>, vector<1x256xf32>,
    %c14_161 = arith.constant 14 : index
    %c0_162 = arith.constant 0 : index
    %106 = vector.load %arg20[%c14_161, %c0_162] : memref<16x512xf32, #tpu.memory_space<vmem>>, vector<1x256xf32>
    %c5_163 = arith.constant 5 : index
    %c512_164 = arith.constant 512 : index
    %107 = vector.load %arg21[%c5_163, %c512_164] : memref<18x1024xf32, #tpu.memory_space<vmem>>, vector<1x256xf32>
    tpu.vector_store %arg21[%c5_163, %c512_164], %106 {strides = array<i32>} : memref<18x1024xf32, #tpu.memory_space<vmem>>, vector<1x256xf32>,
    %c2_165 = arith.constant 2 : index
    %c128_166 = arith.constant 128 : index
    %108 = vector.load %arg20[%c2_165, %c128_166] : memref<16x512xf32, #tpu.memory_space<vmem>>, vector<1x256xf32>
    %c6_167 = arith.constant 6 : index
    %c512_168 = arith.constant 512 : index
    %109 = vector.load %arg21[%c6_167, %c512_168] : memref<18x1024xf32, #tpu.memory_space<vmem>>, vector<1x256xf32>
    tpu.vector_store %arg21[%c6_167, %c512_168], %108 {strides = array<i32>} : memref<18x1024xf32, #tpu.memory_space<vmem>>, vector<1x256xf32>,
    %c4_169 = arith.constant 4 : index
    %c128_170 = arith.constant 128 : index
    %110 = vector.load %arg20[%c4_169, %c128_170] : memref<16x512xf32, #tpu.memory_space<vmem>>, vector<1x256xf32>
    %c7_171 = arith.constant 7 : index
    %c512_172 = arith.constant 512 : index
    %111 = vector.load %arg21[%c7_171, %c512_172] : memref<18x1024xf32, #tpu.memory_space<vmem>>, vector<1x256xf32>
    tpu.vector_store %arg21[%c7_171, %c512_172], %110 {strides = array<i32>} : memref<18x1024xf32, #tpu.memory_space<vmem>>, vector<1x256xf32>,
    %c6_173 = arith.constant 6 : index
    %c128_174 = arith.constant 128 : index
    %112 = vector.load %arg20[%c6_173, %c128_174] : memref<16x512xf32, #tpu.memory_space<vmem>>, vector<1x256xf32>
    %c8_175 = arith.constant 8 : index
    %c512_176 = arith.constant 512 : index
    %113 = vector.load %arg21[%c8_175, %c512_176] : memref<18x1024xf32, #tpu.memory_space<vmem>>, vector<1x256xf32>
    tpu.vector_store %arg21[%c8_175, %c512_176], %112 {strides = array<i32>} : memref<18x1024xf32, #tpu.memory_space<vmem>>, vector<1x256xf32>,
    %c10_177 = arith.constant 10 : index
    %c128_178 = arith.constant 128 : index
    %114 = vector.load %arg20[%c10_177, %c128_178] : memref<16x512xf32, #tpu.memory_space<vmem>>, vector<1x256xf32>
    %c9_179 = arith.constant 9 : index
    %c512_180 = arith.constant 512 : index
    %115 = vector.load %arg21[%c9_179, %c512_180] : memref<18x1024xf32, #tpu.memory_space<vmem>>, vector<1x256xf32>
    tpu.vector_store %arg21[%c9_179, %c512_180], %114 {strides = array<i32>} : memref<18x1024xf32, #tpu.memory_space<vmem>>, vector<1x256xf32>,
    %c12_181 = arith.constant 12 : index
    %c128_182 = arith.constant 128 : index
    %116 = vector.load %arg20[%c12_181, %c128_182] : memref<16x512xf32, #tpu.memory_space<vmem>>, vector<1x256xf32>
    %c10_183 = arith.constant 10 : index
    %c512_184 = arith.constant 512 : index
    %117 = vector.load %arg21[%c10_183, %c512_184] : memref<18x1024xf32, #tpu.memory_space<vmem>>, vector<1x256xf32>
    tpu.vector_store %arg21[%c10_183, %c512_184], %116 {strides = array<i32>} : memref<18x1024xf32, #tpu.memory_space<vmem>>, vector<1x256xf32>,
    %c14_185 = arith.constant 14 : index
    %c128_186 = arith.constant 128 : index
    %118 = vector.load %arg20[%c14_185, %c128_186] : memref<16x512xf32, #tpu.memory_space<vmem>>, vector<1x256xf32>
    %c11_187 = arith.constant 11 : index
    %c512_188 = arith.constant 512 : index
    %119 = vector.load %arg21[%c11_187, %c512_188] : memref<18x1024xf32, #tpu.memory_space<vmem>>, vector<1x256xf32>
    tpu.vector_store %arg21[%c11_187, %c512_188], %118 {strides = array<i32>} : memref<18x1024xf32, #tpu.memory_space<vmem>>, vector<1x256xf32>,
    %c2_189 = arith.constant 2 : index
    %c256_190 = arith.constant 256 : index
    %120 = vector.load %arg20[%c2_189, %c256_190] : memref<16x512xf32, #tpu.memory_space<vmem>>, vector<1x256xf32>
    %c12_191 = arith.constant 12 : index
    %c512_192 = arith.constant 512 : index
    %121 = vector.load %arg21[%c12_191, %c512_192] : memref<18x1024xf32, #tpu.memory_space<vmem>>, vector<1x256xf32>
    tpu.vector_store %arg21[%c12_191, %c512_192], %120 {strides = array<i32>} : memref<18x1024xf32, #tpu.memory_space<vmem>>, vector<1x256xf32>,
    %c4_193 = arith.constant 4 : index
    %c256_194 = arith.constant 256 : index
    %122 = vector.load %arg20[%c4_193, %c256_194] : memref<16x512xf32, #tpu.memory_space<vmem>>, vector<1x256xf32>
    %c13_195 = arith.constant 13 : index
    %c512_196 = arith.constant 512 : index
    %123 = vector.load %arg21[%c13_195, %c512_196] : memref<18x1024xf32, #tpu.memory_space<vmem>>, vector<1x256xf32>
    tpu.vector_store %arg21[%c13_195, %c512_196], %122 {strides = array<i32>} : memref<18x1024xf32, #tpu.memory_space<vmem>>, vector<1x256xf32>,
    %c6_197 = arith.constant 6 : index
    %c256_198 = arith.constant 256 : index
    %124 = vector.load %arg20[%c6_197, %c256_198] : memref<16x512xf32, #tpu.memory_space<vmem>>, vector<1x256xf32>
    %c14_199 = arith.constant 14 : index
    %c512_200 = arith.constant 512 : index
    %125 = vector.load %arg21[%c14_199, %c512_200] : memref<18x1024xf32, #tpu.memory_space<vmem>>, vector<1x256xf32>
    tpu.vector_store %arg21[%c14_199, %c512_200], %124 {strides = array<i32>} : memref<18x1024xf32, #tpu.memory_space<vmem>>, vector<1x256xf32>,
    %c10_201 = arith.constant 10 : index
    %c256_202 = arith.constant 256 : index
    %126 = vector.load %arg20[%c10_201, %c256_202] : memref<16x512xf32, #tpu.memory_space<vmem>>, vector<1x256xf32>
    %c15_203 = arith.constant 15 : index
    %c512_204 = arith.constant 512 : index
    %127 = vector.load %arg21[%c15_203, %c512_204] : memref<18x1024xf32, #tpu.memory_space<vmem>>, vector<1x256xf32>
    tpu.vector_store %arg21[%c15_203, %c512_204], %126 {strides = array<i32>} : memref<18x1024xf32, #tpu.memory_space<vmem>>, vector<1x256xf32>,
    %c12_205 = arith.constant 12 : index
    %c256_206 = arith.constant 256 : index
    %128 = vector.load %arg20[%c12_205, %c256_206] : memref<16x512xf32, #tpu.memory_space<vmem>>, vector<1x256xf32>
    %c16_207 = arith.constant 16 : index
    %c512_208 = arith.constant 512 : index
    %129 = vector.load %arg21[%c16_207, %c512_208] : memref<18x1024xf32, #tpu.memory_space<vmem>>, vector<1x256xf32>
    tpu.vector_store %arg21[%c16_207, %c512_208], %128 {strides = array<i32>} : memref<18x1024xf32, #tpu.memory_space<vmem>>, vector<1x256xf32>,
    %c14_209 = arith.constant 14 : index
    %c256_210 = arith.constant 256 : index
    %130 = vector.load %arg20[%c14_209, %c256_210] : memref<16x512xf32, #tpu.memory_space<vmem>>, vector<1x256xf32>
    %c17_211 = arith.constant 17 : index
    %c512_212 = arith.constant 512 : index
    %131 = vector.load %arg21[%c17_211, %c512_212] : memref<18x1024xf32, #tpu.memory_space<vmem>>, vector<1x256xf32>
    tpu.vector_store %arg21[%c17_211, %c512_212], %130 {strides = array<i32>} : memref<18x1024xf32, #tpu.memory_space<vmem>>, vector<1x256xf32>,
    %c3_213 = arith.constant 3 : index
    %c0_214 = arith.constant 0 : index
    %132 = vector.load %arg20[%c3_213, %c0_214] : memref<16x512xf32, #tpu.memory_space<vmem>>, vector<1x256xf32>
    %c0_215 = arith.constant 0 : index
    %c768 = arith.constant 768 : index
    %133 = vector.load %arg21[%c0_215, %c768] : memref<18x1024xf32, #tpu.memory_space<vmem>>, vector<1x256xf32>
    tpu.vector_store %arg21[%c0_215, %c768], %132 {strides = array<i32>} : memref<18x1024xf32, #tpu.memory_space<vmem>>, vector<1x256xf32>,
    %c5_216 = arith.constant 5 : index
    %c0_217 = arith.constant 0 : index
    %134 = vector.load %arg20[%c5_216, %c0_217] : memref<16x512xf32, #tpu.memory_space<vmem>>, vector<1x256xf32>
    %c1_218 = arith.constant 1 : index
    %c768_219 = arith.constant 768 : index
    %135 = vector.load %arg21[%c1_218, %c768_219] : memref<18x1024xf32, #tpu.memory_space<vmem>>, vector<1x256xf32>
    tpu.vector_store %arg21[%c1_218, %c768_219], %134 {strides = array<i32>} : memref<18x1024xf32, #tpu.memory_space<vmem>>, vector<1x256xf32>,
    %c7_220 = arith.constant 7 : index
    %c0_221 = arith.constant 0 : index
    %136 = vector.load %arg20[%c7_220, %c0_221] : memref<16x512xf32, #tpu.memory_space<vmem>>, vector<1x256xf32>
    %c2_222 = arith.constant 2 : index
    %c768_223 = arith.constant 768 : index
    %137 = vector.load %arg21[%c2_222, %c768_223] : memref<18x1024xf32, #tpu.memory_space<vmem>>, vector<1x256xf32>
    tpu.vector_store %arg21[%c2_222, %c768_223], %136 {strides = array<i32>} : memref<18x1024xf32, #tpu.memory_space<vmem>>, vector<1x256xf32>,
    %c11_224 = arith.constant 11 : index
    %c0_225 = arith.constant 0 : index
    %138 = vector.load %arg20[%c11_224, %c0_225] : memref<16x512xf32, #tpu.memory_space<vmem>>, vector<1x256xf32>
    %c3_226 = arith.constant 3 : index
    %c768_227 = arith.constant 768 : index
    %139 = vector.load %arg21[%c3_226, %c768_227] : memref<18x1024xf32, #tpu.memory_space<vmem>>, vector<1x256xf32>
    tpu.vector_store %arg21[%c3_226, %c768_227], %138 {strides = array<i32>} : memref<18x1024xf32, #tpu.memory_space<vmem>>, vector<1x256xf32>,
    %c13_228 = arith.constant 13 : index
    %c0_229 = arith.constant 0 : index
    %140 = vector.load %arg20[%c13_228, %c0_229] : memref<16x512xf32, #tpu.memory_space<vmem>>, vector<1x256xf32>
    %c4_230 = arith.constant 4 : index
    %c768_231 = arith.constant 768 : index
    %141 = vector.load %arg21[%c4_230, %c768_231] : memref<18x1024xf32, #tpu.memory_space<vmem>>, vector<1x256xf32>
    tpu.vector_store %arg21[%c4_230, %c768_231], %140 {strides = array<i32>} : memref<18x1024xf32, #tpu.memory_space<vmem>>, vector<1x256xf32>,
    %c15_232 = arith.constant 15 : index
    %c0_233 = arith.constant 0 : index
    %142 = vector.load %arg20[%c15_232, %c0_233] : memref<16x512xf32, #tpu.memory_space<vmem>>, vector<1x256xf32>
    %c5_234 = arith.constant 5 : index
    %c768_235 = arith.constant 768 : index
    %143 = vector.load %arg21[%c5_234, %c768_235] : memref<18x1024xf32, #tpu.memory_space<vmem>>, vector<1x256xf32>
    tpu.vector_store %arg21[%c5_234, %c768_235], %142 {strides = array<i32>} : memref<18x1024xf32, #tpu.memory_space<vmem>>, vector<1x256xf32>,
    %c3_236 = arith.constant 3 : index
    %c128_237 = arith.constant 128 : index
    %144 = vector.load %arg20[%c3_236, %c128_237] : memref<16x512xf32, #tpu.memory_space<vmem>>, vector<1x256xf32>
    %c6_238 = arith.constant 6 : index
    %c768_239 = arith.constant 768 : index
    %145 = vector.load %arg21[%c6_238, %c768_239] : memref<18x1024xf32, #tpu.memory_space<vmem>>, vector<1x256xf32>
    tpu.vector_store %arg21[%c6_238, %c768_239], %144 {strides = array<i32>} : memref<18x1024xf32, #tpu.memory_space<vmem>>, vector<1x256xf32>,
    %c5_240 = arith.constant 5 : index
    %c128_241 = arith.constant 128 : index
    %146 = vector.load %arg20[%c5_240, %c128_241] : memref<16x512xf32, #tpu.memory_space<vmem>>, vector<1x256xf32>
    %c7_242 = arith.constant 7 : index
    %c768_243 = arith.constant 768 : index
    %147 = vector.load %arg21[%c7_242, %c768_243] : memref<18x1024xf32, #tpu.memory_space<vmem>>, vector<1x256xf32>
    tpu.vector_store %arg21[%c7_242, %c768_243], %146 {strides = array<i32>} : memref<18x1024xf32, #tpu.memory_space<vmem>>, vector<1x256xf32>,
    %c7_244 = arith.constant 7 : index
    %c128_245 = arith.constant 128 : index
    %148 = vector.load %arg20[%c7_244, %c128_245] : memref<16x512xf32, #tpu.memory_space<vmem>>, vector<1x256xf32>
    %c8_246 = arith.constant 8 : index
    %c768_247 = arith.constant 768 : index
    %149 = vector.load %arg21[%c8_246, %c768_247] : memref<18x1024xf32, #tpu.memory_space<vmem>>, vector<1x256xf32>
    tpu.vector_store %arg21[%c8_246, %c768_247], %148 {strides = array<i32>} : memref<18x1024xf32, #tpu.memory_space<vmem>>, vector<1x256xf32>,
    %c11_248 = arith.constant 11 : index
    %c128_249 = arith.constant 128 : index
    %150 = vector.load %arg20[%c11_248, %c128_249] : memref<16x512xf32, #tpu.memory_space<vmem>>, vector<1x256xf32>
    %c9_250 = arith.constant 9 : index
    %c768_251 = arith.constant 768 : index
    %151 = vector.load %arg21[%c9_250, %c768_251] : memref<18x1024xf32, #tpu.memory_space<vmem>>, vector<1x256xf32>
    tpu.vector_store %arg21[%c9_250, %c768_251], %150 {strides = array<i32>} : memref<18x1024xf32, #tpu.memory_space<vmem>>, vector<1x256xf32>,
    %c13_252 = arith.constant 13 : index
    %c128_253 = arith.constant 128 : index
    %152 = vector.load %arg20[%c13_252, %c128_253] : memref<16x512xf32, #tpu.memory_space<vmem>>, vector<1x256xf32>
    %c10_254 = arith.constant 10 : index
    %c768_255 = arith.constant 768 : index
    %153 = vector.load %arg21[%c10_254, %c768_255] : memref<18x1024xf32, #tpu.memory_space<vmem>>, vector<1x256xf32>
    tpu.vector_store %arg21[%c10_254, %c768_255], %152 {strides = array<i32>} : memref<18x1024xf32, #tpu.memory_space<vmem>>, vector<1x256xf32>,
    %c15_256 = arith.constant 15 : index
    %c128_257 = arith.constant 128 : index
    %154 = vector.load %arg20[%c15_256, %c128_257] : memref<16x512xf32, #tpu.memory_space<vmem>>, vector<1x256xf32>
    %c11_258 = arith.constant 11 : index
    %c768_259 = arith.constant 768 : index
    %155 = vector.load %arg21[%c11_258, %c768_259] : memref<18x1024xf32, #tpu.memory_space<vmem>>, vector<1x256xf32>
    tpu.vector_store %arg21[%c11_258, %c768_259], %154 {strides = array<i32>} : memref<18x1024xf32, #tpu.memory_space<vmem>>, vector<1x256xf32>,
    %c3_260 = arith.constant 3 : index
    %c256_261 = arith.constant 256 : index
    %156 = vector.load %arg20[%c3_260, %c256_261] : memref<16x512xf32, #tpu.memory_space<vmem>>, vector<1x256xf32>
    %c12_262 = arith.constant 12 : index
    %c768_263 = arith.constant 768 : index
    %157 = vector.load %arg21[%c12_262, %c768_263] : memref<18x1024xf32, #tpu.memory_space<vmem>>, vector<1x256xf32>
    tpu.vector_store %arg21[%c12_262, %c768_263], %156 {strides = array<i32>} : memref<18x1024xf32, #tpu.memory_space<vmem>>, vector<1x256xf32>,
    %c5_264 = arith.constant 5 : index
    %c256_265 = arith.constant 256 : index
    %158 = vector.load %arg20[%c5_264, %c256_265] : memref<16x512xf32, #tpu.memory_space<vmem>>, vector<1x256xf32>
    %c13_266 = arith.constant 13 : index
    %c768_267 = arith.constant 768 : index
    %159 = vector.load %arg21[%c13_266, %c768_267] : memref<18x1024xf32, #tpu.memory_space<vmem>>, vector<1x256xf32>
    tpu.vector_store %arg21[%c13_266, %c768_267], %158 {strides = array<i32>} : memref<18x1024xf32, #tpu.memory_space<vmem>>, vector<1x256xf32>,
    %c7_268 = arith.constant 7 : index
    %c256_269 = arith.constant 256 : index
    %160 = vector.load %arg20[%c7_268, %c256_269] : memref<16x512xf32, #tpu.memory_space<vmem>>, vector<1x256xf32>
    %c14_270 = arith.constant 14 : index
    %c768_271 = arith.constant 768 : index
    %161 = vector.load %arg21[%c14_270, %c768_271] : memref<18x1024xf32, #tpu.memory_space<vmem>>, vector<1x256xf32>
    tpu.vector_store %arg21[%c14_270, %c768_271], %160 {strides = array<i32>} : memref<18x1024xf32, #tpu.memory_space<vmem>>, vector<1x256xf32>,
    %c11_272 = arith.constant 11 : index
    %c256_273 = arith.constant 256 : index
    %162 = vector.load %arg20[%c11_272, %c256_273] : memref<16x512xf32, #tpu.memory_space<vmem>>, vector<1x256xf32>
    %c15_274 = arith.constant 15 : index
    %c768_275 = arith.constant 768 : index
    %163 = vector.load %arg21[%c15_274, %c768_275] : memref<18x1024xf32, #tpu.memory_space<vmem>>, vector<1x256xf32>
    tpu.vector_store %arg21[%c15_274, %c768_275], %162 {strides = array<i32>} : memref<18x1024xf32, #tpu.memory_space<vmem>>, vector<1x256xf32>,
    %c13_276 = arith.constant 13 : index
    %c256_277 = arith.constant 256 : index
    %164 = vector.load %arg20[%c13_276, %c256_277] : memref<16x512xf32, #tpu.memory_space<vmem>>, vector<1x256xf32>
    %c16_278 = arith.constant 16 : index
    %c768_279 = arith.constant 768 : index
    %165 = vector.load %arg21[%c16_278, %c768_279] : memref<18x1024xf32, #tpu.memory_space<vmem>>, vector<1x256xf32>
    tpu.vector_store %arg21[%c16_278, %c768_279], %164 {strides = array<i32>} : memref<18x1024xf32, #tpu.memory_space<vmem>>, vector<1x256xf32>,
    %c15_280 = arith.constant 15 : index
    %c256_281 = arith.constant 256 : index
    %166 = vector.load %arg20[%c15_280, %c256_281] : memref<16x512xf32, #tpu.memory_space<vmem>>, vector<1x256xf32>
    %c17_282 = arith.constant 17 : index
    %c768_283 = arith.constant 768 : index
    %167 = vector.load %arg21[%c17_282, %c768_283] : memref<18x1024xf32, #tpu.memory_space<vmem>>, vector<1x256xf32>
    tpu.vector_store %arg21[%c17_282, %c768_283], %166 {strides = array<i32>} : memref<18x1024xf32, #tpu.memory_space<vmem>>, vector<1x256xf32>,
    %c0_284 = arith.constant 0 : index
    %c0_285 = arith.constant 0 : index
    %168 = vector.load %arg21[%c0_284, %c0_285] : memref<18x1024xf32, #tpu.memory_space<vmem>>, vector<18x1024xf32>
    %c0_286 = arith.constant 0 : index
    %c0_287 = arith.constant 0 : index
    %169 = vector.load %arg4[%c0_286, %c0_287] : memref<1024x128xf32, #tpu.memory_space<vmem>>, vector<1024x128xf32>
    %cst_288 = arith.constant dense<0.000000e+00> : vector<18x128xf32>
    %170 = tpu.matmul %168, %169, %cst_288 {dimension_numbers = #tpu.dot_dimension_numbers<[1], [0], [0], [1], [0, 0, 1, 1], [], []>} : vector<18x1024xf32>, vector<1024x128xf32>, vector<18x128xf32> -> vector<18x128xf32>
    %c0_289 = arith.constant 0 : index
    %c0_290 = arith.constant 0 : index
    %171 = vector.load %arg5[%c0_289, %c0_290] : memref<1x128xf32, #tpu.memory_space<vmem>>, vector<1x128xf32>
    %172 = vector.broadcast %171 : vector<1x128xf32> to vector<18x128xf32>
    %173 = arith.addf %170, %172 : vector<18x128xf32>
    %cst_291 = arith.constant 0.000000e+00 : f32
    %174 = vector.broadcast %cst_291 : f32 to vector<18x128xf32>
    %175 = arith.maximumf %173, %174 : vector<18x128xf32>
    %c0_292 = arith.constant 0 : index
    %c0_293 = arith.constant 0 : index
    %176 = vector.load %arg22[%c0_292, %c0_293] : memref<18x128xf32, #tpu.memory_space<vmem>>, vector<18x128xf32>
    tpu.vector_store %arg22[%c0_292, %c0_293], %175 {strides = array<i32>} : memref<18x128xf32, #tpu.memory_space<vmem>>, vector<18x128xf32>,
    %c0_294 = arith.constant 0 : index
    %c0_295 = arith.constant 0 : index
    %177 = vector.load %arg22[%c0_294, %c0_295] : memref<18x128xf32, #tpu.memory_space<vmem>>, vector<1x128xf32>
    %c0_296 = arith.constant 0 : index
    %c0_297 = arith.constant 0 : index
    %178 = vector.load %arg23[%c0_296, %c0_297] : memref<2x1152xf32, #tpu.memory_space<vmem>>, vector<1x128xf32>
    tpu.vector_store %arg23[%c0_296, %c0_297], %177 {strides = array<i32>} : memref<2x1152xf32, #tpu.memory_space<vmem>>, vector<1x128xf32>,
    %c6_298 = arith.constant 6 : index
    %c0_299 = arith.constant 0 : index
    %179 = vector.load %arg22[%c6_298, %c0_299] : memref<18x128xf32, #tpu.memory_space<vmem>>, vector<1x128xf32>
    %c0_300 = arith.constant 0 : index
    %c128_301 = arith.constant 128 : index
    %180 = vector.load %arg23[%c0_300, %c128_301] : memref<2x1152xf32, #tpu.memory_space<vmem>>, vector<1x128xf32>
    tpu.vector_store %arg23[%c0_300, %c128_301], %179 {strides = array<i32>} : memref<2x1152xf32, #tpu.memory_space<vmem>>, vector<1x128xf32>,
    %c12_302 = arith.constant 12 : index
    %c0_303 = arith.constant 0 : index
    %181 = vector.load %arg22[%c12_302, %c0_303] : memref<18x128xf32, #tpu.memory_space<vmem>>, vector<1x128xf32>
    %c0_304 = arith.constant 0 : index
    %c256_305 = arith.constant 256 : index
    %182 = vector.load %arg23[%c0_304, %c256_305] : memref<2x1152xf32, #tpu.memory_space<vmem>>, vector<1x128xf32>
    tpu.vector_store %arg23[%c0_304, %c256_305], %181 {strides = array<i32>} : memref<2x1152xf32, #tpu.memory_space<vmem>>, vector<1x128xf32>,
    %c1_306 = arith.constant 1 : index
    %c0_307 = arith.constant 0 : index
    %183 = vector.load %arg22[%c1_306, %c0_307] : memref<18x128xf32, #tpu.memory_space<vmem>>, vector<1x128xf32>
    %c0_308 = arith.constant 0 : index
    %c384_309 = arith.constant 384 : index
    %184 = vector.load %arg23[%c0_308, %c384_309] : memref<2x1152xf32, #tpu.memory_space<vmem>>, vector<1x128xf32>
    tpu.vector_store %arg23[%c0_308, %c384_309], %183 {strides = array<i32>} : memref<2x1152xf32, #tpu.memory_space<vmem>>, vector<1x128xf32>,
    %c7_310 = arith.constant 7 : index
    %c0_311 = arith.constant 0 : index
    %185 = vector.load %arg22[%c7_310, %c0_311] : memref<18x128xf32, #tpu.memory_space<vmem>>, vector<1x128xf32>
    %c0_312 = arith.constant 0 : index
    %c512_313 = arith.constant 512 : index
    %186 = vector.load %arg23[%c0_312, %c512_313] : memref<2x1152xf32, #tpu.memory_space<vmem>>, vector<1x128xf32>
    tpu.vector_store %arg23[%c0_312, %c512_313], %185 {strides = array<i32>} : memref<2x1152xf32, #tpu.memory_space<vmem>>, vector<1x128xf32>,
    %c13_314 = arith.constant 13 : index
    %c0_315 = arith.constant 0 : index
    %187 = vector.load %arg22[%c13_314, %c0_315] : memref<18x128xf32, #tpu.memory_space<vmem>>, vector<1x128xf32>
    %c0_316 = arith.constant 0 : index
    %c640 = arith.constant 640 : index
    %188 = vector.load %arg23[%c0_316, %c640] : memref<2x1152xf32, #tpu.memory_space<vmem>>, vector<1x128xf32>
    tpu.vector_store %arg23[%c0_316, %c640], %187 {strides = array<i32>} : memref<2x1152xf32, #tpu.memory_space<vmem>>, vector<1x128xf32>,
    %c2_317 = arith.constant 2 : index
    %c0_318 = arith.constant 0 : index
    %189 = vector.load %arg22[%c2_317, %c0_318] : memref<18x128xf32, #tpu.memory_space<vmem>>, vector<1x128xf32>
    %c0_319 = arith.constant 0 : index
    %c768_320 = arith.constant 768 : index
    %190 = vector.load %arg23[%c0_319, %c768_320] : memref<2x1152xf32, #tpu.memory_space<vmem>>, vector<1x128xf32>
    tpu.vector_store %arg23[%c0_319, %c768_320], %189 {strides = array<i32>} : memref<2x1152xf32, #tpu.memory_space<vmem>>, vector<1x128xf32>,
    %c8_321 = arith.constant 8 : index
    %c0_322 = arith.constant 0 : index
    %191 = vector.load %arg22[%c8_321, %c0_322] : memref<18x128xf32, #tpu.memory_space<vmem>>, vector<1x128xf32>
    %c0_323 = arith.constant 0 : index
    %c896 = arith.constant 896 : index
    %192 = vector.load %arg23[%c0_323, %c896] : memref<2x1152xf32, #tpu.memory_space<vmem>>, vector<1x128xf32>
    tpu.vector_store %arg23[%c0_323, %c896], %191 {strides = array<i32>} : memref<2x1152xf32, #tpu.memory_space<vmem>>, vector<1x128xf32>,
    %c14_324 = arith.constant 14 : index
    %c0_325 = arith.constant 0 : index
    %193 = vector.load %arg22[%c14_324, %c0_325] : memref<18x128xf32, #tpu.memory_space<vmem>>, vector<1x128xf32>
    %c0_326 = arith.constant 0 : index
    %c1024 = arith.constant 1024 : index
    %194 = vector.load %arg23[%c0_326, %c1024] : memref<2x1152xf32, #tpu.memory_space<vmem>>, vector<1x128xf32>
    tpu.vector_store %arg23[%c0_326, %c1024], %193 {strides = array<i32>} : memref<2x1152xf32, #tpu.memory_space<vmem>>, vector<1x128xf32>,
    %c3_327 = arith.constant 3 : index
    %c0_328 = arith.constant 0 : index
    %195 = vector.load %arg22[%c3_327, %c0_328] : memref<18x128xf32, #tpu.memory_space<vmem>>, vector<1x128xf32>
    %c1_329 = arith.constant 1 : index
    %c0_330 = arith.constant 0 : index
    %196 = vector.load %arg23[%c1_329, %c0_330] : memref<2x1152xf32, #tpu.memory_space<vmem>>, vector<1x128xf32>
    tpu.vector_store %arg23[%c1_329, %c0_330], %195 {strides = array<i32>} : memref<2x1152xf32, #tpu.memory_space<vmem>>, vector<1x128xf32>,
    %c9_331 = arith.constant 9 : index
    %c0_332 = arith.constant 0 : index
    %197 = vector.load %arg22[%c9_331, %c0_332] : memref<18x128xf32, #tpu.memory_space<vmem>>, vector<1x128xf32>
    %c1_333 = arith.constant 1 : index
    %c128_334 = arith.constant 128 : index
    %198 = vector.load %arg23[%c1_333, %c128_334] : memref<2x1152xf32, #tpu.memory_space<vmem>>, vector<1x128xf32>
    tpu.vector_store %arg23[%c1_333, %c128_334], %197 {strides = array<i32>} : memref<2x1152xf32, #tpu.memory_space<vmem>>, vector<1x128xf32>,
    %c15_335 = arith.constant 15 : index
    %c0_336 = arith.constant 0 : index
    %199 = vector.load %arg22[%c15_335, %c0_336] : memref<18x128xf32, #tpu.memory_space<vmem>>, vector<1x128xf32>
    %c1_337 = arith.constant 1 : index
    %c256_338 = arith.constant 256 : index
    %200 = vector.load %arg23[%c1_337, %c256_338] : memref<2x1152xf32, #tpu.memory_space<vmem>>, vector<1x128xf32>
    tpu.vector_store %arg23[%c1_337, %c256_338], %199 {strides = array<i32>} : memref<2x1152xf32, #tpu.memory_space<vmem>>, vector<1x128xf32>,
    %c4_339 = arith.constant 4 : index
    %c0_340 = arith.constant 0 : index
    %201 = vector.load %arg22[%c4_339, %c0_340] : memref<18x128xf32, #tpu.memory_space<vmem>>, vector<1x128xf32>
    %c1_341 = arith.constant 1 : index
    %c384_342 = arith.constant 384 : index
    %202 = vector.load %arg23[%c1_341, %c384_342] : memref<2x1152xf32, #tpu.memory_space<vmem>>, vector<1x128xf32>
    tpu.vector_store %arg23[%c1_341, %c384_342], %201 {strides = array<i32>} : memref<2x1152xf32, #tpu.memory_space<vmem>>, vector<1x128xf32>,
    %c10_343 = arith.constant 10 : index
    %c0_344 = arith.constant 0 : index
    %203 = vector.load %arg22[%c10_343, %c0_344] : memref<18x128xf32, #tpu.memory_space<vmem>>, vector<1x128xf32>
    %c1_345 = arith.constant 1 : index
    %c512_346 = arith.constant 512 : index
    %204 = vector.load %arg23[%c1_345, %c512_346] : memref<2x1152xf32, #tpu.memory_space<vmem>>, vector<1x128xf32>
    tpu.vector_store %arg23[%c1_345, %c512_346], %203 {strides = array<i32>} : memref<2x1152xf32, #tpu.memory_space<vmem>>, vector<1x128xf32>,
    %c16_347 = arith.constant 16 : index
    %c0_348 = arith.constant 0 : index
    %205 = vector.load %arg22[%c16_347, %c0_348] : memref<18x128xf32, #tpu.memory_space<vmem>>, vector<1x128xf32>
    %c1_349 = arith.constant 1 : index
    %c640_350 = arith.constant 640 : index
    %206 = vector.load %arg23[%c1_349, %c640_350] : memref<2x1152xf32, #tpu.memory_space<vmem>>, vector<1x128xf32>
    tpu.vector_store %arg23[%c1_349, %c640_350], %205 {strides = array<i32>} : memref<2x1152xf32, #tpu.memory_space<vmem>>, vector<1x128xf32>,
    %c5_351 = arith.constant 5 : index
    %c0_352 = arith.constant 0 : index
    %207 = vector.load %arg22[%c5_351, %c0_352] : memref<18x128xf32, #tpu.memory_space<vmem>>, vector<1x128xf32>
    %c1_353 = arith.constant 1 : index
    %c768_354 = arith.constant 768 : index
    %208 = vector.load %arg23[%c1_353, %c768_354] : memref<2x1152xf32, #tpu.memory_space<vmem>>, vector<1x128xf32>
    tpu.vector_store %arg23[%c1_353, %c768_354], %207 {strides = array<i32>} : memref<2x1152xf32, #tpu.memory_space<vmem>>, vector<1x128xf32>,
    %c11_355 = arith.constant 11 : index
    %c0_356 = arith.constant 0 : index
    %209 = vector.load %arg22[%c11_355, %c0_356] : memref<18x128xf32, #tpu.memory_space<vmem>>, vector<1x128xf32>
    %c1_357 = arith.constant 1 : index
    %c896_358 = arith.constant 896 : index
    %210 = vector.load %arg23[%c1_357, %c896_358] : memref<2x1152xf32, #tpu.memory_space<vmem>>, vector<1x128xf32>
    tpu.vector_store %arg23[%c1_357, %c896_358], %209 {strides = array<i32>} : memref<2x1152xf32, #tpu.memory_space<vmem>>, vector<1x128xf32>,
    %c17_359 = arith.constant 17 : index
    %c0_360 = arith.constant 0 : index
    %211 = vector.load %arg22[%c17_359, %c0_360] : memref<18x128xf32, #tpu.memory_space<vmem>>, vector<1x128xf32>
    %c1_361 = arith.constant 1 : index
    %c1024_362 = arith.constant 1024 : index
    %212 = vector.load %arg23[%c1_361, %c1024_362] : memref<2x1152xf32, #tpu.memory_space<vmem>>, vector<1x128xf32>
    tpu.vector_store %arg23[%c1_361, %c1024_362], %211 {strides = array<i32>} : memref<2x1152xf32, #tpu.memory_space<vmem>>, vector<1x128xf32>,
    %c0_363 = arith.constant 0 : index
    %c0_364 = arith.constant 0 : index
    %213 = vector.load %arg23[%c0_363, %c0_364] : memref<2x1152xf32, #tpu.memory_space<vmem>>, vector<2x1152xf32>
    %c0_365 = arith.constant 0 : index
    %c0_366 = arith.constant 0 : index
    %214 = vector.load %arg6[%c0_365, %c0_366] : memref<1152x128xf32, #tpu.memory_space<vmem>>, vector<1152x128xf32>
    %cst_367 = arith.constant dense<0.000000e+00> : vector<2x128xf32>
    %215 = tpu.matmul %213, %214, %cst_367 {dimension_numbers = #tpu.dot_dimension_numbers<[1], [0], [0], [1], [0, 0, 1, 1], [], []>} : vector<2x1152xf32>, vector<1152x128xf32>, vector<2x128xf32> -> vector<2x128xf32>
    %c0_368 = arith.constant 0 : index
    %c0_369 = arith.constant 0 : index
    %216 = vector.load %arg7[%c0_368, %c0_369] : memref<1x128xf32, #tpu.memory_space<vmem>>, vector<1x128xf32>
    %217 = vector.broadcast %216 : vector<1x128xf32> to vector<2x128xf32>
    %218 = arith.addf %215, %217 : vector<2x128xf32>
    %cst_370 = arith.constant 0.000000e+00 : f32
    %219 = vector.broadcast %cst_370 : f32 to vector<2x128xf32>
    %220 = arith.maximumf %218, %219 : vector<2x128xf32>
    %c0_371 = arith.constant 0 : index
    %c0_372 = arith.constant 0 : index
    %221 = vector.load %arg8[%c0_371, %c0_372] : memref<128x40xf32, #tpu.memory_space<vmem>>, vector<128x40xf32>
    %cst_373 = arith.constant dense<0.000000e+00> : vector<2x40xf32>
    %222 = tpu.matmul %220, %221, %cst_373 {dimension_numbers = #tpu.dot_dimension_numbers<[1], [0], [0], [1], [0, 0, 1, 1], [], []>} : vector<2x128xf32>, vector<128x40xf32>, vector<2x40xf32> -> vector<2x40xf32>
    %c0_374 = arith.constant 0 : index
    %c0_375 = arith.constant 0 : index
    %223 = vector.load %arg9[%c0_374, %c0_375] : memref<1x40xf32, #tpu.memory_space<vmem>>, vector<1x40xf32>
    %224 = vector.broadcast %223 : vector<1x40xf32> to vector<2x40xf32>
    %225 = arith.addf %222, %224 : vector<2x40xf32>
    %c0_376 = arith.constant 0 : index
    %c0_377 = arith.constant 0 : index
    %226 = vector.load %arg1[%c0_376, %c0_377] : memref<2x8xf32, #tpu.memory_space<vmem>>, vector<2x8xf32>
    %c0_378 = arith.constant 0 : index
    %c0_379 = arith.constant 0 : index
    %c0_380 = arith.constant 0 : index
    %227 = vector.load %arg10[%c0_378, %c0_379, %c0_380] : memref<3x8x40xf32, #tpu.memory_space<vmem>>, vector<1x8x40xf32>
    %228 = vector.shape_cast %227 : vector<1x8x40xf32> to vector<8x40xf32>
    %cst_381 = arith.constant dense<0.000000e+00> : vector<2x40xf32>
    %229 = tpu.matmul %226, %228, %cst_381 {dimension_numbers = #tpu.dot_dimension_numbers<[1], [0], [0], [1], [0, 0, 1, 1], [], []>} : vector<2x8xf32>, vector<8x40xf32>, vector<2x40xf32> -> vector<2x40xf32>
    %c0_382 = arith.constant 0 : index
    %c0_383 = arith.constant 0 : index
    %c0_384 = arith.constant 0 : index
    %230 = vector.load %arg11[%c0_382, %c0_383, %c0_384] : memref<3x1x40xf32, #tpu.memory_space<vmem>>, vector<1x1x40xf32>
    %231 = vector.shape_cast %230 : vector<1x1x40xf32> to vector<1x40xf32>
    %232 = vector.broadcast %231 : vector<1x40xf32> to vector<2x40xf32>
    %233 = arith.addf %229, %232 : vector<2x40xf32>
    %c1_385 = arith.constant 1 : index
    %c0_386 = arith.constant 0 : index
    %c0_387 = arith.constant 0 : index
    %234 = vector.load %arg10[%c1_385, %c0_386, %c0_387] : memref<3x8x40xf32, #tpu.memory_space<vmem>>, vector<1x8x40xf32>
    %235 = vector.shape_cast %234 : vector<1x8x40xf32> to vector<8x40xf32>
    %cst_388 = arith.constant dense<0.000000e+00> : vector<2x40xf32>
    %236 = tpu.matmul %226, %235, %cst_388 {dimension_numbers = #tpu.dot_dimension_numbers<[1], [0], [0], [1], [0, 0, 1, 1], [], []>} : vector<2x8xf32>, vector<8x40xf32>, vector<2x40xf32> -> vector<2x40xf32>
    %c1_389 = arith.constant 1 : index
    %c0_390 = arith.constant 0 : index
    %c0_391 = arith.constant 0 : index
    %237 = vector.load %arg11[%c1_389, %c0_390, %c0_391] : memref<3x1x40xf32, #tpu.memory_space<vmem>>, vector<1x1x40xf32>
    %238 = vector.shape_cast %237 : vector<1x1x40xf32> to vector<1x40xf32>
    %239 = vector.broadcast %238 : vector<1x40xf32> to vector<2x40xf32>
    %240 = arith.addf %236, %239 : vector<2x40xf32>
    %c2_392 = arith.constant 2 : index
    %c0_393 = arith.constant 0 : index
    %c0_394 = arith.constant 0 : index
    %241 = vector.load %arg10[%c2_392, %c0_393, %c0_394] : memref<3x8x40xf32, #tpu.memory_space<vmem>>, vector<1x8x40xf32>
    %242 = vector.shape_cast %241 : vector<1x8x40xf32> to vector<8x40xf32>
    %cst_395 = arith.constant dense<0.000000e+00> : vector<2x40xf32>
    %243 = tpu.matmul %226, %242, %cst_395 {dimension_numbers = #tpu.dot_dimension_numbers<[1], [0], [0], [1], [0, 0, 1, 1], [], []>} : vector<2x8xf32>, vector<8x40xf32>, vector<2x40xf32> -> vector<2x40xf32>
    %c2_396 = arith.constant 2 : index
    %c0_397 = arith.constant 0 : index
    %c0_398 = arith.constant 0 : index
    %244 = vector.load %arg11[%c2_396, %c0_397, %c0_398] : memref<3x1x40xf32, #tpu.memory_space<vmem>>, vector<1x1x40xf32>
    %245 = vector.shape_cast %244 : vector<1x1x40xf32> to vector<1x40xf32>
    %246 = vector.broadcast %245 : vector<1x40xf32> to vector<2x40xf32>
    %247 = arith.addf %243, %246 : vector<2x40xf32>
    %cst_399 = arith.constant 0.000000e+00 : f32
    %248 = vector.broadcast %cst_399 : f32 to vector<2x40xf32>
    %249 = arith.subf %248, %247 : vector<2x40xf32>
    %250 = math.exp %249 : vector<2x40xf32>
    %cst_400 = arith.constant 1.000000e+00 : f32
    %251 = vector.broadcast %cst_400 : f32 to vector<2x40xf32>
    %252 = arith.addf %251, %250 : vector<2x40xf32>
    %cst_401 = arith.constant 1.000000e+00 : f32
    %253 = vector.broadcast %cst_401 : f32 to vector<2x40xf32>
    %254 = arith.divf %253, %252 : vector<2x40xf32>
    %cst_402 = arith.constant 0.000000e+00 : f32
    %255 = vector.broadcast %cst_402 : f32 to vector<2x40xf32>
    %256 = arith.subf %255, %233 : vector<2x40xf32>
    %257 = math.exp %256 : vector<2x40xf32>
    %cst_403 = arith.constant 1.000000e+00 : f32
    %258 = vector.broadcast %cst_403 : f32 to vector<2x40xf32>
    %259 = arith.addf %258, %257 : vector<2x40xf32>
    %cst_404 = arith.constant 1.000000e+00 : f32
    %260 = vector.broadcast %cst_404 : f32 to vector<2x40xf32>
    %261 = arith.divf %260, %259 : vector<2x40xf32>
    %262 = math.tanh %240 : vector<2x40xf32>
    %263 = arith.mulf %261, %262 : vector<2x40xf32>
    %264 = math.tanh %263 : vector<2x40xf32>
    %265 = arith.mulf %254, %264 : vector<2x40xf32>
    %c0_405 = arith.constant 0 : index
    %c0_406 = arith.constant 0 : index
    %c0_407 = arith.constant 0 : index
    %266 = vector.load %arg12[%c0_405, %c0_406, %c0_407] : memref<2x40x40xf32, #tpu.memory_space<vmem>>, vector<1x40x40xf32>
    %267 = vector.shape_cast %266 : vector<1x40x40xf32> to vector<40x40xf32>
    %cst_408 = arith.constant dense<0.000000e+00> : vector<2x40xf32>
    %268 = tpu.matmul %225, %267, %cst_408 {dimension_numbers = #tpu.dot_dimension_numbers<[1], [0], [0], [1], [0, 0, 1, 1], [], []>} : vector<2x40xf32>, vector<40x40xf32>, vector<2x40xf32> -> vector<2x40xf32>
    %c1_409 = arith.constant 1 : index
    %c0_410 = arith.constant 0 : index
    %c0_411 = arith.constant 0 : index
    %269 = vector.load %arg12[%c1_409, %c0_410, %c0_411] : memref<2x40x40xf32, #tpu.memory_space<vmem>>, vector<1x40x40xf32>
    %270 = vector.shape_cast %269 : vector<1x40x40xf32> to vector<40x40xf32>
    %cst_412 = arith.constant dense<0.000000e+00> : vector<2x40xf32>
    %271 = tpu.matmul %265, %270, %cst_412 {dimension_numbers = #tpu.dot_dimension_numbers<[1], [0], [0], [1], [0, 0, 1, 1], [], []>} : vector<2x40xf32>, vector<40x40xf32>, vector<2x40xf32> -> vector<2x40xf32>
    %272 = arith.addf %268, %271 : vector<2x40xf32>
    %c0_413 = arith.constant 0 : index
    %c0_414 = arith.constant 0 : index
    %273 = vector.load %arg13[%c0_413, %c0_414] : memref<1x40xf32, #tpu.memory_space<vmem>>, vector<1x40xf32>
    %274 = vector.broadcast %273 : vector<1x40xf32> to vector<2x40xf32>
    %275 = arith.addf %272, %274 : vector<2x40xf32>
    %cst_415 = arith.constant 0.000000e+00 : f32
    %276 = vector.broadcast %cst_415 : f32 to vector<2x40xf32>
    %277 = arith.maximumf %275, %276 : vector<2x40xf32>
    %c0_416 = arith.constant 0 : index
    %c0_417 = arith.constant 0 : index
    %278 = vector.load %arg14[%c0_416, %c0_417] : memref<40x4xf32, #tpu.memory_space<vmem>>, vector<40x4xf32>
    %cst_418 = arith.constant dense<0.000000e+00> : vector<2x4xf32>
    %279 = tpu.matmul %277, %278, %cst_418 {dimension_numbers = #tpu.dot_dimension_numbers<[1], [0], [0], [1], [0, 0, 1, 1], [], []>} : vector<2x40xf32>, vector<40x4xf32>, vector<2x4xf32> -> vector<2x4xf32>
    %c0_419 = arith.constant 0 : index
    %c0_420 = arith.constant 0 : index
    %280 = vector.load %arg15[%c0_419, %c0_420] : memref<1x4xf32, #tpu.memory_space<vmem>>, vector<1x4xf32>
    %281 = vector.broadcast %280 : vector<1x4xf32> to vector<2x4xf32>
    %282 = arith.addf %279, %281 : vector<2x4xf32>
    %283 = math.tanh %282 : vector<2x4xf32>
    %c0_421 = arith.constant 0 : index
    %c0_422 = arith.constant 0 : index
    %284 = vector.load %arg16[%c0_421, %c0_422] : memref<40x1xf32, #tpu.memory_space<vmem>>, vector<40x1xf32>
    %cst_423 = arith.constant dense<0.000000e+00> : vector<2x1xf32>
    %285 = tpu.matmul %277, %284, %cst_423 {dimension_numbers = #tpu.dot_dimension_numbers<[1], [0], [0], [1], [0, 0, 1, 1], [], []>} : vector<2x40xf32>, vector<40x1xf32>, vector<2x1xf32> -> vector<2x1xf32>
    %c0_424 = arith.constant 0 : index
    %c0_425 = arith.constant 0 : index
    %286 = vector.load %arg17[%c0_424, %c0_425] : memref<1x1xf32, #tpu.memory_space<vmem>>, vector<1x1xf32>
    %287 = vector.broadcast %286 : vector<1x1xf32> to vector<2x1xf32>
    %288 = arith.addf %285, %287 : vector<2x1xf32>
    %c0_426 = arith.constant 0 : index
    %c0_427 = arith.constant 0 : index
    %289 = vector.load %arg19[%c0_426, %c0_427] : memref<2x9xf32, #tpu.memory_space<vmem>>, vector<2x4xf32>
    tpu.vector_store %arg19[%c0_426, %c0_427], %283 {strides = array<i32>} : memref<2x9xf32, #tpu.memory_space<vmem>>, vector<2x4xf32>,
    %c0_428 = arith.constant 0 : index
    %c0_429 = arith.constant 0 : index
    %290 = vector.load %arg18[%c0_428, %c0_429] : memref<1x4xf32, #tpu.memory_space<vmem>>, vector<1x4xf32>
    %291 = math.exp %290 : vector<1x4xf32>
    %292 = vector.shape_cast %291 : vector<1x4xf32> to vector<1x4xf32>
    %293 = vector.broadcast %292 : vector<1x4xf32> to vector<2x4xf32>
    %c0_430 = arith.constant 0 : index
    %c4_431 = arith.constant 4 : index
    %294 = vector.load %arg19[%c0_430, %c4_431] : memref<2x9xf32, #tpu.memory_space<vmem>>, vector<2x4xf32>
    tpu.vector_store %arg19[%c0_430, %c4_431], %293 {strides = array<i32>} : memref<2x9xf32, #tpu.memory_space<vmem>>, vector<2x4xf32>,
    %c0_432 = arith.constant 0 : index
    %c8_433 = arith.constant 8 : index
    %295 = vector.load %arg19[%c0_432, %c8_433] : memref<2x9xf32, #tpu.memory_space<vmem>>, vector<2x1xf32>
    tpu.vector_store %arg19[%c0_432, %c8_433], %288 {strides = array<i32>} : memref<2x9xf32, #tpu.memory_space<vmem>>, vector<2x1xf32>,
    return
  }
}

</mosaic_0001>

<bundles_post_ra>
// kernel: multi_sensor_lstm_forward.1
= control target key start
LH: loop header
LB: loop body
LE: loop exit
PB: predicated region body
PF: predicated region fallthrough
CT: control target
= control target key end

     0   :  { %v3452_v0 = vmov 0.0|0.0   ;;  %vm127_vm0 = vcmask 523264   ;;  %vm347_vm1 = vcmask 1048064   ;;  %vm3455_vm3 = vmmov 0   ;;  %s4992_s2 = inlined_call_operand.vmem [shape: f32[192,64], index: 2, kind: input, shape index: {}]   ;;  %s4993_s0 = inlined_call_operand.vmem [shape: f32[128,192], index: 0, kind: input, shape index: {}]   ;;  %s4994_s3 = inlined_call_operand.vmem [shape: f32[1,64], index: 3, kind: input, shape index: {}]   ;;  %s4995_s4 = inlined_call_operand.vmem [shape: f32[1024,128], index: 4, kind: input, shape index: {}]   ;;  %s4996_s6 = inlined_call_operand.vmem [shape: f32[1152,128], index: 6, kind: input, shape index: {}]   ;;  %s4997_s5 = inlined_call_operand.vmem [shape: f32[1,128], index: 5, kind: input, shape index: {}]   ;;  %s4998_s10 = inlined_call_operand.vmem [shape: f32[3,8,40], index: 10, kind: input, shape index: {}]   ;;  %s4999_s1 = inlined_call_operand.vmem [shape: f32[2,8], index: 1, kind: input, shape index: {}]   ;;  %s5000_s8 = inlined_call_operand.vmem [shape: f32[128,40], index: 8, kind: input, shape index: {}]   ;;  %s5001_s12 = inlined_call_operand.vmem [shape: f32[2,40,40], index: 12, kind: input, shape index: {}]   ;;  %s5002_s7 = inlined_call_operand.vmem [shape: f32[1,128], index: 7, kind: input, shape index: {}]   ;;  %s5003_s11 = inlined_call_operand.vmem [shape: f32[3,1,40], index: 11, kind: input, shape index: {}]   ;;  %s5004_s14 = inlined_call_operand.vmem [shape: f32[40,4], index: 14, kind: input, shape index: {}]   ;;  %s5005_s16 = inlined_call_operand.vmem [shape: f32[40,1], index: 16, kind: input, shape index: {}]   ;;  %s5006_s9 = inlined_call_operand.vmem [shape: f32[1,40], index: 9, kind: input, shape index: {}]   ;;  %s5007_s13 = inlined_call_operand.vmem [shape: f32[1,40], index: 13, kind: input, shape index: {}]   ;;  %s5008_s18 = inlined_call_operand.vmem [shape: f32[1,4], index: 18, kind: input, shape index: {}]   ;;  %s5009_s17 = inlined_call_operand.<no memory space> [shape: f32[1,1], index: 17, kind: input, shape index: {}]   ;;  %s5010_s15 = inlined_call_operand.vmem [shape: f32[1,4], index: 15, kind: input, shape index: {}]   ;;  %s5011_s19 = inlined_call_operand.vmem [shape: f32[2,9], index: 19, kind: output, shape index: {}]  }
   0x1   :  { %5015 = sst [smem:[#allocation9_spill]] %s4992_s2  ;;  %3063 = vmatprep.subr.bf16.mxu0 %v3452_v0  ;;  %vm1905_vm4 = vcmask 64512   ;;  %vm2166_vm5 = vcmask 326656   ;;  %vm2490_vm6 = vcmask 25600   ;;  %vm2503_vm7 = vcmask 58400  }
   0x2   :  { %5016 = sst [smem:[#allocation10_spill]] %s4993_s0  ;;  %s5019_s20 = sld [smem:[#allocation9_spill]]  ;;  %vm2509_vm8 = vcmask 66624  }
   0x3   :  { %5017 = sst [smem:[#allocation11_spill]] %s4994_s3  ;;  %s5020_s22 = sld [smem:[#allocation10_spill]] }
   0x4   :  { %5018 = sst [smem:[#allocation12_spill]] %s4995_s4  ;;  %s5021_s3 = sld [smem:[#allocation11_spill]] }
   0x5   :  { %s5022_s25 = sld [smem:[#allocation12_spill]] }
   0x8   :  { %v96_v1 = vld [vmem:[%s5019_s20] sm:$0xff]  ;;  %v97_v2 = vld [vmem:[%s5019_s20 + $0x8] sm:$0xff]  ;;  %v98_v3 = vld [vmem:[%s5019_s20 + $0x10] sm:$0xff] }
   0x9   :  { %v3064_v4 = vpack.c.bf16 %v97_v2, %v96_v1  ;;  %v99_v5 = vld [vmem:[%s5019_s20 + $0x18] sm:$0xff]  ;;  %v100_v7 = vld [vmem:[%s5019_s20 + $0x20] sm:$0xff]  ;;  %v101_v8 = vld [vmem:[%s5019_s20 + $0x28] sm:$0xff] }
   0xa   :  { %v3067_v6 = vpack.c.bf16 %v99_v5, %v98_v3  ;;  %v3070_v9 = vpack.c.bf16 %v101_v8, %v100_v7  ;;  %v102_v10 = vld [vmem:[%s5019_s20 + $0x30] sm:$0xff]  ;;  %v103_v11 = vld [vmem:[%s5019_s20 + $0x38] sm:$0xff]  ;;  %v65_v12 = vld [vmem:[%s5020_s22 + $0x8] sm:$0xff] }
   0xb   :  { %3065 = vmatpush1.bf16.msra.mxu0 %v3064_v4  ;;  %2516 = vmatprep.mubr.msk.f32.mxu0 %vm127_vm0, %v65_v12  ;;  %v3073_v13 = vpack.c.bf16 %v103_v11, %v102_v10  ;;  %v104_v14 = vld [vmem:[%s5019_s20 + $0x40] sm:$0xff]  ;;  %v105_v15 = vld [vmem:[%s5019_s20 + $0x48] sm:$0xff]  ;;  %v106_v17 = vld [vmem:[%s5019_s20 + $0x50] sm:$0xff] }
   0xc   :  { %3066 = vmatprep.subr.bf16.mxu0 %v3452_v0  ;;  %v3076_v16 = vpack.c.bf16 %v105_v15, %v104_v14  ;;  %v107_v18 = vld [vmem:[%s5019_s20 + $0x58] sm:$0xff]  ;;  %v108_v20 = vld [vmem:[%s5019_s20 + $0x60] sm:$0xff]  ;;  %v109_v21 = vld [vmem:[%s5019_s20 + $0x68] sm:$0xff] }
   0xd   :  { %v3079_v19 = vpack.c.bf16 %v107_v18, %v106_v17  ;;  %v3082_v22 = vpack.c.bf16 %v109_v21, %v108_v20  ;;  %v110_v23 = vld [vmem:[%s5019_s20 + $0x70] sm:$0xff]  ;;  %v111_v24 = vld [vmem:[%s5019_s20 + $0x78] sm:$0xff]  ;;  %v112_v26 = vld [vmem:[%s5019_s20 + $0x80] sm:$0xff] }
   0xe   :  { %v3085_v25 = vpack.c.bf16 %v111_v24, %v110_v23  ;;  %v113_v27 = vld [vmem:[%s5019_s20 + $0x88] sm:$0xff]  ;;  %v114_v29 = vld [vmem:[%s5019_s20 + $0x90] sm:$0xff]  ;;  %v115_v30 = vld [vmem:[%s5019_s20 + $0x98] sm:$0xff] }
   0xf   :  { %3068 = vmatpush1.bf16.msra.mxu0 %v3067_v6  ;;  %v3088_v28 = vpack.c.bf16 %v113_v27, %v112_v26  ;;  %v3091_v31 = vpack.c.bf16 %v115_v30, %v114_v29  ;;  %v116_v32 = vld [vmem:[%s5019_s20 + $0xa0] sm:$0xff]  ;;  %v117_v33 = vld [vmem:[%s5019_s20 + $0xa8] sm:$0xff]  ;;  %v118_v35 = vld [vmem:[%s5019_s20 + $0xb0] sm:$0xff] }
  0x10   :  { %3069 = vmatprep.subr.bf16.mxu0 %v3452_v0  ;;  %v3094_v34 = vpack.c.bf16 %v117_v33, %v116_v32  ;;  %v119_v36 = vld [vmem:[%s5019_s20 + $0xb8] sm:$0xff]  ;;  %v64_v38 = vld [vmem:[%s5020_s22] sm:$0xff]  ;;  %v66_v40 = vld [vmem:[%s5020_s22 + $0x10] sm:$0xff] }
  0x11   :  { %v3097_v37 = vpack.c.bf16 %v119_v36, %v118_v35  ;;  %v67_v39 = vld [vmem:[%s5020_s22 + $0x18] sm:$0xff]  ;;  %v69_v41 = vld [vmem:[%s5020_s22 + $0x28] sm:$0xff]  ;;  %v68_v42 = vld [vmem:[%s5020_s22 + $0x20] sm:$0xff] }
  0x12   :  { %v71_v43 = vld [vmem:[%s5020_s22 + $0x38] sm:$0xff]  ;;  %v70_v44 = vld [vmem:[%s5020_s22 + $0x30] sm:$0xff]  ;;  %v73_v45 = vld [vmem:[%s5020_s22 + $0x48] sm:$0xff] }
  0x13   :  { %3071 = vmatpush1.bf16.msra.mxu0 %v3070_v9  ;;  %v72_v46 = vld [vmem:[%s5020_s22 + $0x40] sm:$0xff]  ;;  %v75_v47 = vld [vmem:[%s5020_s22 + $0x58] sm:$0xff]  ;;  %v74_v48 = vld [vmem:[%s5020_s22 + $0x50] sm:$0xff] }
  0x14   :  { %3072 = vmatprep.subr.bf16.mxu0 %v3452_v0  ;;  %v77_v49 = vld [vmem:[%s5020_s22 + $0x68] sm:$0xff]  ;;  %v76_v50 = vld [vmem:[%s5020_s22 + $0x60] sm:$0xff]  ;;  %v79_v51 = vld [vmem:[%s5020_s22 + $0x78] sm:$0xff] }
  0x15   :  { %v78_v52 = vld [vmem:[%s5020_s22 + $0x70] sm:$0xff]  ;;  %v81_v53 = vld [vmem:[%s5020_s22 + $0x88] sm:$0xff]  ;;  %v80_v54 = vld [vmem:[%s5020_s22 + $0x80] sm:$0xff] }
  0x16   :  { %v83_v55 = vld [vmem:[%s5020_s22 + $0x98] sm:$0xff]  ;;  %v82_v56 = vld [vmem:[%s5020_s22 + $0x90] sm:$0xff]  ;;  %v85_v57 = vld [vmem:[%s5020_s22 + $0xa8] sm:$0xff] }
  0x17   :  { %3074 = vmatpush1.bf16.msra.mxu0 %v3073_v13  ;;  %v84_v58 = vld [vmem:[%s5020_s22 + $0xa0] sm:$0xff]  ;;  %v87_v59 = vld [vmem:[%s5020_s22 + $0xb8] sm:$0xff]  ;;  %v86_v60 = vld [vmem:[%s5020_s22 + $0xb0] sm:$0xff] }
  0x18   :  { %3075 = vmatprep.subr.bf16.mxu0 %v3452_v0  ;;  %v89_v61 = vld [vmem:[%s5020_s22 + $0xc8] sm:$0xff]  ;;  %v88_v62 = vld [vmem:[%s5020_s22 + $0xc0] sm:$0xff]  ;;  %v91_v63 = vld [vmem:[%s5020_s22 + $0xd8] sm:$0xff] }
  0x19   :  { %v90_v1 = vld [vmem:[%s5020_s22 + $0xd0] sm:$0xff]  ;;  %v93_v2 = vld [vmem:[%s5020_s22 + $0xe8] sm:$0xff]  ;;  %v92_v3 = vld [vmem:[%s5020_s22 + $0xe0] sm:$0xff] }
  0x1a   :  { %v95_v4 = vld [vmem:[%s5020_s22 + $0xf8] sm:$0xff]  ;;  %v94_v5 = vld [vmem:[%s5020_s22 + $0xf0] sm:$0xff]  ;;  %v3758_v6 = vld [vmem:[%s5021_s3] ss:$0 sm:$0xff]  ;;  %s3453_s22 = smov 64  }
  0x1b   :  { %3077 = vmatpush1.bf16.msra.mxu0 %v3076_v16  ;;  %v764_v26 = vld [vmem:[%s5022_s25 + $0x80] sm:$0xff]  ;;  %v765_v27 = vld [vmem:[%s5022_s25 + $0x88] sm:$0xff] }
  0x1c   :  { %3078 = vmatprep.subr.bf16.mxu0 %v3452_v0  ;;  %v748_v29 = vld [vmem:[%s5022_s25] sm:$0xff]  ;;  %v749_v30 = vld [vmem:[%s5022_s25 + $0x8] sm:$0xff] }
  0x1d   :  { %v3101_v33 = vpack.c.bf16 %v749_v30, %v748_v29  ;;  %v844_v35 = vld [vmem:[%s5022_s25 + $0x300] sm:$0xff]  ;;  %v845_v36 = vld [vmem:[%s5022_s25 + $0x308] sm:$0xff] }
  0x1e   :  { %v773_v29 = vld [vmem:[%s5022_s25 + $0xc8] sm:$0xff] }
  0x1f   :  { %3080 = vmatpush1.bf16.msra.mxu0 %v3079_v19 }
  0x20   :  { %3081 = vmatprep.subr.bf16.mxu0 %v3452_v0 }
  0x23   :  { %3083 = vmatpush1.bf16.msra.mxu0 %v3082_v22 }
  0x24   :  { %3084 = vmatprep.subr.bf16.mxu0 %v3452_v0 }
  0x27   :  { %3086 = vmatpush1.bf16.msra.mxu0 %v3085_v25 }
  0x28   :  { %3087 = vmatprep.subr.bf16.mxu0 %v3452_v0 }
  0x2b   :  { %3089 = vmatpush1.bf16.msra.mxu0 %v3088_v28  ;;  %v3099_v28 = vpack.c.bf16 %v765_v27, %v764_v26 }
  0x2c   :  { %3090 = vmatprep.subr.bf16.mxu0 %v3452_v0 }
  0x2d   :  { %3100 = vmatprep.subr.bf16.mxu1 %v3099_v28  ;;  %v772_v28 = vld [vmem:[%s5022_s25 + $0xc0] sm:$0xff] }
  0x2e   :  { %3102 = vmatpush3.bf16.msra.mxu1 %v3101_v33  ;;  %v3115_v30 = vpack.c.bf16 %v773_v29, %v772_v28  ;;  %v868_v33 = vld [vmem:[%s5022_s25 + $0x3c0] sm:$0xff] }
  0x2f   :  { %3092 = vmatpush1.bf16.msra.mxu0 %v3091_v31  ;;  %v860_v31 = vld [vmem:[%s5022_s25 + $0x380] sm:$0xff] }
  0x30   :  { %3093 = vmatprep.subr.bf16.mxu0 %v3452_v0 }
  0x33   :  { %3095 = vmatpush1.bf16.msra.mxu0 %v3094_v34  ;;  %v861_v34 = vld [vmem:[%s5022_s25 + $0x388] sm:$0xff] }
  0x34   :  { %3096 = vmatprep.subr.bf16.mxu0 %v3452_v0 }
  0x37   :  { %3098 = vmatpush1.bf16.msra.mxu0 %v3097_v37 }
  0x3a   :  { %241 = vmatmul.mubr.f32.vlgmr.msra.gmra.mrb[0].mxu0 %v64_v38  ;;  %v3195_v38 = vpack.c.bf16 %v861_v34, %v860_v31  ;;  %v756_v31 = vld [vmem:[%s5022_s25 + $0x40] sm:$0xff] }
  0x3b   :  { %2517 = vmatprep.mubr.msk.f32.mxu0 %vm127_vm0, %v67_v39  ;;  %v3197_v39 = vpack.c.bf16 %v845_v36, %v844_v35  ;;  %v869_v36 = vld [vmem:[%s5022_s25 + $0x3c8] sm:$0xff] }
  0x3c   :  { %3196 = vmatprep.subr.bf16.mxu0 %v3195_v38  ;;  %v853_v38 = vld [vmem:[%s5022_s25 + $0x348] sm:$0xff] }
  0x3d   :  { %3198 = vmatpush3.bf16.msra.mxu0 %v3197_v39 }
  0x3e   :  { %246 = vmatmul.mubr.f32.gmra.mrb[2].mxu0 %v66_v40 }
  0x3f   :  { %2518 = vmatprep.mubr.msk.f32.mxu0 %vm127_vm0, %v69_v41 }
  0x42   :  { %251 = vmatmul.mubr.f32.gmra.mrb[4].mxu0 %v68_v42  ;;  %v766_v42 = vld [vmem:[%s5022_s25 + $0x90] sm:$0xff] }
  0x43   :  { %2519 = vmatprep.mubr.msk.f32.mxu0 %vm127_vm0, %v71_v43  ;;  %v767_v43 = vld [vmem:[%s5022_s25 + $0x98] sm:$0xff] }
  0x46   :  { %256 = vmatmul.mubr.f32.gmra.mrb[6].mxu0 %v70_v44  ;;  %v3103_v44 = vpack.c.bf16 %v767_v43, %v766_v42 }
  0x47   :  { %2520 = vmatprep.mubr.msk.f32.mxu0 %vm127_vm0, %v73_v45  ;;  %v750_v45 = vld [vmem:[%s5022_s25 + $0x10] sm:$0xff] }
  0x48   :  { %3104 = vmatprep.subr.bf16.mxu1 %v3103_v44 }
  0x4a   :  { %261 = vmatmul.mubr.f32.gmra.mrb[8].mxu0 %v72_v46  ;;  %v751_v46 = vld [vmem:[%s5022_s25 + $0x18] sm:$0xff] }
  0x4b   :  { %2521 = vmatprep.mubr.msk.f32.mxu0 %vm127_vm0, %v75_v47  ;;  %v862_v47 = vld [vmem:[%s5022_s25 + $0x390] sm:$0xff] }
  0x4e   :  { %266 = vmatmul.mubr.f32.gmra.mrb[10].mxu0 %v74_v48 }
  0x4f   :  { %2522 = vmatprep.mubr.msk.f32.mxu0 %vm127_vm0, %v77_v49  ;;  %v3105_v49 = vpack.c.bf16 %v751_v46, %v750_v45  ;;  %v774_v45 = vld [vmem:[%s5022_s25 + $0xd0] sm:$0xff]  ;;  %v775_v46 = vld [vmem:[%s5022_s25 + $0xd8] sm:$0xff] }
  0x51   :  { %3106 = vmatpush3.bf16.msra.mxu1 %v3105_v49  ;;  %v758_v49 = vld [vmem:[%s5022_s25 + $0x50] sm:$0xff] }
  0x52   :  { %271 = vmatmul.mubr.f32.gmra.mrb[12].mxu0 %v76_v50  ;;  %v863_v50 = vld [vmem:[%s5022_s25 + $0x398] sm:$0xff] }
  0x53   :  { %2523 = vmatprep.mubr.msk.f32.mxu0 %vm127_vm0, %v79_v51  ;;  %v846_v51 = vld [vmem:[%s5022_s25 + $0x310] sm:$0xff] }
  0x56   :  { %276 = vmatmul.mubr.f32.gmra.mrb[14].mxu0 %v78_v52  ;;  %v847_v52 = vld [vmem:[%s5022_s25 + $0x318] sm:$0xff] }
  0x57   :  { %2524 = vmatprep.mubr.msk.f32.mxu0 %vm127_vm0, %v81_v53 }
  0x5a   :  { %281 = vmatmul.mubr.f32.gmra.mrb[16].mxu0 %v80_v54  ;;  %v3199_v54 = vpack.c.bf16 %v863_v50, %v862_v47  ;;  %v759_v50 = vld [vmem:[%s5022_s25 + $0x58] sm:$0xff] }
  0x5b   :  { %2525 = vmatprep.mubr.msk.f32.mxu0 %vm127_vm0, %v83_v55  ;;  %v3201_v55 = vpack.c.bf16 %v847_v52, %v846_v51  ;;  %v870_v51 = vld [vmem:[%s5022_s25 + $0x3d0] sm:$0xff] }
  0x5c   :  { %3200 = vmatprep.subr.bf16.mxu0 %v3199_v54  ;;  %v3121_v54 = vpack.c.bf16 %v759_v50, %v758_v49  ;;  %v387_v49 = vlaneseq }
  0x5d   :  { %3202 = vmatpush3.bf16.msra.mxu0 %v3201_v55  ;;  %v871_v55 = vld [vmem:[%s5022_s25 + $0x3d8] sm:$0xff] }
  0x5e   :  { %286 = vmatmul.mubr.f32.gmra.mrb[18].mxu0 %v82_v56  ;;  %vm3995_vm2 = vcmp.lt.s32.totalorder %v387_v49, 256 }
  0x5f   :  { %2526 = vmatprep.mubr.msk.f32.mxu0 %vm127_vm0, %v85_v57 }
  0x62   :  { %291 = vmatmul.mubr.f32.gmra.mrb[20].mxu0 %v84_v58  ;;  %v768_v58 = vld [vmem:[%s5022_s25 + $0xa0] sm:$0xff] }
  0x63   :  { %2527 = vmatprep.mubr.msk.f32.mxu0 %vm127_vm0, %v87_v59  ;;  %v769_v59 = vld [vmem:[%s5022_s25 + $0xa8] sm:$0xff] }
  0x66   :  { %296 = vmatmul.mubr.f32.gmra.mrb[22].mxu0 %v86_v60  ;;  %v3107_v60 = vpack.c.bf16 %v769_v59, %v768_v58  ;;  %v3215_v58 = vpack.c.bf16 %v871_v55, %v870_v51 }
  0x67   :  { %2528 = vmatprep.mubr.msk.f32.mxu0 %vm127_vm0, %v89_v61  ;;  %v752_v61 = vld [vmem:[%s5022_s25 + $0x20] sm:$0xff] }
  0x68   :  { %3108 = vmatprep.subr.bf16.mxu1 %v3107_v60 }
  0x6a   :  { %301 = vmatmul.mubr.f32.gmra.mrb[24].mxu0 %v88_v62  ;;  %v753_v62 = vld [vmem:[%s5022_s25 + $0x28] sm:$0xff] }
  0x6b   :  { %2529 = vmatprep.mubr.msk.f32.mxu0 %vm127_vm0, %v91_v63  ;;  %v864_v63 = vld [vmem:[%s5022_s25 + $0x3a0] sm:$0xff] }
  0x6e   :  { %306 = vmatmul.mubr.f32.gmra.mrb[26].mxu0 %v90_v1 }
  0x6f   :  { %2530 = vmatprep.mubr.msk.f32.mxu0 %vm127_vm0, %v93_v2  ;;  %v3109_v2 = vpack.c.bf16 %v753_v62, %v752_v61  ;;  %v776_v61 = vld [vmem:[%s5022_s25 + $0xe0] sm:$0xff]  ;;  %v777_v62 = vld [vmem:[%s5022_s25 + $0xe8] sm:$0xff] }
  0x71   :  { %3110 = vmatpush3.bf16.msra.mxu1 %v3109_v2  ;;  %v760_v2 = vld [vmem:[%s5022_s25 + $0x60] sm:$0xff] }
  0x72   :  { %311 = vmatmul.mubr.f32.gmra.mrb[28].mxu0 %v92_v3  ;;  %v865_v3 = vld [vmem:[%s5022_s25 + $0x3a8] sm:$0xff] }
  0x73   :  { %2531 = vmatprep.mubr.msk.f32.mxu0 %vm127_vm0, %v95_v4  ;;  %v848_v4 = vld [vmem:[%s5022_s25 + $0x320] sm:$0xff] }
  0x76   :  { %316 = vmatmul.mubr.f32.gmra.mrb[30].mxu0 %v94_v5  ;;  %v849_v5 = vld [vmem:[%s5022_s25 + $0x328] sm:$0xff] }
 0x10d   :  { %v242_v7 = vpop.f32.mrb[0].mxu0 }
 0x10e   :  { %v243_v8 = vadd.f32 %v3758_v6, %v242_v7  ;;  %v244_v9 = vpop.f32.mrb[1].mxu0 }
 0x10f   :  { %v3205_v9 = vpack.c.bf16 %v849_v5, %v848_v4  ;;  %v872_v4 = vld [vmem:[%s5022_s25 + $0x3e0] sm:$0xff] }
 0x110   :  { %v321_v10 = vmax.f32 %v243_v8, 0.0  ;;  %v3203_v8 = vpack.c.bf16 %v865_v3, %v864_v63  ;;  %v761_v3 = vld [vmem:[%s5022_s25 + $0x68] sm:$0xff] }
 0x111   :  { %v247_v11 = vpop.f32.mrb[2].mxu0 }
 0x112   :  { %337 = vst.msk [vmem:[#allocation2] sm:$0xff] %vm127_vm0, %v321_v10  ;;  %v248_v12 = vadd.f32 %v3758_v6, %v247_v11  ;;  %v249_v13 = vpop.f32.mrb[3].mxu0  ;;  %3204 = vmatprep.subr.bf16.mxu0 %v3203_v8  ;;  %v3125_v8 = vpack.c.bf16 %v761_v3, %v760_v2 }
 0x113   :  { %v771_v13 = vld [vmem:[%s5022_s25 + $0xb8] sm:$0xff]  ;;  %3206 = vmatpush3.bf16.msra.mxu0 %v3205_v9  ;;  %v873_v9 = vld [vmem:[%s5022_s25 + $0x3e8] sm:$0xff] }
 0x114   :  { %v322_v14 = vmax.f32 %v248_v12, 0.0  ;;  %v770_v12 = vld [vmem:[%s5022_s25 + $0xb0] sm:$0xff] }
 0x115   :  { %v252_v15 = vpop.f32.mrb[4].mxu0 }
 0x116   :  { %338 = vst.msk [vmem:[#allocation2 + $0x20] sm:$0xff] %vm127_vm0, %v322_v14  ;;  %v253_v16 = vadd.f32 %v3758_v6, %v252_v15  ;;  %v254_v17 = vpop.f32.mrb[5].mxu0  ;;  %v3111_v14 = vpack.c.bf16 %v771_v13, %v770_v12  ;;  %v754_v15 = vld [vmem:[%s5022_s25 + $0x30] sm:$0xff]  ;;  %v3219_v12 = vpack.c.bf16 %v873_v9, %v872_v4 }
 0x117   :  { %v866_v17 = vld [vmem:[%s5022_s25 + $0x3b0] sm:$0xff] }
 0x118   :  { %v323_v18 = vmax.f32 %v253_v16, 0.0  ;;  %v755_v16 = vld [vmem:[%s5022_s25 + $0x38] sm:$0xff]  ;;  %3112 = vmatprep.subr.bf16.mxu1 %v3111_v14 }
 0x119   :  { %v257_v19 = vpop.f32.mrb[6].mxu0 }
 0x11a   :  { %v258_v20 = vadd.f32 %v3758_v6, %v257_v19  ;;  %v259_v21 = vpop.f32.mrb[7].mxu0  ;;  %341 = vrot.lane.b32.xlu0 %v323_v18, %s3453_s22  ;;  %v3113_v19 = vpack.c.bf16 %v755_v16, %v754_v15  ;;  %v778_v15 = vld [vmem:[%s5022_s25 + $0xf0] sm:$0xff]  ;;  %v779_v16 = vld [vmem:[%s5022_s25 + $0xf8] sm:$0xff] }
 0x11b   :  { %v850_v21 = vld [vmem:[%s5022_s25 + $0x330] sm:$0xff] }
 0x11c   :  { %v324_v22 = vmax.f32 %v258_v20, 0.0  ;;  %v867_v20 = vld [vmem:[%s5022_s25 + $0x3b8] sm:$0xff]  ;;  %3114 = vmatpush3.bf16.msra.mxu1 %v3113_v19  ;;  %v762_v19 = vld [vmem:[%s5022_s25 + $0x70] sm:$0xff] }
 0x11d   :  { %v262_v23 = vpop.f32.mrb[8].mxu0  ;;  %3116 = vmatprep.subr.bf16.mxu1 %v3115_v30 }
 0x11e   :  { %v263_v24 = vadd.f32 %v3758_v6, %v262_v23  ;;  %v264_v25 = vpop.f32.mrb[9].mxu0  ;;  %343 = vrot.lane.b32.xlu0 %v324_v22, %s3453_s22  ;;  %v851_v22 = vld [vmem:[%s5022_s25 + $0x338] sm:$0xff] }
 0x11f   :  { %v3209_v25 = vpack.c.bf16 %v851_v22, %v850_v21  ;;  %v874_v21 = vld [vmem:[%s5022_s25 + $0x3f0] sm:$0xff] }
 0x120   :  { %v325_v32 = vmax.f32 %v263_v24, 0.0  ;;  %v3207_v24 = vpack.c.bf16 %v867_v20, %v866_v17  ;;  %v763_v20 = vld [vmem:[%s5022_s25 + $0x78] sm:$0xff] }
 0x121   :  { %v267_v37 = vpop.f32.mrb[10].mxu0 }
 0x122   :  { %350 = vst.msk [vmem:[#allocation2 + $0x8] sm:$0xff] %vm127_vm0, %v325_v32  ;;  %v268_v40 = vadd.f32 %v3758_v6, %v267_v37  ;;  %v269_v41 = vpop.f32.mrb[11].mxu0  ;;  %3208 = vmatprep.subr.bf16.mxu0 %v3207_v24  ;;  %v757_v32 = vld [vmem:[%s5022_s25 + $0x48] sm:$0xff]  ;;  %v852_v37 = vld [vmem:[%s5022_s25 + $0x340] sm:$0xff]  ;;  %v3129_v24 = vpack.c.bf16 %v763_v20, %v762_v19 }
 0x123   :  { %3210 = vmatpush3.bf16.msra.mxu0 %v3209_v25  ;;  %v3117_v35 = vpack.c.bf16 %v757_v32, %v756_v31  ;;  %v3213_v41 = vpack.c.bf16 %v853_v38, %v852_v37  ;;  %v875_v25 = vld [vmem:[%s5022_s25 + $0x3f8] sm:$0xff] }
 0x124   :  { %v326_v48 = vmax.f32 %v268_v40, 0.0  ;;  %v3211_v40 = vpack.c.bf16 %v869_v36, %v868_v33  ;;  %v3223_v28 = vpack.c.bf16 %v875_v25, %v874_v21 }
 0x125   :  { %v272_v53 = vpop.f32.mrb[12].mxu0  ;;  %3118 = vmatpush3.bf16.msra.mxu1 %v3117_v35 }
 0x126   :  { %351 = vst.msk [vmem:[#allocation2 + $0x28] sm:$0xff] %vm127_vm0, %v326_v48  ;;  %v273_v56 = vadd.f32 %v3758_v6, %v272_v53  ;;  %v274_v57 = vpop.f32.mrb[13].mxu0  ;;  %3212 = vmatprep.subr.bf16.mxu0 %v3211_v40  ;;  %v3119_v48 = vpack.c.bf16 %v775_v46, %v774_v45  ;;  %v797_v40 = vld [vmem:[%s5022_s25 + $0x188] sm:$0xff] }
 0x127   :  { %3214 = vmatpush3.bf16.msra.mxu0 %v3213_v41  ;;  %v855_v57 = vld [vmem:[%s5022_s25 + $0x358] sm:$0xff] }
 0x128   :  { %v327_v1 = vmax.f32 %v273_v56, 0.0  ;;  %v854_v56 = vld [vmem:[%s5022_s25 + $0x350] sm:$0xff]  ;;  %3120 = vmatprep.subr.bf16.mxu1 %v3119_v48  ;;  %3216 = vmatprep.subr.bf16.mxu0 %v3215_v58 }
 0x129   :  { %v277_v7 = vpop.f32.mrb[14].mxu0  ;;  %v3217_v59 = vpack.c.bf16 %v855_v57, %v854_v56  ;;  %3122 = vmatpush3.bf16.msra.mxu1 %v3121_v54 }
 0x12a   :  { %v278_v10 = vadd.f32 %v3758_v6, %v277_v7  ;;  %v279_v11 = vpop.f32.mrb[15].mxu0  ;;  %354 = vrot.lane.b32.xlu1 %v327_v1, %s3453_s22  ;;  %v3123_v1 = vpack.c.bf16 %v777_v62, %v776_v61 }
 0x12b   :  { %3218 = vmatpush3.bf16.msra.mxu0 %v3217_v59  ;;  %v857_v11 = vld [vmem:[%s5022_s25 + $0x368] sm:$0xff] }
 0x12c   :  { %v328_v18 = vmax.f32 %v278_v10, 0.0  ;;  %v856_v10 = vld [vmem:[%s5022_s25 + $0x360] sm:$0xff]  ;;  %3124 = vmatprep.subr.bf16.mxu1 %v3123_v1  ;;  %3220 = vmatprep.subr.bf16.mxu0 %v3219_v12 }
 0x12d   :  { %v282_v23 = vpop.f32.mrb[16].mxu0  ;;  %v3221_v13 = vpack.c.bf16 %v857_v11, %v856_v10  ;;  %3126 = vmatpush3.bf16.msra.mxu1 %v3125_v8 }
 0x12e   :  { %v283_v26 = vadd.f32 %v3758_v6, %v282_v23  ;;  %v284_v27 = vpop.f32.mrb[17].mxu0  ;;  %356 = vrot.lane.b32.xlu1 %v328_v18, %s3453_s22  ;;  %v3127_v18 = vpack.c.bf16 %v779_v16, %v778_v15 }
 0x12f   :  { %3222 = vmatpush3.bf16.msra.mxu0 %v3221_v13  ;;  %v859_v27 = vld [vmem:[%s5022_s25 + $0x378] sm:$0xff] }
 0x130   :  { %v329_v34 = vmax.f32 %v283_v26, 0.0  ;;  %v858_v26 = vld [vmem:[%s5022_s25 + $0x370] sm:$0xff]  ;;  %3128 = vmatprep.subr.bf16.mxu1 %v3127_v18  ;;  %3224 = vmatprep.subr.bf16.mxu0 %v3223_v28 }
 0x131   :  { %v287_v39 = vpop.f32.mrb[18].mxu0  ;;  %v3225_v29 = vpack.c.bf16 %v859_v27, %v858_v26  ;;  %3130 = vmatpush3.bf16.msra.mxu1 %v3129_v24 }
 0x132   :  { %362 = vst.msk [vmem:[#allocation2 + $0x10] sm:$0xff] %vm127_vm0, %v329_v34  ;;  %v288_v42 = vadd.f32 %v3758_v6, %v287_v39  ;;  %v289_v43 = vpop.f32.mrb[19].mxu0  ;;  %v796_v39 = vld [vmem:[%s5022_s25 + $0x180] sm:$0xff] }
 0x133   :  { %3226 = vmatpush3.bf16.msra.mxu0 %v3225_v29 }
 0x134   :  { %v330_v44 = vmax.f32 %v288_v42, 0.0  ;;  %v3131_v42 = vpack.c.bf16 %v797_v40, %v796_v39 }
 0x135   :  { %v292_v47 = vpop.f32.mrb[20].mxu0 }
 0x136   :  { %363 = vst.msk [vmem:[#allocation2 + $0x30] sm:$0xff] %vm127_vm0, %v330_v44  ;;  %v293_v52 = vadd.f32 %v3758_v6, %v292_v47  ;;  %v294_v53 = vpop.f32.mrb[21].mxu0  ;;  %3132 = vmatprep.subr.bf16.mxu1 %v3131_v42 }
 0x138   :  { %v331_v60 = vmax.f32 %v293_v52, 0.0 }
 0x139   :  { %v297_v63 = vpop.f32.mrb[22].mxu0 }
 0x13a   :  { %v298_v5 = vadd.f32 %v3758_v6, %v297_v63  ;;  %366 = vrot.lane.b32.xlu0 %v331_v60, %s3453_s22  ;;  %v299_v7 = vpop.f32.mrb[23].mxu0 }
 0x13c   :  { %v332_v14 = vmax.f32 %v298_v5, 0.0 }
 0x13d   :  { %v302_v17 = vpop.f32.mrb[24].mxu0 }
 0x13e   :  { %368 = vrot.lane.b32.xlu1 %v332_v14, %s3453_s22  ;;  %v303_v22 = vadd.f32 %v3758_v6, %v302_v17  ;;  %v304_v23 = vpop.f32.mrb[25].mxu0 }
 0x140   :  { %v333_v30 = vmax.f32 %v303_v22, 0.0 }
 0x141   :  { %v307_v31 = vpop.f32.mrb[26].mxu0 }
 0x142   :  { %374 = vst.msk [vmem:[#allocation2 + $0x18] sm:$0xff] %vm127_vm0, %v333_v30  ;;  %v308_v32 = vadd.f32 %v3758_v6, %v307_v31  ;;  %v309_v33 = vpop.f32.mrb[27].mxu0 }
 0x144   :  { %v334_v34 = vmax.f32 %v308_v32, 0.0 }
 0x145   :  { %v312_v35 = vpop.f32.mrb[28].mxu0 }
 0x146   :  { %375 = vst.msk [vmem:[#allocation2 + $0x38] sm:$0xff] %vm127_vm0, %v334_v34  ;;  %v313_v36 = vadd.f32 %v3758_v6, %v312_v35  ;;  %v314_v37 = vpop.f32.mrb[29].mxu0 }
 0x148   :  { %v335_v38 = vmax.f32 %v313_v36, 0.0 }
 0x149   :  { %v317_v41 = vpop.f32.mrb[30].mxu0 }
 0x14a   :  { %v318_v43 = vadd.f32 %v3758_v6, %v317_v41  ;;  %378 = vrot.lane.b32.xlu0 %v335_v38, %s3453_s22  ;;  %v319_v44 = vpop.f32.mrb[31].mxu0  ;;  %v805_v6 = vld [vmem:[%s5022_s25 + $0x1c8] sm:$0xff] }
 0x14c   :  { %v336_v45 = vmax.f32 %v318_v43, 0.0 }
 0x14e   :  { %380 = vrot.lane.b32.xlu1 %v336_v45, %s3453_s22  ;;  %v780_v45 = vld [vmem:[%s5022_s25 + $0x100] sm:$0xff] }
 0x18c   :  { %v342_v46 = vpop.permute.xlu0 %341 }
 0x18d   :  { %348 = vst.msk [vmem:[#allocation2] sm:$0xff] %vm347_vm1, %v342_v46  ;;  %v781_v46 = vld [vmem:[%s5022_s25 + $0x108] sm:$0xff] }
 0x190   :  { %v344_v47 = vpop.permute.xlu0 %343 }
 0x191   :  { %349 = vst.msk [vmem:[#allocation2 + $0x20] sm:$0xff] %vm347_vm1, %v344_v47 }
 0x19c   :  { %v355_v48 = vpop.permute.xlu1 %354 }
 0x19d   :  { %360 = vst.msk [vmem:[#allocation2 + $0x8] sm:$0xff] %vm347_vm1, %v355_v48 }
 0x1a0   :  { %v357_v50 = vpop.permute.xlu1 %356 }
 0x1a1   :  { %361 = vst.msk [vmem:[#allocation2 + $0x28] sm:$0xff] %vm347_vm1, %v357_v50  ;;  %v798_v50 = vld [vmem:[%s5022_s25 + $0x190] sm:$0xff] }
 0x1a4   :  { %v479_v51 = vld [vmem:[#allocation2 + $0x1] ss:$8 sm:$0x3]  ;;  %v484_v52 = vld [vmem:[#allocation2 + $0x3] ss:$8 sm:$0x3] }
 0x1a5   :  { %v489_v53 = vld [vmem:[#allocation2 + $0x5] ss:$8 sm:$0x3]  ;;  %v568_v54 = vld [vmem:[#allocation2 + $0x2] ss:$8 sm:$0x3] }
 0x1a6   :  { %481 = vst.msk [vmem:[#allocation3 + $0x10] ss:$8 sm:$0x3] %vm3995_vm2, %v479_v51  ;;  %486 = vst.msk [vmem:[#allocation3 + $0x11] ss:$8 sm:$0x3] %vm3995_vm2, %v484_v52 }
 0x1a7   :  { %v572_v55 = vld [vmem:[#allocation2 + $0x4] ss:$8 sm:$0x3]  ;;  %v577_v56 = vld [vmem:[#allocation2 + $0x6] ss:$8 sm:$0x3] }
 0x1a8   :  { %491 = vst.msk [vmem:[#allocation3 + $0x12] ss:$8 sm:$0x3] %vm3995_vm2, %v489_v53  ;;  %570 = vst.msk [vmem:[#allocation3 + $0x20] ss:$8 sm:$0x3] %vm3995_vm2, %v568_v54 }
 0x1a9   :  { %v646_v57 = vld [vmem:[#allocation2 + $0x3] ss:$8 sm:$0x3]  ;;  %v650_v58 = vld [vmem:[#allocation2 + $0x5] ss:$8 sm:$0x3] }
 0x1aa   :  { %574 = vst.msk [vmem:[#allocation3 + $0x21] ss:$8 sm:$0x3] %vm3995_vm2, %v572_v55  ;;  %579 = vst.msk [vmem:[#allocation3 + $0x22] ss:$8 sm:$0x3] %vm3995_vm2, %v577_v56 }
 0x1ab   :  { %v655_v59 = vld [vmem:[#allocation2 + $0x7] ss:$8 sm:$0x3]  ;;  %v494_v60 = vld [vmem:[#allocation2 + $0x21] ss:$8 sm:$0x3] }
 0x1ac   :  { %648 = vst.msk [vmem:[#allocation3 + $0x30] ss:$8 sm:$0x3] %vm3995_vm2, %v646_v57  ;;  %652 = vst.msk [vmem:[#allocation3 + $0x31] ss:$8 sm:$0x3] %vm3995_vm2, %v650_v58  ;;  %v367_v7 = vpop.permute.xlu0 %366 }
 0x1ad   :  { %v499_v61 = vld [vmem:[#allocation2 + $0x23] ss:$8 sm:$0x3]  ;;  %v504_v62 = vld [vmem:[#allocation2 + $0x25] ss:$8 sm:$0x3] }
 0x1ae   :  { %496 = vst.msk [vmem:[#allocation3 + $0x13] ss:$8 sm:$0x3] %vm3995_vm2, %v494_v60  ;;  %657 = vst.msk [vmem:[#allocation3 + $0x32] ss:$8 sm:$0x3] %vm3995_vm2, %v655_v59 }
 0x1af   :  { %v581_v63 = vld [vmem:[#allocation2 + $0x22] ss:$8 sm:$0x3]  ;;  %v585_v1 = vld [vmem:[#allocation2 + $0x24] ss:$8 sm:$0x3] }
 0x1b0   :  { %501 = vst.msk [vmem:[#allocation3 + $0x14] ss:$8 sm:$0x3] %vm3995_vm2, %v499_v61  ;;  %506 = vst.msk [vmem:[#allocation3 + $0x15] ss:$8 sm:$0x3] %vm3995_vm2, %v504_v62  ;;  %v369_v14 = vpop.permute.xlu1 %368  ;;  %v3133_v62 = vpack.c.bf16 %v781_v46, %v780_v45 }
 0x1b1   :  { %v590_v2 = vld [vmem:[#allocation2 + $0x26] ss:$8 sm:$0x3]  ;;  %v659_v3 = vld [vmem:[#allocation2 + $0x23] ss:$8 sm:$0x3] }
 0x1b2   :  { %583 = vst.msk [vmem:[#allocation3 + $0x23] ss:$8 sm:$0x3] %vm3995_vm2, %v581_v63  ;;  %587 = vst.msk [vmem:[#allocation3 + $0x24] ss:$8 sm:$0x3] %vm3995_vm2, %v585_v1 }
 0x1b3   :  { %v663_v4 = vld [vmem:[#allocation2 + $0x25] ss:$8 sm:$0x3]  ;;  %v668_v5 = vld [vmem:[#allocation2 + $0x27] ss:$8 sm:$0x3] }
 0x1b4   :  { %592 = vst.msk [vmem:[#allocation3 + $0x25] ss:$8 sm:$0x3] %vm3995_vm2, %v590_v2  ;;  %661 = vst.msk [vmem:[#allocation3 + $0x33] ss:$8 sm:$0x3] %vm3995_vm2, %v659_v3 }
 0x1b5   :  { %372 = vst.msk [vmem:[#allocation2 + $0x10] sm:$0xff] %vm347_vm1, %v367_v7  ;;  %v386_v8 = vld [vmem:[#allocation2] ss:$8 sm:$0x3]  ;;  %373 = vst.msk [vmem:[#allocation2 + $0x30] sm:$0xff] %vm347_vm1, %v369_v14  ;;  %v799_v51 = vld [vmem:[%s5022_s25 + $0x198] sm:$0xff] }
 0x1b6   :  { %v394_v9 = vld [vmem:[#allocation2 + $0x2] ss:$8 sm:$0x3]  ;;  %665 = vst.msk [vmem:[#allocation3 + $0x34] ss:$8 sm:$0x3] %vm3995_vm2, %v663_v4 }
 0x1b7   :  { %670 = vst.msk [vmem:[#allocation3 + $0x35] ss:$8 sm:$0x3] %vm3995_vm2, %v668_v5  ;;  %391 = vst.msk [vmem:[#allocation3] ss:$8 sm:$0x3] %vm3995_vm2, %v386_v8  ;;  %v3135_v5 = vpack.c.bf16 %v799_v51, %v798_v50 }
 0x1b8   :  { %396 = vst.msk [vmem:[#allocation3 + $0x1] ss:$8 sm:$0x3] %vm3995_vm2, %v394_v9  ;;  %v399_v10 = vld [vmem:[#allocation2 + $0x4] ss:$8 sm:$0x3] }
 0x1b9   :  { %v404_v11 = vld [vmem:[#allocation2 + $0x20] ss:$8 sm:$0x3]  ;;  %401 = vst.msk [vmem:[#allocation3 + $0x2] ss:$8 sm:$0x3] %vm3995_vm2, %v399_v10 }
 0x1ba   :  { %406 = vst.msk [vmem:[#allocation3 + $0x3] ss:$8 sm:$0x3] %vm3995_vm2, %v404_v11  ;;  %v409_v12 = vld [vmem:[#allocation2 + $0x22] ss:$8 sm:$0x3] }
 0x1bb   :  { %v414_v13 = vld [vmem:[#allocation2 + $0x24] ss:$8 sm:$0x3]  ;;  %411 = vst.msk [vmem:[#allocation3 + $0x4] ss:$8 sm:$0x3] %vm3995_vm2, %v409_v12 }
 0x1bc   :  { %416 = vst.msk [vmem:[#allocation3 + $0x5] ss:$8 sm:$0x3] %vm3995_vm2, %v414_v13  ;;  %v429_v15 = vld [vmem:[#allocation2 + $0xc] ss:$8 sm:$0x3]  ;;  %v379_v33 = vpop.permute.xlu0 %378 }
 0x1bd   :  { %v509_v16 = vld [vmem:[#allocation2 + $0x9] ss:$8 sm:$0x3]  ;;  %v514_v17 = vld [vmem:[#allocation2 + $0xb] ss:$8 sm:$0x3] }
 0x1be   :  { %v519_v18 = vld [vmem:[#allocation2 + $0xd] ss:$8 sm:$0x3]  ;;  %431 = vst.msk [vmem:[#allocation3 + $0x40] ss:$8 sm:$0x3] %vm3995_vm2, %v429_v15 }
 0x1bf   :  { %511 = vst.msk [vmem:[#allocation3 + $0x16] ss:$8 sm:$0x3] %vm3995_vm2, %v509_v16  ;;  %v594_v19 = vld [vmem:[#allocation2 + $0xa] ss:$8 sm:$0x3] }
 0x1c0   :  { %v598_v20 = vld [vmem:[#allocation2 + $0xc] ss:$8 sm:$0x3]  ;;  %516 = vst.msk [vmem:[#allocation3 + $0x17] ss:$8 sm:$0x3] %vm3995_vm2, %v514_v17  ;;  %v381_v42 = vpop.permute.xlu1 %380 }
 0x1c1   :  { %521 = vst.msk [vmem:[#allocation3 + $0x50] ss:$8 sm:$0x3] %vm3995_vm2, %v519_v18  ;;  %v603_v21 = vld [vmem:[#allocation2 + $0xe] ss:$8 sm:$0x3] }
 0x1c2   :  { %v672_v22 = vld [vmem:[#allocation2 + $0xb] ss:$8 sm:$0x3]  ;;  %596 = vst.msk [vmem:[#allocation3 + $0x26] ss:$8 sm:$0x3] %vm3995_vm2, %v594_v19 }
 0x1c3   :  { %600 = vst.msk [vmem:[#allocation3 + $0x27] ss:$8 sm:$0x3] %vm3995_vm2, %v598_v20  ;;  %v676_v23 = vld [vmem:[#allocation2 + $0xd] ss:$8 sm:$0x3] }
 0x1c4   :  { %v681_v24 = vld [vmem:[#allocation2 + $0xf] ss:$8 sm:$0x3]  ;;  %605 = vst.msk [vmem:[#allocation3 + $0x60] ss:$8 sm:$0x3] %vm3995_vm2, %v603_v21 }
 0x1c5   :  { %674 = vst.msk [vmem:[#allocation3 + $0x36] ss:$8 sm:$0x3] %vm3995_vm2, %v672_v22  ;;  %v434_v25 = vld [vmem:[#allocation2 + $0x28] ss:$8 sm:$0x3] }
 0x1c6   :  { %v439_v26 = vld [vmem:[#allocation2 + $0x2a] ss:$8 sm:$0x3]  ;;  %678 = vst.msk [vmem:[#allocation3 + $0x37] ss:$8 sm:$0x3] %vm3995_vm2, %v676_v23 }
 0x1c7   :  { %683 = vst.msk [vmem:[#allocation3 + $0x70] ss:$8 sm:$0x3] %vm3995_vm2, %v681_v24  ;;  %v444_v27 = vld [vmem:[#allocation2 + $0x2c] ss:$8 sm:$0x3] }
 0x1c8   :  { %v524_v28 = vld [vmem:[#allocation2 + $0x29] ss:$8 sm:$0x3]  ;;  %436 = vst.msk [vmem:[#allocation3 + $0x41] ss:$8 sm:$0x3] %vm3995_vm2, %v434_v25 }
 0x1c9   :  { %441 = vst.msk [vmem:[#allocation3 + $0x42] ss:$8 sm:$0x3] %vm3995_vm2, %v439_v26  ;;  %v529_v29 = vld [vmem:[#allocation2 + $0x2b] ss:$8 sm:$0x3] }
 0x1ca   :  { %v534_v30 = vld [vmem:[#allocation2 + $0x2d] ss:$8 sm:$0x3]  ;;  %446 = vst.msk [vmem:[#allocation3 + $0x43] ss:$8 sm:$0x3] %vm3995_vm2, %v444_v27 }
 0x1cb   :  { %526 = vst.msk [vmem:[#allocation3 + $0x51] ss:$8 sm:$0x3] %vm3995_vm2, %v524_v28  ;;  %v607_v31 = vld [vmem:[#allocation2 + $0x2a] ss:$8 sm:$0x3] }
 0x1cc   :  { %v611_v32 = vld [vmem:[#allocation2 + $0x2c] ss:$8 sm:$0x3]  ;;  %531 = vst.msk [vmem:[#allocation3 + $0x52] ss:$8 sm:$0x3] %vm3995_vm2, %v529_v29 }
 0x1cd   :  { %536 = vst.msk [vmem:[#allocation3 + $0x53] ss:$8 sm:$0x3] %vm3995_vm2, %v534_v30  ;;  %v616_v34 = vld [vmem:[#allocation2 + $0x2e] ss:$8 sm:$0x3] }
 0x1ce   :  { %v685_v35 = vld [vmem:[#allocation2 + $0x2b] ss:$8 sm:$0x3]  ;;  %384 = vst.msk [vmem:[#allocation2 + $0x18] sm:$0xff] %vm347_vm1, %v379_v33  ;;  %v731_v40 = vld [vmem:[#allocation3 + $0x38] sm:$0xff]  ;;  %385 = vst.msk [vmem:[#allocation2 + $0x38] sm:$0xff] %vm347_vm1, %v381_v42 }
 0x1cf   :  { %609 = vst.msk [vmem:[#allocation3 + $0x61] ss:$8 sm:$0x3] %vm3995_vm2, %v607_v31  ;;  %613 = vst.msk [vmem:[#allocation3 + $0x62] ss:$8 sm:$0x3] %vm3995_vm2, %v611_v32  ;;  %1187 = vmatprep.mubr.f32.mxu0 %v731_v40 }
 0x1d0   :  { %v689_v36 = vld [vmem:[#allocation2 + $0x2d] ss:$8 sm:$0x3]  ;;  %v694_v37 = vld [vmem:[#allocation2 + $0x2f] ss:$8 sm:$0x3] }
 0x1d1   :  { %618 = vst.msk [vmem:[#allocation3 + $0x63] ss:$8 sm:$0x3] %vm3995_vm2, %v616_v34  ;;  %687 = vst.msk [vmem:[#allocation3 + $0x71] ss:$8 sm:$0x3] %vm3995_vm2, %v685_v35 }
 0x1d2   :  { %v419_v38 = vld [vmem:[#allocation2 + $0x8] ss:$8 sm:$0x3]  ;;  %v424_v39 = vld [vmem:[#allocation2 + $0xa] ss:$8 sm:$0x3] }
 0x1d3   :  { %691 = vst.msk [vmem:[#allocation3 + $0x72] ss:$8 sm:$0x3] %vm3995_vm2, %v689_v36  ;;  %696 = vst.msk [vmem:[#allocation3 + $0x73] ss:$8 sm:$0x3] %vm3995_vm2, %v694_v37 }
 0x1d4   :  { %421 = vst.msk [vmem:[#allocation3 + $0x6] ss:$8 sm:$0x3] %vm3995_vm2, %v419_v38  ;;  %426 = vst.msk [vmem:[#allocation3 + $0x7] ss:$8 sm:$0x3] %vm3995_vm2, %v424_v39 }
 0x1d5   :  { %v730_v41 = vld [vmem:[#allocation3 + $0x30] sm:$0xff]  ;;  %v783_v59 = vld [vmem:[%s5022_s25 + $0x118] sm:$0xff]  ;;  %v800_v63 = vld [vmem:[%s5022_s25 + $0x1a0] sm:$0xff] }
 0x1d6   :  { %1188 = vmatmul.mubr.f32.vlgmr.msra.gmra.mrb[32].mxu0 %v730_v41  ;;  %v449_v43 = vld [vmem:[#allocation2 + $0x10] ss:$8 sm:$0x3]  ;;  %v454_v44 = vld [vmem:[#allocation2 + $0x12] ss:$8 sm:$0x3] }
 0x1d7   :  { %v459_v47 = vld [vmem:[#allocation2 + $0x14] ss:$8 sm:$0x3]  ;;  %v539_v48 = vld [vmem:[#allocation2 + $0x11] ss:$8 sm:$0x3] }
 0x1d8   :  { %451 = vst.msk [vmem:[#allocation3 + $0x44] ss:$8 sm:$0x3] %vm3995_vm2, %v449_v43  ;;  %456 = vst.msk [vmem:[#allocation3 + $0x45] ss:$8 sm:$0x3] %vm3995_vm2, %v454_v44 }
 0x1d9   :  { %v544_v52 = vld [vmem:[#allocation2 + $0x13] ss:$8 sm:$0x3]  ;;  %v549_v53 = vld [vmem:[#allocation2 + $0x15] ss:$8 sm:$0x3] }
 0x1da   :  { %461 = vst.msk [vmem:[#allocation3 + $0x46] ss:$8 sm:$0x3] %vm3995_vm2, %v459_v47  ;;  %541 = vst.msk [vmem:[#allocation3 + $0x54] ss:$8 sm:$0x3] %vm3995_vm2, %v539_v48 }
 0x1db   :  { %v620_v54 = vld [vmem:[#allocation2 + $0x12] ss:$8 sm:$0x3]  ;;  %v624_v55 = vld [vmem:[#allocation2 + $0x14] ss:$8 sm:$0x3] }
 0x1dc   :  { %546 = vst.msk [vmem:[#allocation3 + $0x55] ss:$8 sm:$0x3] %vm3995_vm2, %v544_v52  ;;  %551 = vst.msk [vmem:[#allocation3 + $0x56] ss:$8 sm:$0x3] %vm3995_vm2, %v549_v53 }
 0x1dd   :  { %v629_v56 = vld [vmem:[#allocation2 + $0x16] ss:$8 sm:$0x3]  ;;  %v698_v57 = vld [vmem:[#allocation2 + $0x13] ss:$8 sm:$0x3] }
 0x1de   :  { %622 = vst.msk [vmem:[#allocation3 + $0x64] ss:$8 sm:$0x3] %vm3995_vm2, %v620_v54  ;;  %626 = vst.msk [vmem:[#allocation3 + $0x65] ss:$8 sm:$0x3] %vm3995_vm2, %v624_v55 }
 0x1df   :  { %v782_v58 = vld [vmem:[%s5022_s25 + $0x110] sm:$0xff]  ;;  %631 = vst.msk [vmem:[#allocation3 + $0x66] ss:$8 sm:$0x3] %vm3995_vm2, %v629_v56  ;;  %v801_v1 = vld [vmem:[%s5022_s25 + $0x1a8] sm:$0xff]  ;;  %v724_v3 = vld [vmem:[#allocation3] sm:$0xff] }
 0x1e0   :  { %v702_v60 = vld [vmem:[#allocation2 + $0x15] ss:$8 sm:$0x3]  ;;  %v707_v61 = vld [vmem:[#allocation2 + $0x17] ss:$8 sm:$0x3]  ;;  %v3137_v15 = vpack.c.bf16 %v783_v59, %v782_v58  ;;  %v3139_v20 = vpack.c.bf16 %v801_v1, %v800_v63 }
 0x1e1   :  { %700 = vst.msk [vmem:[#allocation3 + $0x74] ss:$8 sm:$0x3] %vm3995_vm2, %v698_v57  ;;  %v725_v2 = vld [vmem:[#allocation3 + $0x8] sm:$0xff]  ;;  %v784_v11 = vld [vmem:[%s5022_s25 + $0x120] sm:$0xff]  ;;  %v802_v16 = vld [vmem:[%s5022_s25 + $0x1b0] sm:$0xff] }
 0x1e2   :  { %704 = vst.msk [vmem:[#allocation3 + $0x75] ss:$8 sm:$0x3] %vm3995_vm2, %v702_v60  ;;  %709 = vst.msk [vmem:[#allocation3 + $0x76] ss:$8 sm:$0x3] %vm3995_vm2, %v707_v61  ;;  %947 = vmatprep.mubr.f32.mxu1 %v725_v2 }
 0x1e3   :  { %v464_v4 = vld [vmem:[#allocation2 + $0x30] ss:$8 sm:$0x3]  ;;  %v469_v7 = vld [vmem:[#allocation2 + $0x32] ss:$8 sm:$0x3]  ;;  %948 = vmatmul.mubr.f32.vlgmr.msra.gmra.mrb[0].mxu1 %v724_v3 }
 0x1e4   :  { %v474_v8 = vld [vmem:[#allocation2 + $0x34] ss:$8 sm:$0x3]  ;;  %466 = vst.msk [vmem:[#allocation3 + $0x47] ss:$8 sm:$0x3] %vm3995_vm2, %v464_v4  ;;  %3134 = vmatpush3.bf16.msra.mxu1 %v3133_v62 }
 0x1e5   :  { %v554_v9 = vld [vmem:[#allocation2 + $0x31] ss:$8 sm:$0x3]  ;;  %v559_v10 = vld [vmem:[#allocation2 + $0x33] ss:$8 sm:$0x3]  ;;  %3136 = vmatprep.subr.bf16.mxu1 %v3135_v5 }
 0x1e6   :  { %471 = vst.msk [vmem:[#allocation3 + $0x80] ss:$8 sm:$0x3] %vm3995_vm2, %v469_v7  ;;  %476 = vst.msk [vmem:[#allocation3 + $0x81] ss:$8 sm:$0x3] %vm3995_vm2, %v474_v8 }
 0x1e7   :  { %v785_v12 = vld [vmem:[%s5022_s25 + $0x128] sm:$0xff]  ;;  %v564_v13 = vld [vmem:[#allocation2 + $0x35] ss:$8 sm:$0x3]  ;;  %v804_v30 = vld [vmem:[%s5022_s25 + $0x1c0] sm:$0xff] }
 0x1e8   :  { %v633_v14 = vld [vmem:[#allocation2 + $0x32] ss:$8 sm:$0x3]  ;;  %556 = vst.msk [vmem:[#allocation3 + $0x57] ss:$8 sm:$0x3] %vm3995_vm2, %v554_v9  ;;  %3138 = vmatpush3.bf16.msra.mxu1 %v3137_v15  ;;  %v3141_v24 = vpack.c.bf16 %v785_v12, %v784_v11  ;;  %v3147_v34 = vpack.c.bf16 %v805_v6, %v804_v30 }
 0x1e9   :  { %561 = vst.msk [vmem:[#allocation3 + $0x90] ss:$8 sm:$0x3] %vm3995_vm2, %v559_v10  ;;  %v803_v17 = vld [vmem:[%s5022_s25 + $0x1b8] sm:$0xff]  ;;  %v786_v25 = vld [vmem:[%s5022_s25 + $0x130] sm:$0xff]  ;;  %3140 = vmatprep.subr.bf16.mxu1 %v3139_v20  ;;  %v788_v33 = vld [vmem:[%s5022_s25 + $0x140] sm:$0xff] }
 0x1ea   :  { %v637_v18 = vld [vmem:[#allocation2 + $0x34] ss:$8 sm:$0x3]  ;;  %v642_v19 = vld [vmem:[#allocation2 + $0x36] ss:$8 sm:$0x3]  ;;  %v3143_v26 = vpack.c.bf16 %v803_v17, %v802_v16 }
 0x1eb   :  { %566 = vst.msk [vmem:[#allocation3 + $0x91] ss:$8 sm:$0x3] %vm3995_vm2, %v564_v13  ;;  %635 = vst.msk [vmem:[#allocation3 + $0x67] ss:$8 sm:$0x3] %vm3995_vm2, %v633_v14 }
 0x1ec   :  { %v711_v21 = vld [vmem:[#allocation2 + $0x33] ss:$8 sm:$0x3]  ;;  %v715_v22 = vld [vmem:[#allocation2 + $0x35] ss:$8 sm:$0x3]  ;;  %3142 = vmatpush3.bf16.msra.mxu1 %v3141_v24 }
 0x1ed   :  { %639 = vst.msk [vmem:[#allocation3 + $0xa0] ss:$8 sm:$0x3] %vm3995_vm2, %v637_v18  ;;  %644 = vst.msk [vmem:[#allocation3 + $0xa1] ss:$8 sm:$0x3] %vm3995_vm2, %v642_v19  ;;  %3144 = vmatprep.subr.bf16.mxu1 %v3143_v26 }
 0x1ee   :  { %v720_v23 = vld [vmem:[#allocation2 + $0x37] ss:$8 sm:$0x3]  ;;  %713 = vst.msk [vmem:[#allocation3 + $0x77] ss:$8 sm:$0x3] %vm3995_vm2, %v711_v21 }
 0x1ef   :  { %717 = vst.msk [vmem:[#allocation3 + $0xb0] ss:$8 sm:$0x3] %vm3995_vm2, %v715_v22  ;;  %722 = vst.msk [vmem:[#allocation3 + $0xb1] ss:$8 sm:$0x3] %vm3995_vm2, %v720_v23 }
 0x1f0   :  { %v787_v27 = vld [vmem:[%s5022_s25 + $0x138] sm:$0xff]  ;;  %v733_v28 = vld [vmem:[#allocation3 + $0x48] sm:$0xff]  ;;  %v732_v29 = vld [vmem:[#allocation3 + $0x40] sm:$0xff] }
 0x1f1   :  { %952 = vmatprep.mubr.f32.mxu1 %v733_v28  ;;  %v741_v31 = vld [vmem:[#allocation3 + $0x88] sm:$0x3]  ;;  %v3145_v32 = vpack.c.bf16 %v787_v27, %v786_v25  ;;  %v806_v36 = vld [vmem:[%s5022_s25 + $0x1d0] sm:$0xff]  ;;  %v807_v37 = vld [vmem:[%s5022_s25 + $0x1d8] sm:$0xff] }
 0x1f2   :  { %953 = vmatmul.mubr.f32.gmra.mrb[2].mxu1 %v732_v29  ;;  %v789_v35 = vld [vmem:[%s5022_s25 + $0x148] sm:$0xff]  ;;  %v740_v40 = vld [vmem:[#allocation3 + $0x80] sm:$0x3]  ;;  %v3151_v43 = vpack.c.bf16 %v807_v37, %v806_v36  ;;  %v790_v44 = vld [vmem:[%s5022_s25 + $0x150] sm:$0xff] }
 0x1f3   :  { %957 = vmatprep.mubr.f32.mxu1 %v741_v31  ;;  %3146 = vmatpush3.bf16.msra.mxu1 %v3145_v32  ;;  %v3149_v41 = vpack.c.bf16 %v789_v35, %v788_v33  ;;  %v791_v45 = vld [vmem:[%s5022_s25 + $0x158] sm:$0xff]  ;;  %v808_v47 = vld [vmem:[%s5022_s25 + $0x1e0] sm:$0xff]  ;;  %v809_v48 = vld [vmem:[%s5022_s25 + $0x1e8] sm:$0xff] }
 0x1f4   :  { %3148 = vmatprep.subr.bf16.mxu1 %v3147_v34  ;;  %v727_v46 = vld [vmem:[#allocation3 + $0x18] sm:$0xff]  ;;  %v3153_v51 = vpack.c.bf16 %v791_v45, %v790_v44  ;;  %v3155_v52 = vpack.c.bf16 %v809_v48, %v808_v47  ;;  %v792_v53 = vld [vmem:[%s5022_s25 + $0x160] sm:$0xff]  ;;  %v793_v54 = vld [vmem:[%s5022_s25 + $0x168] sm:$0xff] }
 0x1f5   :  { %v739_v38 = vld [vmem:[#allocation3 + $0x78] sm:$0xff]  ;;  %v738_v39 = vld [vmem:[#allocation3 + $0x70] sm:$0xff]  ;;  %v3157_v57 = vpack.c.bf16 %v793_v54, %v792_v53  ;;  %v828_v61 = vld [vmem:[%s5022_s25 + $0x280] sm:$0xff] }
 0x1f6   :  { %1192 = vmatprep.mubr.f32.mxu0 %v739_v38  ;;  %958 = vmatmul.mubr.f32.gmra.mrb[4].mxu1 %v740_v40  ;;  %v747_v42 = vld [vmem:[#allocation3 + $0xb8] sm:$0x3]  ;;  %v746_v50 = vld [vmem:[#allocation3 + $0xb0] sm:$0x3]  ;;  %v829_v62 = vld [vmem:[%s5022_s25 + $0x288] sm:$0xff] }
 0x1f7   :  { %1193 = vmatmul.mubr.f32.gmra.mrb[34].mxu0 %v738_v39  ;;  %1027 = vmatprep.mubr.f32.mxu1 %v727_v46  ;;  %v810_v55 = vld [vmem:[%s5022_s25 + $0x1f0] sm:$0xff]  ;;  %v811_v56 = vld [vmem:[%s5022_s25 + $0x1f8] sm:$0xff]  ;;  %v3163_v1 = vpack.c.bf16 %v829_v62, %v828_v61  ;;  %v812_v2 = vld [vmem:[%s5022_s25 + $0x200] sm:$0xff] }
 0x1f8   :  { %1197 = vmatprep.mubr.f32.mxu0 %v747_v42  ;;  %3150 = vmatpush3.bf16.msra.mxu1 %v3149_v41  ;;  %v3159_v58 = vpack.c.bf16 %v811_v56, %v810_v55  ;;  %v794_v59 = vld [vmem:[%s5022_s25 + $0x170] sm:$0xff]  ;;  %v795_v60 = vld [vmem:[%s5022_s25 + $0x178] sm:$0xff]  ;;  %v813_v3 = vld [vmem:[%s5022_s25 + $0x208] sm:$0xff] }
 0x1f9   :  { %3152 = vmatprep.subr.bf16.mxu1 %v3151_v43  ;;  %v3161_v63 = vpack.c.bf16 %v795_v60, %v794_v59  ;;  %v830_v4 = vld [vmem:[%s5022_s25 + $0x290] sm:$0xff]  ;;  %v831_v5 = vld [vmem:[%s5022_s25 + $0x298] sm:$0xff]  ;;  %v3165_v7 = vpack.c.bf16 %v813_v3, %v812_v2  ;;  %v832_v12 = vld [vmem:[%s5022_s25 + $0x2a0] sm:$0xff] }
 0x1fa   :  { %v3167_v8 = vpack.c.bf16 %v831_v5, %v830_v4  ;;  %v814_v9 = vld [vmem:[%s5022_s25 + $0x210] sm:$0xff]  ;;  %v815_v10 = vld [vmem:[%s5022_s25 + $0x218] sm:$0xff]  ;;  %v833_v13 = vld [vmem:[%s5022_s25 + $0x2a8] sm:$0xff] }
 0x1fb   :  { %1198 = vmatmul.mubr.f32.gmra.mrb[36].mxu0 %v746_v50  ;;  %v726_v11 = vld [vmem:[#allocation3 + $0x10] sm:$0xff]  ;;  %v735_v14 = vld [vmem:[#allocation3 + $0x58] sm:$0xff]  ;;  %v3169_v15 = vpack.c.bf16 %v815_v10, %v814_v9  ;;  %v3171_v16 = vpack.c.bf16 %v833_v13, %v832_v12  ;;  %v816_v17 = vld [vmem:[%s5022_s25 + $0x220] sm:$0xff] }
 0x1fc   :  { %3154 = vmatpush3.bf16.msra.mxu1 %v3153_v51  ;;  %v817_v18 = vld [vmem:[%s5022_s25 + $0x228] sm:$0xff]  ;;  %v734_v19 = vld [vmem:[#allocation3 + $0x50] sm:$0xff]  ;;  %v835_v21 = vld [vmem:[%s5022_s25 + $0x2b8] sm:$0xff] }
 0x1fd   :  { %3156 = vmatprep.subr.bf16.mxu1 %v3155_v52  ;;  %v834_v20 = vld [vmem:[%s5022_s25 + $0x2b0] sm:$0xff]  ;;  %v743_v22 = vld [vmem:[#allocation3 + $0x98] sm:$0x3]  ;;  %v3173_v23 = vpack.c.bf16 %v817_v18, %v816_v17  ;;  %v836_v28 = vld [vmem:[%s5022_s25 + $0x2c0] sm:$0xff] }
 0x1fe   :  { %v3175_v24 = vpack.c.bf16 %v835_v21, %v834_v20  ;;  %v818_v25 = vld [vmem:[%s5022_s25 + $0x230] sm:$0xff]  ;;  %v819_v26 = vld [vmem:[%s5022_s25 + $0x238] sm:$0xff]  ;;  %v837_v29 = vld [vmem:[%s5022_s25 + $0x2c8] sm:$0xff] }
 0x1ff   :  { %v742_v27 = vld [vmem:[#allocation3 + $0x90] sm:$0x3]  ;;  %v729_v30 = vld [vmem:[#allocation3 + $0x28] sm:$0xff]  ;;  %v3177_v6 = vpack.c.bf16 %v819_v26, %v818_v25  ;;  %v3179_v31 = vpack.c.bf16 %v837_v29, %v836_v28  ;;  %v820_v32 = vld [vmem:[%s5022_s25 + $0x240] sm:$0xff] }
 0x200   :  { %3158 = vmatpush3.bf16.msra.mxu1 %v3157_v57  ;;  %v821_v33 = vld [vmem:[%s5022_s25 + $0x248] sm:$0xff]  ;;  %v838_v34 = vld [vmem:[%s5022_s25 + $0x2d0] sm:$0xff]  ;;  %v839_v35 = vld [vmem:[%s5022_s25 + $0x2d8] sm:$0xff] }
 0x201   :  { %3160 = vmatprep.subr.bf16.mxu1 %v3159_v58  ;;  %v3181_v36 = vpack.c.bf16 %v821_v33, %v820_v32  ;;  %v3183_v37 = vpack.c.bf16 %v839_v35, %v838_v34  ;;  %v822_v38 = vld [vmem:[%s5022_s25 + $0x250] sm:$0xff]  ;;  %v823_v39 = vld [vmem:[%s5022_s25 + $0x258] sm:$0xff]  ;;  %v840_v40 = vld [vmem:[%s5022_s25 + $0x2e0] sm:$0xff] }
 0x202   :  { %v841_v41 = vld [vmem:[%s5022_s25 + $0x2e8] sm:$0xff]  ;;  %v3185_v42 = vpack.c.bf16 %v823_v39, %v822_v38  ;;  %v824_v44 = vld [vmem:[%s5022_s25 + $0x260] sm:$0xff]  ;;  %v842_v46 = vld [vmem:[%s5022_s25 + $0x2f0] sm:$0xff] }
 0x203   :  { %v3187_v43 = vpack.c.bf16 %v841_v41, %v840_v40  ;;  %v825_v45 = vld [vmem:[%s5022_s25 + $0x268] sm:$0xff]  ;;  %v843_v47 = vld [vmem:[%s5022_s25 + $0x2f8] sm:$0xff]  ;;  %v826_v51 = vld [vmem:[%s5022_s25 + $0x270] sm:$0xff] }
 0x204   :  { %3162 = vmatpush3.bf16.msra.mxu1 %v3161_v63  ;;  %v3189_v48 = vpack.c.bf16 %v825_v45, %v824_v44  ;;  %v3191_v50 = vpack.c.bf16 %v843_v47, %v842_v46  ;;  %v827_v52 = vld [vmem:[%s5022_s25 + $0x278] sm:$0xff]  ;;  %v728_v54 = vld [vmem:[#allocation3 + $0x20] sm:$0xff]  ;;  %v737_v55 = vld [vmem:[#allocation3 + $0x68] sm:$0xff] }
 0x205   :  { %3164 = vmatprep.subr.bf16.mxu1 %v3163_v1  ;;  %v3193_v53 = vpack.c.bf16 %v827_v52, %v826_v51  ;;  %v736_v56 = vld [vmem:[#allocation3 + $0x60] sm:$0xff]  ;;  %v745_v57 = vld [vmem:[#allocation3 + $0xa8] sm:$0x3]  ;;  %v1266_v9 = vld [vmem:[%s4996_s6 + $0x90] sm:$0xff] }
 0x206   :  { %v744_v58 = vld [vmem:[#allocation3 + $0xa0] sm:$0x3]  ;;  %v1265_v60 = vld [vmem:[%s4996_s6 + $0x88] sm:$0xff]  ;;  %v1267_v10 = vld [vmem:[%s4996_s6 + $0x98] sm:$0xff] }
 0x207   :  { %1028 = vmatmul.mubr.f32.vlgmr.msra.gmra.mrb[6].mxu1 %v726_v11  ;;  %v1264_v59 = vld [vmem:[%s4996_s6 + $0x80] sm:$0xff]  ;;  %v1249_v63 = vld [vmem:[%s4996_s6 + $0x8] sm:$0xff]  ;;  %v3231_v11 = vpack.c.bf16 %v1267_v10, %v1266_v9  ;;  %v1250_v12 = vld [vmem:[%s4996_s6 + $0x10] sm:$0xff] }
 0x208   :  { %1032 = vmatprep.mubr.f32.mxu1 %v735_v14  ;;  %3166 = vmatpush3.bf16.msra.mxu1 %v3165_v7  ;;  %v3227_v61 = vpack.c.bf16 %v1265_v60, %v1264_v59  ;;  %v1248_v62 = vld [vmem:[%s4996_s6] sm:$0xff]  ;;  %v1297_v3 = vld [vmem:[%s4996_s6 + $0x188] sm:$0xff]  ;;  %v1251_v13 = vld [vmem:[%s4996_s6 + $0x18] sm:$0xff] }
 0x209   :  { %3168 = vmatprep.subr.bf16.mxu1 %v3167_v8  ;;  %v3229_v1 = vpack.c.bf16 %v1249_v63, %v1248_v62  ;;  %v1296_v2 = vld [vmem:[%s4996_s6 + $0x180] sm:$0xff]  ;;  %v1281_v7 = vld [vmem:[%s4996_s6 + $0x108] sm:$0xff]  ;;  %v3233_v14 = vpack.c.bf16 %v1251_v13, %v1250_v12  ;;  %v1282_v18 = vld [vmem:[%s4996_s6 + $0x110] sm:$0xff] }
 0x20a   :  { %v3259_v4 = vpack.c.bf16 %v1297_v3, %v1296_v2  ;;  %v1280_v5 = vld [vmem:[%s4996_s6 + $0x100] sm:$0xff]  ;;  %v1253_v25 = vld [vmem:[%s4996_s6 + $0x28] sm:$0xff]  ;;  %v1270_v32 = vld [vmem:[%s4996_s6 + $0xb0] sm:$0xff] }
 0x20b   :  { %1033 = vmatmul.mubr.f32.gmra.mrb[8].mxu1 %v734_v19  ;;  %v3261_v8 = vpack.c.bf16 %v1281_v7, %v1280_v5  ;;  %v1283_v19 = vld [vmem:[%s4996_s6 + $0x118] sm:$0xff]  ;;  %v1268_v21 = vld [vmem:[%s4996_s6 + $0xa0] sm:$0xff]  ;;  %v1301_v28 = vld [vmem:[%s4996_s6 + $0x1a8] sm:$0xff] }
 0x20c   :  { %1037 = vmatprep.mubr.f32.mxu1 %v743_v22  ;;  %3170 = vmatpush3.bf16.msra.mxu1 %v3169_v15  ;;  %v1298_v15 = vld [vmem:[%s4996_s6 + $0x190] sm:$0xff]  ;;  %v3265_v20 = vpack.c.bf16 %v1283_v19, %v1282_v18  ;;  %v1269_v22 = vld [vmem:[%s4996_s6 + $0xa8] sm:$0xff]  ;;  %v1271_v33 = vld [vmem:[%s4996_s6 + $0xb8] sm:$0xff] }
 0x20d   :  { %3172 = vmatprep.subr.bf16.mxu1 %v3171_v16  ;;  %3260 = vmatprep.subr.bf16.mxu0 %v3259_v4  ;;  %v1299_v16 = vld [vmem:[%s4996_s6 + $0x198] sm:$0xff]  ;;  %v3239_v34 = vpack.c.bf16 %v1271_v33, %v1270_v32  ;;  %v1254_v35 = vld [vmem:[%s4996_s6 + $0x30] sm:$0xff]  ;;  %v1272_v44 = vld [vmem:[%s4996_s6 + $0xc0] sm:$0xff] }
 0x20e   :  { %3262 = vmatpush3.bf16.msra.mxu0 %v3261_v8  ;;  %v3263_v17 = vpack.c.bf16 %v1299_v16, %v1298_v15  ;;  %v1302_v38 = vld [vmem:[%s4996_s6 + $0x1b0] sm:$0xff]  ;;  %v1303_v39 = vld [vmem:[%s4996_s6 + $0x1b8] sm:$0xff]  ;;  %v1273_v45 = vld [vmem:[%s4996_s6 + $0xc8] sm:$0xff] }
 0x20f   :  { %1038 = vmatmul.mubr.f32.gmra.mrb[10].mxu1 %v742_v27  ;;  %v1300_v27 = vld [vmem:[%s4996_s6 + $0x1a0] sm:$0xff]  ;;  %v3271_v40 = vpack.c.bf16 %v1303_v39, %v1302_v38  ;;  %v1286_v41 = vld [vmem:[%s4996_s6 + $0x130] sm:$0xff]  ;;  %v3243_v46 = vpack.c.bf16 %v1273_v45, %v1272_v44  ;;  %v1305_v52 = vld [vmem:[%s4996_s6 + $0x1c8] sm:$0xff] }
 0x210   :  { %3174 = vmatpush3.bf16.msra.mxu1 %v3173_v23  ;;  %1107 = vmatprep.mubr.f32.mxu1 %v729_v30  ;;  %v3235_v23 = vpack.c.bf16 %v1269_v22, %v1268_v21  ;;  %v3267_v29 = vpack.c.bf16 %v1301_v28, %v1300_v27  ;;  %v1284_v30 = vld [vmem:[%s4996_s6 + $0x120] sm:$0xff]  ;;  %v1258_v60 = vld [vmem:[%s4996_s6 + $0x50] sm:$0xff]  ;;  %v1291_v4 = vld [vmem:[%s4996_s6 + $0x158] sm:$0xff] }
 0x211   :  { %3176 = vmatprep.subr.bf16.mxu1 %v3175_v24  ;;  %3264 = vmatprep.subr.bf16.mxu0 %v3263_v17  ;;  %v1252_v24 = vld [vmem:[%s4996_s6 + $0x20] sm:$0xff]  ;;  %v1306_v63 = vld [vmem:[%s4996_s6 + $0x1d0] sm:$0xff]  ;;  %v1277_v8 = vld [vmem:[%s4996_s6 + $0xe8] sm:$0xff] }
 0x212   :  { %3266 = vmatpush3.bf16.msra.mxu0 %v3265_v20  ;;  %v3237_v26 = vpack.c.bf16 %v1253_v25, %v1252_v24  ;;  %v1256_v47 = vld [vmem:[%s4996_s6 + $0x40] sm:$0xff]  ;;  %v1290_v3 = vld [vmem:[%s4996_s6 + $0x150] sm:$0xff]  ;;  %v1293_v16 = vld [vmem:[%s4996_s6 + $0x168] sm:$0xff] }
 0x213   :  { %3268 = vmatprep.subr.bf16.mxu0 %v3267_v29  ;;  %v1304_v51 = vld [vmem:[%s4996_s6 + $0x1c0] sm:$0xff]  ;;  %v3281_v5 = vpack.c.bf16 %v1291_v4, %v1290_v3  ;;  %v1278_v19 = vld [vmem:[%s4996_s6 + $0xf0] sm:$0xff]  ;;  %v1279_v20 = vld [vmem:[%s4996_s6 + $0xf8] sm:$0xff] }
 0x214   :  { %3178 = vmatpush3.bf16.msra.mxu1 %v3177_v6  ;;  %v1285_v6 = vld [vmem:[%s4996_s6 + $0x128] sm:$0xff]  ;;  %v1276_v7 = vld [vmem:[%s4996_s6 + $0xe0] sm:$0xff]  ;;  %v1262_v21 = vld [vmem:[%s4996_s6 + $0x70] sm:$0xff]  ;;  %v3255_v22 = vpack.c.bf16 %v1279_v20, %v1278_v19 }
 0x215   :  { %3180 = vmatprep.subr.bf16.mxu1 %v3179_v31  ;;  %v3269_v31 = vpack.c.bf16 %v1285_v6, %v1284_v30  ;;  %v3251_v9 = vpack.c.bf16 %v1277_v8, %v1276_v7  ;;  %v1260_v10 = vld [vmem:[%s4996_s6 + $0x60] sm:$0xff]  ;;  %v1310_v24 = vld [vmem:[%s4996_s6 + $0x1f0] sm:$0xff]  ;;  %v1311_v25 = vld [vmem:[%s4996_s6 + $0x1f8] sm:$0xff] }
 0x216   :  { %v1308_v12 = vld [vmem:[%s4996_s6 + $0x1e0] sm:$0xff]  ;;  %v3287_v27 = vpack.c.bf16 %v1311_v25, %v1310_v24  ;;  %v1294_v28 = vld [vmem:[%s4996_s6 + $0x170] sm:$0xff]  ;;  %v1295_v29 = vld [vmem:[%s4996_s6 + $0x178] sm:$0xff] }
 0x217   :  { %3270 = vmatpush3.bf16.msra.mxu0 %v3269_v31  ;;  %v1292_v15 = vld [vmem:[%s4996_s6 + $0x160] sm:$0xff]  ;;  %v3289_v30 = vpack.c.bf16 %v1295_v29, %v1294_v28  ;;  %v1329_v31 = vld [vmem:[%s4996_s6 + $0x288] sm:$0xff] }
 0x218   :  { %3182 = vmatpush3.bf16.msra.mxu1 %v3181_v36  ;;  %v1255_v36 = vld [vmem:[%s4996_s6 + $0x38] sm:$0xff]  ;;  %3272 = vmatprep.subr.bf16.mxu0 %v3271_v40  ;;  %v3285_v18 = vpack.c.bf16 %v1293_v16, %v1292_v15  ;;  %v1328_v6 = vld [vmem:[%s4996_s6 + $0x280] sm:$0xff] }
 0x219   :  { %3184 = vmatprep.subr.bf16.mxu1 %v3183_v37  ;;  %v3241_v37 = vpack.c.bf16 %v1255_v36, %v1254_v35  ;;  %v3291_v32 = vpack.c.bf16 %v1329_v31, %v1328_v6  ;;  %v1360_v33 = vld [vmem:[%s4996_s6 + $0x380] sm:$0xff] }
 0x21c   :  { %3186 = vmatpush3.bf16.msra.mxu1 %v3185_v42  ;;  %v1287_v42 = vld [vmem:[%s4996_s6 + $0x138] sm:$0xff] }
 0x21d   :  { %3188 = vmatprep.subr.bf16.mxu1 %v3187_v43  ;;  %v3273_v43 = vpack.c.bf16 %v1287_v42, %v1286_v41 }
 0x21f   :  { %3274 = vmatpush3.bf16.msra.mxu0 %v3273_v43 }
 0x220   :  { %3190 = vmatpush3.bf16.msra.mxu1 %v3189_v48  ;;  %v1257_v48 = vld [vmem:[%s4996_s6 + $0x48] sm:$0xff] }
 0x221   :  { %3192 = vmatprep.subr.bf16.mxu1 %v3191_v50  ;;  %v3245_v50 = vpack.c.bf16 %v1257_v48, %v1256_v47 }
 0x224   :  { %3194 = vmatpush3.bf16.msra.mxu1 %v3193_v53  ;;  %v3275_v53 = vpack.c.bf16 %v1305_v52, %v1304_v51 }
 0x225   :  { %3228 = vmatprep.subr.bf16.mxu1 %v3227_v61  ;;  %v1259_v61 = vld [vmem:[%s4996_s6 + $0x58] sm:$0xff] }
 0x226   :  { %3276 = vmatprep.subr.bf16.mxu0 %v3275_v53  ;;  %v3249_v62 = vpack.c.bf16 %v1259_v61, %v1258_v60 }
 0x227   :  { %1108 = vmatmul.mubr.f32.vlgmr.msra.gmra.mrb[12].mxu1 %v728_v54  ;;  %v1288_v54 = vld [vmem:[%s4996_s6 + $0x140] sm:$0xff] }
 0x228   :  { %1112 = vmatprep.mubr.f32.mxu1 %v737_v55  ;;  %3230 = vmatpush3.bf16.msra.mxu1 %v3229_v1  ;;  %v1289_v55 = vld [vmem:[%s4996_s6 + $0x148] sm:$0xff]  ;;  %v1307_v1 = vld [vmem:[%s4996_s6 + $0x1d8] sm:$0xff] }
 0x229   :  { %3232 = vmatprep.subr.bf16.mxu1 %v3231_v11  ;;  %v3279_v2 = vpack.c.bf16 %v1307_v1, %v1306_v63  ;;  %v1261_v11 = vld [vmem:[%s4996_s6 + $0x68] sm:$0xff] }
 0x22a   :  { %v3253_v13 = vpack.c.bf16 %v1261_v11, %v1260_v10 }
 0x22b   :  { %1113 = vmatmul.mubr.f32.gmra.mrb[14].mxu1 %v736_v56  ;;  %v3277_v56 = vpack.c.bf16 %v1289_v55, %v1288_v54  ;;  %v2532_v55 = vld [vmem:[%s4997_s5] ss:$0 sm:$0xff] }
 0x22c   :  { %1117 = vmatprep.mubr.f32.mxu1 %v745_v57  ;;  %3234 = vmatpush3.bf16.msra.mxu1 %v3233_v14  ;;  %v1274_v57 = vld [vmem:[%s4996_s6 + $0xd0] sm:$0xff]  ;;  %v1309_v14 = vld [vmem:[%s4996_s6 + $0x1e8] sm:$0xff] }
 0x22d   :  { %3236 = vmatprep.subr.bf16.mxu1 %v3235_v23  ;;  %3278 = vmatpush3.bf16.msra.mxu0 %v3277_v56  ;;  %v3283_v17 = vpack.c.bf16 %v1309_v14, %v1308_v12  ;;  %v1263_v23 = vld [vmem:[%s4996_s6 + $0x78] sm:$0xff] }
 0x22e   :  { %3280 = vmatprep.subr.bf16.mxu0 %v3279_v2 }
 0x22f   :  { %1118 = vmatmul.mubr.f32.gmra.mrb[16].mxu1 %v744_v58  ;;  %v1275_v58 = vld [vmem:[%s4996_s6 + $0xd8] sm:$0xff] }
 0x230   :  { %3238 = vmatpush3.bf16.msra.mxu1 %v3237_v26  ;;  %v3247_v59 = vpack.c.bf16 %v1275_v58, %v1274_v57  ;;  %v3257_v26 = vpack.c.bf16 %v1263_v23, %v1262_v21 }
 0x231   :  { %3240 = vmatprep.subr.bf16.mxu1 %v3239_v34  ;;  %3282 = vmatpush3.bf16.msra.mxu0 %v3281_v5  ;;  %v1361_v34 = vld [vmem:[%s4996_s6 + $0x388] sm:$0xff] }
 0x232   :  { %3284 = vmatprep.subr.bf16.mxu0 %v3283_v17  ;;  %v3323_v35 = vpack.c.bf16 %v1361_v34, %v1360_v33  ;;  %v3454_v34 = vmov 1983009808  }
 0x234   :  { %3242 = vmatpush3.bf16.msra.mxu1 %v3241_v37 }
 0x235   :  { %3244 = vmatprep.subr.bf16.mxu1 %v3243_v46  ;;  %3286 = vmatpush3.bf16.msra.mxu0 %v3285_v18 }
 0x236   :  { %3288 = vmatprep.subr.bf16.mxu0 %v3287_v27 }
 0x238   :  { %3246 = vmatpush3.bf16.msra.mxu1 %v3245_v50 }
 0x239   :  { %3248 = vmatprep.subr.bf16.mxu1 %v3247_v59  ;;  %3290 = vmatpush3.bf16.msra.mxu0 %v3289_v30 }
 0x23a   :  { %3324 = vmatprep.subr.bf16.mxu0 %v3323_v35  ;;  %v1404_v35 = vunpack.c.l.s4 %v3454_v34 }
 0x23c   :  { %3250 = vmatpush3.bf16.msra.mxu1 %v3249_v62 }
 0x23d   :  { %3252 = vmatprep.subr.bf16.mxu1 %v3251_v9 }
 0x240   :  { %3254 = vmatpush3.bf16.msra.mxu1 %v3253_v13 }
 0x241   :  { %3256 = vmatprep.subr.bf16.mxu1 %v3255_v22 }
 0x244   :  { %3258 = vmatpush3.bf16.msra.mxu1 %v3257_v26 }
 0x245   :  { %3292 = vmatprep.subr.bf16.mxu1 %v3291_v32 }
 0x2a9   :  { %v2713_v36 = vpop.f32.mrb[32].mxu0 }
 0x2aa   :  { %v2714_v37 = vpop.f32.mrb[33].mxu0 }
 0x2ab   :  { %v2715_v38 = vadd.f32 %v2714_v37, %v2713_v36 }
 0x2b6   :  { %v2590_v39 = vpop.f32.mrb[0].mxu1 }
 0x2b7   :  { %v2591_v40 = vpop.f32.mrb[1].mxu1 }
 0x2b8   :  { %v2592_v41 = vadd.f32 %v2591_v40, %v2590_v39 }
 0x2ba   :  { %v950_v58 = vadd.f32 %v2592_v41, %v2532_v55 }
 0x2c5   :  { %v2593_v42 = vpop.f32.mrb[2].mxu1 }
 0x2c6   :  { %v2594_v43 = vpop.f32.mrb[3].mxu1 }
 0x2c7   :  { %v2595_v44 = vadd.f32 %v2594_v43, %v2593_v42  ;;  %v1405_v43 = vunpack.c.0.s8 %v1404_v35  ;;  %v1336_v35 = vld [vmem:[%s4996_s6 + $0x2c0] sm:$0xff] }
 0x2c9   :  { %v2596_v45 = vpop.f32.mrb[4].mxu1  ;;  %v955_v63 = vadd.f32 %v2595_v44, %v2532_v55  ;;  %v4541_v44 = vshrl.u32 %v387_v49, 7 }
 0x2ca   :  { %v2716_v46 = vpop.f32.mrb[34].mxu0  ;;  %v2597_v47 = vpop.f32.mrb[5].mxu1 }
 0x2cb   :  { %v2717_v48 = vpop.f32.mrb[35].mxu0  ;;  %v2598_v50 = vadd.f32 %v2597_v47, %v2596_v45 }
 0x2cc   :  { %v2718_v51 = vadd.f32 %v2717_v48, %v2716_v46  ;;  %v1408_v48 = vsub.s32 %v1405_v43, %v4541_v44 }
 0x2cd   :  { %v960_v5 = vadd.f32 %v2598_v50, %v2532_v55  ;;  %v1331_v55 = vld [vmem:[%s4996_s6 + $0x298] sm:$0xff] }
 0x2ce   :  { %v2719_v52 = vpop.f32.mrb[36].mxu0 }
 0x2cf   :  { %v2720_v53 = vpop.f32.mrb[37].mxu0 }
 0x2d0   :  { %v2721_v54 = vadd.f32 %v2720_v53, %v2719_v52  ;;  %v1313_v52 = vld [vmem:[%s4996_s6 + $0x208] sm:$0xff] }
 0x2da   :  { %v2631_v56 = vpop.f32.mrb[6].mxu1 }
 0x2db   :  { %v2632_v57 = vpop.f32.mrb[7].mxu1 }
 0x2dc   :  { %v2633_v59 = vadd.f32 %v2632_v57, %v2631_v56  ;;  %v1344_v56 = vld [vmem:[%s4996_s6 + $0x300] sm:$0xff]  ;;  %v1345_v57 = vld [vmem:[%s4996_s6 + $0x308] sm:$0xff] }
 0x2de   :  { %v1030_v60 = vadd.f32 %v2633_v59, %v950_v58  ;;  %v2634_v61 = vpop.f32.mrb[8].mxu1 }
 0x2df   :  { %v2635_v62 = vpop.f32.mrb[9].mxu1 }
 0x2e0   :  { %v2636_v1 = vadd.f32 %v2635_v62, %v2634_v61  ;;  %v1362_v62 = vld [vmem:[%s4996_s6 + $0x390] sm:$0xff] }
 0x2e2   :  { %v1035_v2 = vadd.f32 %v2636_v1, %v955_v63  ;;  %v2637_v3 = vpop.f32.mrb[10].mxu1  ;;  %v1363_v63 = vld [vmem:[%s4996_s6 + $0x398] sm:$0xff] }
 0x2e3   :  { %v2638_v4 = vpop.f32.mrb[11].mxu1 }
 0x2e4   :  { %v2639_v7 = vadd.f32 %v2638_v4, %v2637_v3  ;;  %v1314_v3 = vld [vmem:[%s4996_s6 + $0x210] sm:$0xff]  ;;  %v1315_v4 = vld [vmem:[%s4996_s6 + $0x218] sm:$0xff] }
 0x2e6   :  { %v1040_v8 = vadd.f32 %v2639_v7, %v960_v5 }
 0x2fa   :  { %v2672_v9 = vpop.f32.mrb[12].mxu1 }
 0x2fb   :  { %v2673_v10 = vpop.f32.mrb[13].mxu1 }
 0x2fc   :  { %v2674_v11 = vadd.f32 %v2673_v10, %v2672_v9  ;;  %v1332_v9 = vld [vmem:[%s4996_s6 + $0x2a0] sm:$0xff]  ;;  %v1333_v10 = vld [vmem:[%s4996_s6 + $0x2a8] sm:$0xff] }
 0x2fe   :  { %v1110_v12 = vadd.f32 %v2674_v11, %v1030_v60  ;;  %v2675_v13 = vpop.f32.mrb[14].mxu1 }
 0x2ff   :  { %v2676_v14 = vpop.f32.mrb[15].mxu1 }
 0x300   :  { %v1190_v15 = vadd.f32 %v2715_v38, %v1110_v12  ;;  %v2677_v16 = vadd.f32 %v2676_v14, %v2675_v13  ;;  %v3327_v12 = vpack.c.bf16 %v1363_v63, %v1362_v62  ;;  %v1346_v14 = vld [vmem:[%s4996_s6 + $0x310] sm:$0xff] }
 0x301   :  { %v1354_v63 = vld [vmem:[%s4996_s6 + $0x350] sm:$0xff] }
 0x302   :  { %v1203_v17 = vmax.f32 %v1190_v15, 0.0  ;;  %v1115_v18 = vadd.f32 %v2677_v16, %v1035_v2  ;;  %v2678_v19 = vpop.f32.mrb[16].mxu1  ;;  %v1347_v15 = vld [vmem:[%s4996_s6 + $0x318] sm:$0xff]  ;;  %v3297_v16 = vpack.c.bf16 %v1315_v4, %v1314_v3  ;;  %v1372_v4 = vld [vmem:[%s4996_s6 + $0x3e0] sm:$0xff] }
 0x303   :  { %v2679_v20 = vpop.f32.mrb[17].mxu1 }
 0x304   :  { %1206 = vst [vmem:[#allocation4] sm:$0xff] %v1203_v17  ;;  %v1195_v21 = vadd.f32 %v2718_v51, %v1115_v18  ;;  %v2680_v22 = vadd.f32 %v2679_v20, %v2678_v19  ;;  %v1312_v51 = vld [vmem:[%s4996_s6 + $0x200] sm:$0xff]  ;;  %v1365_v18 = vld [vmem:[%s4996_s6 + $0x3a8] sm:$0xff]  ;;  %v3299_v20 = vpack.c.bf16 %v1333_v10, %v1332_v9 }
 0x305   :  { %v3293_v59 = vpack.c.bf16 %v1313_v52, %v1312_v51  ;;  %v1364_v17 = vld [vmem:[%s4996_s6 + $0x3a0] sm:$0xff]  ;;  %v1325_v9 = vld [vmem:[%s4996_s6 + $0x268] sm:$0xff] }
 0x306   :  { %v1204_v23 = vmax.f32 %v1195_v21, 0.0  ;;  %v1120_v24 = vadd.f32 %v2680_v22, %v1040_v8  ;;  %v3325_v8 = vpack.c.bf16 %v1345_v57, %v1344_v56  ;;  %v1316_v21 = vld [vmem:[%s4996_s6 + $0x220] sm:$0xff]  ;;  %v1317_v22 = vld [vmem:[%s4996_s6 + $0x228] sm:$0xff]  ;;  %v1322_v57 = vld [vmem:[%s4996_s6 + $0x250] sm:$0xff] }
 0x307   :  { %v1352_v52 = vld [vmem:[%s4996_s6 + $0x340] sm:$0xff] }
 0x308   :  { %1207 = vst [vmem:[#allocation4 + $0x8] sm:$0xff] %v1204_v23  ;;  %v1200_v25 = vadd.f32 %v2721_v54, %v1120_v24  ;;  %v1330_v54 = vld [vmem:[%s4996_s6 + $0x290] sm:$0xff]  ;;  %v3329_v23 = vpack.c.bf16 %v1347_v15, %v1346_v14  ;;  %v1356_v15 = vld [vmem:[%s4996_s6 + $0x360] sm:$0xff] }
 0x309   :  { %v3295_v1 = vpack.c.bf16 %v1331_v55, %v1330_v54  ;;  %v1334_v24 = vld [vmem:[%s4996_s6 + $0x2b0] sm:$0xff]  ;;  %v1371_v55 = vld [vmem:[%s4996_s6 + $0x3d8] sm:$0xff] }
 0x30a   :  { %v1205_v26 = vmax.f32 %v1200_v25, 0.0  ;;  %v1335_v25 = vld [vmem:[%s4996_s6 + $0x2b8] sm:$0xff]  ;;  %v1370_v54 = vld [vmem:[%s4996_s6 + $0x3d0] sm:$0xff] }
 0x30b   :  { %v1209_v27 = vld [vmem:[#allocation4] sm:$0x1]  ;;  %v1211_v28 = vld [vmem:[#allocation4 + $0x6] sm:$0x1]  ;;  %v1215_v29 = vld [vmem:[#allocation4 + $0x1] sm:$0x1]  ;;  %v3343_v62 = vpack.c.bf16 %v1371_v55, %v1370_v54 }
 0x30c   :  { %1210 = vst [vmem:[#allocation5] sm:$0x1] %v1209_v27  ;;  %1212 = vst [vmem:[#allocation5 + $0x2] sm:$0x1] %v1211_v28  ;;  %v1217_v30 = vld [vmem:[#allocation4 + $0x7] sm:$0x1] }
 0x30d   :  { %1216 = vst [vmem:[#allocation5 + $0x6] sm:$0x1] %v1215_v29  ;;  %v1221_v6 = vld [vmem:[#allocation4 + $0x2] sm:$0x1]  ;;  %v1227_v31 = vld [vmem:[#allocation4 + $0x3] sm:$0x1]  ;;  %v3301_v29 = vpack.c.bf16 %v1317_v22, %v1316_v21 }
 0x30e   :  { %1208 = vst [vmem:[#allocation4 + $0x10] sm:$0x3] %v1205_v26  ;;  %1218 = vst [vmem:[#allocation5 + $0x8] sm:$0x1] %v1217_v30  ;;  %v1233_v32 = vld [vmem:[#allocation4 + $0x4] sm:$0x1]  ;;  %v3331_v26 = vpack.c.bf16 %v1365_v18, %v1364_v17 }
 0x30f   :  { %1222 = vst [vmem:[#allocation5 + $0xc] sm:$0x1] %v1221_v6  ;;  %1228 = vst [vmem:[#allocation5 + $0x1] sm:$0x1] %v1227_v31  ;;  %v1239_v33 = vld [vmem:[#allocation4 + $0x5] sm:$0x1]  ;;  %v3303_v31 = vpack.c.bf16 %v1335_v25, %v1334_v24 }
 0x310   :  { %1234 = vst [vmem:[#allocation5 + $0x7] sm:$0x1] %v1233_v32  ;;  %1240 = vst [vmem:[#allocation5 + $0xd] sm:$0x1] %v1239_v33  ;;  %v1213_v36 = vld [vmem:[#allocation4 + $0xc] sm:$0x1] }
 0x311   :  { %v1219_v37 = vld [vmem:[#allocation4 + $0xd] sm:$0x1]  ;;  %v1223_v38 = vld [vmem:[#allocation4 + $0x8] sm:$0x1]  ;;  %1214 = vst [vmem:[#allocation5 + $0x4] sm:$0x1] %v1213_v36 }
 0x312   :  { %1220 = vst [vmem:[#allocation5 + $0xa] sm:$0x1] %v1219_v37  ;;  %1224 = vst [vmem:[#allocation5 + $0xe] sm:$0x1] %v1223_v38  ;;  %v1229_v39 = vld [vmem:[#allocation4 + $0x9] sm:$0x1] }
 0x313   :  { %v1231_v40 = vld [vmem:[#allocation4 + $0xf] sm:$0x1]  ;;  %v1235_v41 = vld [vmem:[#allocation4 + $0xa] sm:$0x1]  ;;  %1230 = vst [vmem:[#allocation5 + $0x3] sm:$0x1] %v1229_v39 }
 0x314   :  { %1232 = vst [vmem:[#allocation5 + $0x5] sm:$0x1] %v1231_v40  ;;  %1236 = vst [vmem:[#allocation5 + $0x9] sm:$0x1] %v1235_v41  ;;  %v1241_v42 = vld [vmem:[#allocation4 + $0xb] sm:$0x1] }
 0x315   :  { %v1225_v45 = vld [vmem:[#allocation4 + $0xe] sm:$0x1]  ;;  %1242 = vst [vmem:[#allocation5 + $0xf] sm:$0x1] %v1241_v42  ;;  %v1237_v46 = vld [vmem:[#allocation4 + $0x10] sm:$0x1] }
 0x316   :  { %1226 = vst [vmem:[#allocation5 + $0x10] sm:$0x1] %v1225_v45  ;;  %v1243_v47 = vld [vmem:[#allocation4 + $0x11] sm:$0x1]  ;;  %1238 = vst [vmem:[#allocation5 + $0xb] sm:$0x1] %v1237_v46 }
 0x317   :  { %1244 = vst [vmem:[#allocation5 + $0x11] sm:$0x1] %v1243_v47  ;;  %v1348_v27 = vld [vmem:[%s4996_s6 + $0x320] sm:$0xff]  ;;  %v1349_v28 = vld [vmem:[%s4996_s6 + $0x328] sm:$0xff]  ;;  %v1366_v30 = vld [vmem:[%s4996_s6 + $0x3b0] sm:$0xff] }
 0x318   :  { %v1367_v6 = vld [vmem:[%s4996_s6 + $0x3b8] sm:$0xff]  ;;  %v1318_v32 = vld [vmem:[%s4996_s6 + $0x230] sm:$0xff]  ;;  %v3333_v34 = vpack.c.bf16 %v1349_v28, %v1348_v27  ;;  %v1337_v36 = vld [vmem:[%s4996_s6 + $0x2c8] sm:$0xff] }
 0x319   :  { %v1319_v33 = vld [vmem:[%s4996_s6 + $0x238] sm:$0xff]  ;;  %v3335_v37 = vpack.c.bf16 %v1367_v6, %v1366_v30  ;;  %v1350_v38 = vld [vmem:[%s4996_s6 + $0x330] sm:$0xff]  ;;  %v1368_v41 = vld [vmem:[%s4996_s6 + $0x3c0] sm:$0xff]  ;;  %v3307_v43 = vpack.c.bf16 %v1337_v36, %v1336_v35 }
 0x31a   :  { %v1351_v39 = vld [vmem:[%s4996_s6 + $0x338] sm:$0xff]  ;;  %v3305_v40 = vpack.c.bf16 %v1319_v33, %v1318_v32  ;;  %v1369_v42 = vld [vmem:[%s4996_s6 + $0x3c8] sm:$0xff]  ;;  %v1320_v45 = vld [vmem:[%s4996_s6 + $0x240] sm:$0xff] }
 0x31b   :  { %v1245_v50 = vld [vmem:[#allocation5] sm:$0xff]  ;;  %v1321_v46 = vld [vmem:[%s4996_s6 + $0x248] sm:$0xff]  ;;  %v3337_v47 = vpack.c.bf16 %v1351_v39, %v1350_v38  ;;  %v3339_v51 = vpack.c.bf16 %v1369_v42, %v1368_v41  ;;  %v1374_v18 = vld [vmem:[%s4996_s6 + $0x3f0] sm:$0xff] }
 0x31c   :  { %v1409_v49 = vrot.slane %v1245_v50, %v1408_v48  ;;  %v1402_v53 = vcombine.high %v1245_v50, %v1245_v50  ;;  %v1339_v50 = vld [vmem:[%s4996_s6 + $0x2d8] sm:$0xff]  ;;  %v1326_v21 = vld [vmem:[%s4996_s6 + $0x270] sm:$0xff]  ;;  %v1376_v28 = vld [vmem:[%s4996_s6 + $0x400] sm:$0xff] }
 0x31d   :  { %v1246_v61 = vld [vmem:[#allocation5 + $0x8] sm:$0xff]  ;;  %v1327_v22 = vld [vmem:[%s4996_s6 + $0x278] sm:$0xff]  ;;  %v1358_v25 = vld [vmem:[%s4996_s6 + $0x370] sm:$0xff] }
 0x31e   :  { %v1417_v58 = vcombine.high %v1409_v49, %v1409_v49  ;;  %v1416_v60 = vrot.slane %v1402_v53, %v1408_v48  ;;  %v4568_v2 = vrot.slane %v1246_v61, %v1408_v48  ;;  %v1419_v5 = vcombine.high %v1246_v61, %v1246_v61  ;;  %v1341_v61 = vld [vmem:[%s4996_s6 + $0x2e8] sm:$0xff]  ;;  %v1379_v32 = vld [vmem:[%s4996_s6 + $0x418] sm:$0xff]  ;;  %v1380_v35 = vld [vmem:[%s4996_s6 + $0x420] sm:$0xff] }
 0x31f   :  { %v3309_v53 = vpack.c.bf16 %v1321_v46, %v1320_v45  ;;  %v3321_v27 = vpack.c.bf16 %v1327_v22, %v1326_v21  ;;  %v1384_v39 = vld [vmem:[%s4996_s6 + $0x440] sm:$0xff]  ;;  %v1386_v42 = vld [vmem:[%s4996_s6 + $0x450] sm:$0xff]  ;;  %v2538_v55 = vld [vmem:[%s4998_s10 + $0x8] sm:$0xff] }
 0x320   :  { %1516 = vmatprep.mubr.f32.mxu1 %v1417_v58  ;;  %v1418_v7 = vcombine.high %v1416_v60, %v1416_v60  ;;  %v1434_v11 = vcombine.high %v4568_v2, %v4568_v2  ;;  %v4584_v13 = vrot.slane %v1419_v5, %v1408_v48  ;;  %v1338_v48 = vld [vmem:[%s4996_s6 + $0x2d0] sm:$0xff]  ;;  %v1323_v58 = vld [vmem:[%s4996_s6 + $0x258] sm:$0xff]  ;;  %v1373_v5 = vld [vmem:[%s4996_s6 + $0x3e8] sm:$0xff] }
 0x321   :  { %1517 = vmatmul.mubr.f32.vlgmr.msra.gmra.mrb[18].mxu1 %v1409_v49  ;;  %v1353_v49 = vld [vmem:[%s4996_s6 + $0x348] sm:$0xff]  ;;  %v3311_v56 = vpack.c.bf16 %v1339_v50, %v1338_v48  ;;  %v3313_v3 = vpack.c.bf16 %v1323_v58, %v1322_v57  ;;  %v3347_v14 = vpack.c.bf16 %v1373_v5, %v1372_v4  ;;  %v1388_v46 = vld [vmem:[%s4996_s6 + $0x460] sm:$0xff]  ;;  %v1390_v50 = vld [vmem:[%s4996_s6 + $0x470] sm:$0xff] }
 0x322   :  { %3294 = vmatpush3.bf16.msra.mxu1 %v3293_v59  ;;  %1586 = vmatprep.mubr.f32.mxu0 %v1418_v7  ;;  %v1435_v19 = vcombine.high %v4584_v13, %v4584_v13  ;;  %v3341_v59 = vpack.c.bf16 %v1353_v49, %v1352_v52  ;;  %v2534_v49 = vld.sshfl [vmem:[#allocation5 + $0x10] sm:$0x3 pattern:$0x76325410]  ;;  %v1896_v54 = vld [vmem:[%s4999_s1] sm:$0x3] }
 0x323   :  { %1587 = vmatmul.mubr.f32.vlgmr.msra.gmra.mrb[38].mxu0 %v1416_v60  ;;  %3296 = vmatprep.subr.bf16.mxu1 %v3295_v1  ;;  %v1340_v60 = vld [vmem:[%s4996_s6 + $0x2e0] sm:$0xff]  ;;  %v1355_v1 = vld [vmem:[%s4996_s6 + $0x358] sm:$0xff]  ;;  %v1804_v58 = vld [vmem:[%s5000_s8 + $0x8] sm:$0xff] }
 0x324   :  { %3326 = vmatpush3.bf16.msra.mxu0 %v3325_v8  ;;  %1656 = vmatprep.mubr.f32.mxu1 %v1434_v11  ;;  %v3315_v7 = vpack.c.bf16 %v1341_v61, %v1340_v60  ;;  %v1324_v8 = vld [vmem:[%s4996_s6 + $0x260] sm:$0xff]  ;;  %v3345_v10 = vpack.c.bf16 %v1355_v1, %v1354_v63  ;;  %v1342_v11 = vld [vmem:[%s4996_s6 + $0x2f0] sm:$0xff]  ;;  %v1806_v61 = vld [vmem:[%s5000_s8 + $0x18] sm:$0xff] }
 0x325   :  { %3328 = vmatprep.subr.bf16.mxu0 %v3327_v12  ;;  %1726 = vmatprep.mubr.f32.mxu0 %v1435_v19  ;;  %v1343_v12 = vld [vmem:[%s4996_s6 + $0x2f8] sm:$0xff]  ;;  %v3317_v17 = vpack.c.bf16 %v1325_v9, %v1324_v8  ;;  %v1803_v57 = vld [vmem:[%s5000_s8] sm:$0xff]  ;;  %v1805_v60 = vld [vmem:[%s5000_s8 + $0x10] sm:$0xff] }
 0x326   :  { %3298 = vmatpush3.bf16.msra.mxu1 %v3297_v16  ;;  %v1357_v16 = vld [vmem:[%s4996_s6 + $0x368] sm:$0xff]  ;;  %v1375_v19 = vld [vmem:[%s4996_s6 + $0x3f8] sm:$0xff]  ;;  %v1807_v63 = vld [vmem:[%s5000_s8 + $0x20] sm:$0xff] }
 0x327   :  { %3300 = vmatprep.subr.bf16.mxu1 %v3299_v20  ;;  %v3319_v20 = vpack.c.bf16 %v1343_v12, %v1342_v11  ;;  %v3351_v24 = vpack.c.bf16 %v1375_v19, %v1374_v18  ;;  %v1808_v1 = vld [vmem:[%s5000_s8 + $0x28] sm:$0xff]  ;;  %v1809_v4 = vld [vmem:[%s5000_s8 + $0x30] sm:$0xff]  ;;  %v1810_v5 = vld [vmem:[%s5000_s8 + $0x38] sm:$0xff] }
 0x328   :  { %3330 = vmatpush3.bf16.msra.mxu0 %v3329_v23  ;;  %v3349_v23 = vpack.c.bf16 %v1357_v16, %v1356_v15  ;;  %v1811_v8 = vld [vmem:[%s5000_s8 + $0x40] sm:$0xff]  ;;  %v1812_v9 = vld [vmem:[%s5000_s8 + $0x48] sm:$0xff]  ;;  %v1813_v11 = vld [vmem:[%s5000_s8 + $0x50] sm:$0xff] }
 0x329   :  { %3332 = vmatprep.subr.bf16.mxu0 %v3331_v26  ;;  %v1359_v26 = vld [vmem:[%s4996_s6 + $0x378] sm:$0xff]  ;;  %v1815_v15 = vld [vmem:[%s5000_s8 + $0x60] sm:$0xff]  ;;  %v1816_v16 = vld [vmem:[%s5000_s8 + $0x68] sm:$0xff] }
 0x32a   :  { %3302 = vmatpush3.bf16.msra.mxu1 %v3301_v29  ;;  %v1377_v29 = vld [vmem:[%s4996_s6 + $0x408] sm:$0xff]  ;;  %v3353_v30 = vpack.c.bf16 %v1359_v26, %v1358_v25  ;;  %v1814_v12 = vld [vmem:[%s5000_s8 + $0x58] sm:$0xff]  ;;  %v1817_v18 = vld [vmem:[%s5000_s8 + $0x70] sm:$0xff] }
 0x32b   :  { %3304 = vmatprep.subr.bf16.mxu1 %v3303_v31  ;;  %v3356_v6 = vpack.c.bf16 %v1377_v29, %v1376_v28  ;;  %v1378_v31 = vld [vmem:[%s4996_s6 + $0x410] sm:$0xff]  ;;  %v1818_v19 = vld [vmem:[%s5000_s8 + $0x78] sm:$0xff]  ;;  %v2546_v21 = vld [vmem:[%s5001_s12 + $0x28] sm:$0xff] }
 0x32c   :  { %3334 = vmatpush3.bf16.msra.mxu0 %v3333_v34  ;;  %v3359_v33 = vpack.c.bf16 %v1379_v32, %v1378_v31  ;;  %v3456_v34 = vmov 0.0   ;;  %v2547_v22 = vld [vmem:[%s5001_s12 + $0x30] sm:$0xff]  ;;  %v2549_v25 = vld [vmem:[%s5001_s12 + $0x40] sm:$0xff] }
 0x32d   :  { %3336 = vmatprep.subr.bf16.mxu0 %v3335_v37  ;;  %v1383_v37 = vld [vmem:[%s4996_s6 + $0x438] sm:$0xff] }
 0x32e   :  { %3306 = vmatpush3.bf16.msra.mxu1 %v3305_v40  ;;  %v1385_v40 = vld [vmem:[%s4996_s6 + $0x448] sm:$0xff] }
 0x32f   :  { %3308 = vmatprep.subr.bf16.mxu1 %v3307_v43  ;;  %v3368_v41 = vpack.c.bf16 %v1385_v40, %v1384_v39  ;;  %v1387_v43 = vld [vmem:[%s4996_s6 + $0x458] sm:$0xff] }
 0x330   :  { %3338 = vmatpush3.bf16.msra.mxu0 %v3337_v47  ;;  %v3371_v45 = vpack.c.bf16 %v1387_v43, %v1386_v42  ;;  %v1389_v47 = vld [vmem:[%s4996_s6 + $0x468] sm:$0xff]  ;;  %v2155_v43 = vld [vmem:[%s5001_s12] sm:$0xff] }
 0x331   :  { %3340 = vmatprep.subr.bf16.mxu0 %v3339_v51  ;;  %v3374_v48 = vpack.c.bf16 %v1389_v47, %v1388_v46  ;;  %v1391_v51 = vld [vmem:[%s4996_s6 + $0x478] sm:$0xff] }
 0x332   :  { %3310 = vmatpush3.bf16.msra.mxu1 %v3309_v53  ;;  %v3377_v52 = vpack.c.bf16 %v1391_v51, %v1390_v50  ;;  %v1897_v53 = vld [vmem:[%s4998_s10] sm:$0xff] }
 0x333   :  { %3312 = vmatprep.subr.bf16.mxu1 %v3311_v56  ;;  %v2542_v56 = vld [vmem:[%s4998_s10 + $0x10] sm:$0xff] }
 0x334   :  { %3342 = vmatpush3.bf16.msra.mxu0 %v3341_v59  ;;  %v3380_v59 = vpack.c.bf16 %v1804_v58, %v1803_v57 }
 0x335   :  { %3344 = vmatprep.subr.bf16.mxu0 %v3343_v62  ;;  %v3383_v62 = vpack.c.bf16 %v1806_v61, %v1805_v60 }
 0x336   :  { %3314 = vmatpush3.bf16.msra.mxu1 %v3313_v3  ;;  %v3386_v3 = vpack.c.bf16 %v1808_v1, %v1807_v63 }
 0x337   :  { %3316 = vmatprep.subr.bf16.mxu1 %v3315_v7  ;;  %v3389_v7 = vpack.c.bf16 %v1810_v5, %v1809_v4  ;;  %v2540_v4 = vld [vmem:[%s5003_s11 + $0x1] ss:$0 sm:$0xff] }
 0x338   :  { %3346 = vmatpush3.bf16.msra.mxu0 %v3345_v10  ;;  %v3392_v10 = vpack.c.bf16 %v1812_v9, %v1811_v8 }
 0x339   :  { %3348 = vmatprep.subr.bf16.mxu0 %v3347_v14  ;;  %v3395_v14 = vpack.c.bf16 %v1814_v12, %v1813_v11 }
 0x33a   :  { %3318 = vmatpush3.bf16.msra.mxu1 %v3317_v17  ;;  %v3398_v17 = vpack.c.bf16 %v1816_v16, %v1815_v15 }
 0x33b   :  { %3320 = vmatprep.subr.bf16.mxu1 %v3319_v20  ;;  %v3401_v20 = vpack.c.bf16 %v1818_v19, %v1817_v18 }
 0x33c   :  { %3350 = vmatpush3.bf16.msra.mxu0 %v3349_v23  ;;  %v2548_v23 = vld [vmem:[%s5001_s12 + $0x38] sm:$0xff] }
 0x33d   :  { %3352 = vmatprep.subr.bf16.mxu0 %v3351_v24  ;;  %v3404_v24 = vpack.c.bf16 %v2547_v22, %v2546_v21  ;;  %v3407_v29 = vpack.c.bf16 %v2549_v25, %v2548_v23  ;;  %v2322_v21 = vld [vmem:[%s5004_s14] sm:$0xff]  ;;  %v2323_v22 = vld [vmem:[%s5004_s14 + $0x8] sm:$0xff] }
 0x33e   :  { %3322 = vmatpush3.bf16.msra.mxu1 %v3321_v27  ;;  %v2533_v27 = vld [vmem:[%s5002_s7] ss:$0 sm:$0xff]  ;;  %v3416_v23 = vpack.c.bf16 %v2323_v22, %v2322_v21  ;;  %v2409_v25 = vld [vmem:[%s5005_s16 + $0x8] sm:$0xff] }
 0x33f   :  { %3355 = vmatprep.subr.bf16.mxu1 %v3452_v0 }
 0x340   :  { %3354 = vmatpush3.bf16.msra.mxu0 %v3353_v30 }
 0x341   :  { %1657 = vmatmul.mubr.f32.vlgmr.msra.gmra.mrb[20].mxu1 %v4568_v2  ;;  %3379 = vmatprep.subr.bf16.mxu0 %v3452_v0  ;;  %v1381_v2 = vld [vmem:[%s4996_s6 + $0x428] sm:$0xff] }
 0x342   :  { %3357 = vmatpush3.bf16.msra.mxu1 %v3356_v6  ;;  %2958 = vmatprep.mubr.msk.f32.mxu1 %vm3455_vm3, %v3456_v34  ;;  %v3362_v36 = vpack.c.bf16 %v1381_v2, %v1380_v35  ;;  %v2550_v2 = vld [vmem:[%s5001_s12 + $0x48] sm:$0xff] }
 0x343   :  { %1727 = vmatmul.mubr.f32.vlgmr.msra.gmra.mrb[40].mxu0 %v4584_v13  ;;  %3358 = vmatprep.subr.bf16.mxu1 %v3452_v0  ;;  %v1382_v13 = vld [vmem:[%s4996_s6 + $0x430] sm:$0xff] }
 0x344   :  { %2993 = vmatprep.mubr.msk.f32.mxu0 %vm3455_vm3, %v3456_v34  ;;  %v3365_v38 = vpack.c.bf16 %v1383_v37, %v1382_v13  ;;  %3381 = vmatpush3.bf16.msra.mxu0 %v3380_v59 }
 0x345   :  { %3382 = vmatprep.subr.bf16.mxu0 %v3452_v0 }
 0x346   :  { %3360 = vmatpush3.bf16.msra.mxu1 %v3359_v33 }
 0x347   :  { %3361 = vmatprep.subr.bf16.mxu1 %v3452_v0 }
 0x348   :  { %3384 = vmatpush3.bf16.msra.mxu0 %v3383_v62  ;;  %v2544_v62 = vld [vmem:[%s5003_s11 + $0x2] ss:$0 sm:$0xff] }
 0x349   :  { %3385 = vmatprep.subr.bf16.mxu0 %v3452_v0 }
 0x34a   :  { %3363 = vmatpush3.bf16.msra.mxu1 %v3362_v36 }
 0x34b   :  { %3364 = vmatprep.subr.bf16.mxu1 %v3452_v0 }
 0x34c   :  { %3387 = vmatpush3.bf16.msra.mxu0 %v3386_v3 }
 0x34d   :  { %3388 = vmatprep.subr.bf16.mxu0 %v3452_v0 }
 0x34e   :  { %3366 = vmatpush3.bf16.msra.mxu1 %v3365_v38 }
 0x34f   :  { %3367 = vmatprep.subr.bf16.mxu1 %v3452_v0 }
 0x350   :  { %3390 = vmatpush3.bf16.msra.mxu0 %v3389_v7 }
 0x351   :  { %3391 = vmatprep.subr.bf16.mxu0 %v3452_v0 }
 0x352   :  { %3369 = vmatpush3.bf16.msra.mxu1 %v3368_v41 }
 0x353   :  { %3370 = vmatprep.subr.bf16.mxu1 %v3452_v0 }
 0x354   :  { %3393 = vmatpush3.bf16.msra.mxu0 %v3392_v10 }
 0x355   :  { %3394 = vmatprep.subr.bf16.mxu0 %v3452_v0 }
 0x356   :  { %3372 = vmatpush3.bf16.msra.mxu1 %v3371_v45  ;;  %v2156_v45 = vld [vmem:[%s5001_s12 + $0x8] sm:$0xff] }
 0x357   :  { %3373 = vmatprep.subr.bf16.mxu1 %v3452_v0  ;;  %v3410_v50 = vpack.c.bf16 %v2156_v45, %v2155_v43 }
 0x358   :  { %3396 = vmatpush3.bf16.msra.mxu0 %v3395_v14 }
 0x359   :  { %3397 = vmatprep.subr.bf16.mxu0 %v3452_v0 }
 0x35a   :  { %3375 = vmatpush3.bf16.msra.mxu1 %v3374_v48 }
 0x35b   :  { %3376 = vmatprep.subr.bf16.mxu1 %v3452_v0 }
 0x35c   :  { %3399 = vmatpush3.bf16.msra.mxu0 %v3398_v17 }
 0x35d   :  { %3400 = vmatprep.subr.bf16.mxu0 %v3452_v0 }
 0x35e   :  { %3378 = vmatpush3.bf16.msra.mxu1 %v3377_v52  ;;  %v2157_v52 = vld [vmem:[%s5001_s12 + $0x10] sm:$0xff] }
 0x35f   :  { %2996 = vmatprep.subr.mxu1 %v3456_v34 }
 0x360   :  { %3402 = vmatpush3.bf16.msra.mxu0 %v3401_v20  ;;  %v2159_v20 = vld [vmem:[%s5001_s12 + $0x20] sm:$0xff] }
 0x361   :  { %2959 = vmatmul.mubr.f32.vlgmr.msra.gmra.mrb[22].mxu1 %v2534_v49  ;;  %3409 = vmatprep.subr.bf16.mxu0 %v3452_v0  ;;  %v2158_v49 = vld [vmem:[%s5001_s12 + $0x18] sm:$0xff] }
 0x362   :  { %2998 = vmatprep.mubr.msk.f32.mxu1 %vm3455_vm3, %v3456_v34  ;;  %2997 = vmatpush3.msra.mxu1 %v1897_v53  ;;  %v3413_v53 = vpack.c.bf16 %v2158_v49, %v2157_v52 }
 0x363   :  { %3001 = vmatprep.subr.mxu1 %v3456_v34 }
 0x365   :  { %2999 = vmatmul.mubr.msk.f32.vlgmr.msra.gmra.mrb[24].mxu1 %vm1905_vm4, %v1896_v54 }
 0x366   :  { %3002 = vmatpush3.msra.mxu1 %v2538_v55  ;;  %3003 = vmatprep.mubr.msk.f32.mxu1 %vm3455_vm3, %v3456_v34 }
 0x367   :  { %3006 = vmatprep.subr.mxu1 %v3456_v34 }
 0x369   :  { %3004 = vmatmul.mubr.msk.f32.vlgmr.msra.gmra.mrb[26].mxu1 %vm1905_vm4, %v1896_v54 }
 0x36a   :  { %3007 = vmatpush3.msra.mxu1 %v2542_v56  ;;  %3008 = vmatprep.mubr.msk.f32.mxu1 %vm3455_vm3, %v3456_v34 }
 0x36b   :  { %3403 = vmatprep.subr.bf16.mxu1 %v3452_v0 }
 0x36d   :  { %3009 = vmatmul.mubr.msk.f32.vlgmr.msra.gmra.mrb[28].mxu1 %vm1905_vm4, %v1896_v54  ;;  %v2536_v54 = vld [vmem:[%s5003_s11] ss:$0 sm:$0xff] }
 0x36e   :  { %3021 = vmatprep.mubr.msk.f32.mxu1 %vm3455_vm3, %v3456_v34  ;;  %3405 = vmatpush3.bf16.msra.mxu1 %v3404_v24  ;;  %v2408_v24 = vld [vmem:[%s5005_s16] sm:$0xff] }
 0x36f   :  { %3406 = vmatprep.subr.bf16.mxu1 %v3452_v0 }
 0x372   :  { %3408 = vmatpush3.bf16.msra.mxu1 %v3407_v29 }
 0x373   :  { %3019 = vmatprep.subr.mxu1 %v3456_v34 }
 0x376   :  { %3020 = vmatpush3.msra.mxu1 %v2550_v2 }
 0x377   :  { %3415 = vmatprep.subr.bf16.mxu1 %v3452_v0 }
 0x3f4   :  { %v2754_v26 = vpop.f32.mrb[18].mxu1 }
 0x3f5   :  { %v2755_v28 = vpop.f32.mrb[19].mxu1 }
 0x3f6   :  { %v2756_v30 = vadd.f32 %v2755_v28, %v2754_v26  ;;  %v2789_v6 = vpop.f32.mrb[38].mxu0  ;;  %v2535_v26 = vld [vmem:[%s5006_s9] ss:$0 sm:$0xff]  ;;  %v3422_v28 = vpack.c.bf16 %v2409_v25, %v2408_v24 }
 0x3f7   :  { %v2790_v31 = vpop.f32.mrb[39].mxu0 }
 0x3f8   :  { %v1519_v32 = vadd.f32 %v2756_v30, %v2533_v27  ;;  %v2791_v33 = vadd.f32 %v2790_v31, %v2789_v6 }
 0x3fa   :  { %v1589_v35 = vadd.f32 %v2791_v33, %v1519_v32  ;;  %v2324_v32 = vld [vmem:[%s5004_s14 + $0x10] sm:$0xff]  ;;  %v2325_v33 = vld [vmem:[%s5004_s14 + $0x18] sm:$0xff] }
 0x3fb   :  { %v3419_v2 = vpack.c.bf16 %v2325_v33, %v2324_v32 }
 0x414   :  { %v2824_v36 = vpop.f32.mrb[20].mxu1 }
 0x415   :  { %v2825_v13 = vpop.f32.mrb[21].mxu1 }
 0x416   :  { %v2826_v37 = vadd.f32 %v2825_v13, %v2824_v36  ;;  %v2859_v38 = vpop.f32.mrb[40].mxu0  ;;  %v2411_v36 = vld [vmem:[%s5005_s16 + $0x18] sm:$0xff]  ;;  %v2326_v13 = vld [vmem:[%s5004_s14 + $0x20] sm:$0xff] }
 0x417   :  { %v2860_v39 = vpop.f32.mrb[41].mxu0 }
 0x418   :  { %v1659_v40 = vadd.f32 %v2826_v37, %v1589_v35  ;;  %v2861_v41 = vadd.f32 %v2860_v39, %v2859_v38  ;;  %v2410_v35 = vld [vmem:[%s5005_s16 + $0x10] sm:$0xff]  ;;  %v2412_v37 = vld [vmem:[%s5005_s16 + $0x20] sm:$0xff] }
 0x419   :  { %v2553_v39 = vld [vmem:[%s5007_s13] ss:$0 sm:$0xff]  ;;  %s3457_s13 = smov 4  }
 0x41a   :  { %v1729_v42 = vadd.f32 %v2861_v41, %v1659_v40 }
 0x434   :  { %v1798_v46 = vpop.f32.mrb[22].mxu1 }
 0x435   :  { %v1799_v47 = vadd.f32 %v1798_v46, %v1729_v42  ;;  %v2960_v48 = vpop.f32.mrb[23].mxu1  ;;  %v24_v46 = vstv %s5009_s17  ;;  %s3458_s17 = smov 8  }
 0x436   :  { %25 = vst [vmem:[#allocation8] sm:$0x1] %v24_v46 }
 0x437   :  { %v1802_v51 = vmax.f32 %v1799_v47, 0.0  ;;  %v2498_v47 = vsub.s32 0, %v4541_v44 }
 0x438   :  { %v1975_v55 = vpop.f32.mrb[24].mxu1 }
 0x439   :  { %2994 = vmatmul.mubr.f32.vlgmr.msra.gmra.mrb[42].mxu0 %v1802_v51  ;;  %v1976_v56 = vadd.f32 %v2536_v54, %v1975_v55  ;;  %v3000_v57 = vpop.f32.mrb[25].mxu1  ;;  %v2554_v51 = vld [vmem:[%s5010_s15] ss:$0 sm:$0xff] }
 0x43a   :  { %3411 = vmatpush3.bf16.msra.mxu0 %v3410_v50  ;;  %3034 = vmatprep.mubr.msk.f32.mxu0 %vm3455_vm3, %v3456_v34 }
 0x43b   :  { %3412 = vmatprep.subr.bf16.mxu0 %v3452_v0  ;;  %v2145_v58 = vsub.f32 0.0, %v1976_v56 }
 0x43c   :  { %v2055_v59 = vpop.f32.mrb[26].mxu1 }
 0x43d   :  { %v2146_v60 = vmul.f32 1.442695, %v2145_v58  ;;  %v3005_v61 = vpop.f32.mrb[27].mxu1  ;;  %v2056_v8 = vadd.f32 %v2540_v4, %v2055_v59  ;;  %v2556_v52 = vld [vmem:[#allocation8] ss:$0 sm:$0xff] }
 0x43e   :  { %3414 = vmatpush3.bf16.msra.mxu0 %v3413_v53 }
 0x43f   :  { %3032 = vmatprep.subr.mxu0 %v3456_v34  ;;  %3436 = vpow2.f32 %v2146_v60 }
 0x440   :  { %v2135_v63 = vpop.f32.mrb[28].mxu1 }
 0x441   :  { %v2136_v1 = vadd.f32 %v2544_v62, %v2135_v63  ;;  %v3010_v3 = vpop.f32.mrb[29].mxu1 }
 0x442   :  { %3033 = vmatpush3.msra.mxu0 %v2159_v20 }
 0x443   :  { %v2139_v5 = vsub.f32 0.0, %v2136_v1  ;;  %3421 = vmatprep.subr.bf16.mxu0 %v3452_v0 }
 0x445   :  { %v2140_v7 = vmul.f32 1.442695, %v2139_v5 }
 0x447   :  { %3438 = vpow2.f32 %v2140_v7 }
 0x448   :  { %3440 = vtanh.f32 %v2056_v8 }
 0x449   :  { %v3437_v9 = vpop.eup %3436 }
 0x44a   :  { %v2148_v10 = vadd.f32 1.0, %v3437_v9 }
 0x44c   :  { %3442 = vrcp.f32 %v2148_v10 }
 0x451   :  { %v3439_v11 = vpop.eup %3438 }
 0x452   :  { %v2142_v12 = vadd.f32 1.0, %v3439_v11  ;;  %v3441_v14 = vpop.eup %3440 }
 0x454   :  { %3444 = vrcp.f32 %v2142_v12 }
 0x456   :  { %v3443_v15 = vpop.eup %3442 }
 0x457   :  { %v2152_v16 = vmul.f32 %v3443_v15, %v3441_v14 }
 0x459   :  { %3446 = vtanh.f32 %v2152_v16 }
 0x45e   :  { %v3445_v17 = vpop.eup %3444 }
 0x463   :  { %v3447_v18 = vpop.eup %3446 }
 0x464   :  { %v2154_v19 = vmul.f32 %v3447_v18, %v3445_v17 }
 0x466   :  { %3022 = vmatmul.mubr.msk.f32.vlgmr.msra.gmra.mrb[30].mxu1 %vm2166_vm5, %v2154_v19 }
 0x467   :  { %3047 = vmatprep.mubr.msk.f32.mxu1 %vm3455_vm3, %v3456_v34  ;;  %3417 = vmatpush3.bf16.msra.mxu1 %v3416_v23 }
 0x468   :  { %3418 = vmatprep.subr.bf16.mxu1 %v3452_v0 }
 0x46b   :  { %3420 = vmatpush3.bf16.msra.mxu1 %v3419_v2 }
 0x46c   :  { %3045 = vmatprep.subr.mxu1 %v3456_v34 }
 0x46f   :  { %3046 = vmatpush3.msra.mxu1 %v2326_v13 }
 0x50c   :  { %v1892_v27 = vpop.f32.mrb[42].mxu0 }
 0x50d   :  { %v1893_v29 = vadd.f32 %v2535_v26, %v1892_v27  ;;  %v2995_v30 = vpop.f32.mrb[43].mxu0 }
 0x50f   :  { %3035 = vmatmul.mubr.msk.f32.vlgmr.msra.gmra.mrb[44].mxu0 %vm2166_vm5, %v1893_v29 }
 0x510   :  { %3423 = vmatpush3.bf16.msra.mxu0 %v3422_v28  ;;  %3060 = vmatprep.mubr.msk.f32.mxu0 %vm3455_vm3, %v3456_v34 }
 0x511   :  { %3424 = vmatprep.subr.bf16.mxu0 %v3452_v0  ;;  %v3425_v0 = vpack.c.bf16 %v2411_v36, %v2410_v35 }
 0x514   :  { %3426 = vmatpush3.bf16.msra.mxu0 %v3425_v0 }
 0x515   :  { %3058 = vmatprep.subr.mxu0 %v3456_v34  ;;  %v2492_v34 = vld [vmem:[%s5008_s18] sm:$0x1] }
 0x516   :  { %v2493_v45 = vmul.f32 1.442695, %v2492_v34 }
 0x518   :  { %3059 = vmatpush3.msra.mxu0 %v2412_v37  ;;  %3448 = vpow2.f32 %v2493_v45 }
 0x522   :  { %v3449_v48 = vpop.eup %3448 }
 0x523   :  { %v2499_v50 = vrot.slane %v3449_v48, %v2498_v47 }
 0x525   :  { %2500 = vrot.lane.b32.xlu0 %v2499_v50, %s3457_s13 }
 0x539   :  { %v2236_v6 = vpop.f32.mrb[30].mxu1 }
 0x53a   :  { %v3023_v31 = vpop.f32.mrb[31].mxu1 }
 0x597   :  { %v2501_v44 = vpop.permute.xlu0 %2500 }
 0x5e2   :  { %v2309_v38 = vpop.f32.mrb[44].mxu0 }
 0x5e3   :  { %v2310_v40 = vadd.f32 %v2309_v38, %v2236_v6  ;;  %v3036_v41 = vpop.f32.mrb[45].mxu0 }
 0x5e5   :  { %v2320_v42 = vadd.f32 %v2553_v39, %v2310_v40 }
 0x5e7   :  { %v2321_v43 = vmax.f32 %v2320_v42, 0.0 }
 0x5e9   :  { %3048 = vmatmul.mubr.msk.f32.vlgmr.msra.gmra.mrb[32].mxu1 %vm2166_vm5, %v2321_v43  ;;  %3061 = vmatmul.mubr.msk.f32.vlgmr.msra.gmra.mrb[46].mxu0 %vm2166_vm5, %v2321_v43 }
 0x6bc   :  { %v2403_v49 = vpop.f32.mrb[32].mxu1  ;;  %v2486_v53 = vpop.f32.mrb[46].mxu0 }
 0x6bd   :  { %v2404_v54 = vadd.f32 %v2554_v51, %v2403_v49  ;;  %v2487_v55 = vadd.f32 %v2556_v52, %v2486_v53  ;;  %v3049_v56 = vpop.f32.mrb[33].mxu1  ;;  %v3062_v57 = vpop.f32.mrb[47].mxu0 }
 0x6bf   :  { %3450 = vtanh.f32 %v2404_v54  ;;  %2506 = vrot.lane.b32.xlu1 %v2487_v55, %s3458_s17 }
 0x6c9   :  { %v3451_v58 = vpop.eup %3450 }
 0x6ca   :  { %2491 = vst.msk [vmem:[%s5011_s19] sm:$0x3] %vm2490_vm6, %v3451_v58 }
 0x6cb   :  { %2504 = vst.msk [vmem:[%s5011_s19] sm:$0x3] %vm2503_vm7, %v2501_v44 }
 0x731   :  { %v2507_v59 = vpop.permute.xlu1 %2506 }
 0x732   :  { %2510 = vst.msk [vmem:[%s5011_s19] sm:$0x3] %vm2509_vm8, %v2507_v59 }

</bundles_post_ra>
